<compile_context>
chip_gen: v7x
topology: tpu7x:2x2x1
jax: 0.10.0
libtpu: 0.0.40
codegen_flags: <defaults>
</compile_context>

<pallas_src>
import functools

import jax
import jax.numpy as jnp
from jax import lax
from jax.experimental import pallas as pl
from jax.experimental.pallas import tpu as pltpu


def _round_up(x, m):
    return ((x + m - 1) // m) * m


def _conv_bn_relu_kernel(x_ref, w_ref, b_ref, o_ref, *scratch,
                         taps, tm, cin_g, fold, apply_relu):
    """One grid step: one (group, cout-tile, raster-tile, batch) output block.

    x_ref : (1, 1, P, tm + halo, Cin_g) bf16   overlapping raster window (fetched once)
    w_ref : fold -> (1, T*Cin_g, tn) bf16 ; per-tap -> (1, T, Cin_g, tn) bf16
            (BN scale already folded into the weights)
    b_ref : (1, 1, tn) f32                      BN bias
    o_ref : (1, 1, tm, tn) bf16
    scratch (fold only): buf (tm, T*Cin_g) bf16
    """
    if fold:
        buf_ref, = scratch
        # Pack all taps along the contraction axis -> one MXU matmul with K = T*Cin_g.
        for t, (ph, off) in enumerate(taps):
            buf_ref[:, t * cin_g:(t + 1) * cin_g] = x_ref[0, 0, ph, off:off + tm, :]
        acc = jnp.dot(buf_ref[...], w_ref[0], preferred_element_type=jnp.float32)
    else:
        # Large Cin_g: per-tap dots, pure accumulation chain (no interleaved VPU work).
        acc = None
        for t, (ph, off) in enumerate(taps):
            d = jnp.dot(x_ref[0, 0, ph, off:off + tm, :], w_ref[0, t],
                        preferred_element_type=jnp.float32)
            acc = d if acc is None else acc + d

    y = acc + b_ref[0]                       # (tm, tn) f32, BN bias
    if apply_relu:
        y = jnp.maximum(y, 0.0)
    o_ref[0, 0] = y.astype(o_ref.dtype)      # bf16 writeback


def conv_bn_relu_forward(x, w, gamma, beta, running_mean, running_var,
                         *, stride=1, padding=0, groups=1, is_relu=False, eps=1e-5):
    """x: (N, Cin, H, W) NCHW f32.  w: (Cout, Cin//groups, KH, KW) OIHW.  Returns NCHW f32."""
    N, Cin, H, W = x.shape
    Cout, Cin_g, KH, KW = w.shape
    G = groups
    assert Cin == Cin_g * G and Cout % G == 0
    Cout_g = Cout // G
    s = stride

    Hp, Wp = H + 2 * padding, W + 2 * padding
    H_out = (Hp - KH) // s + 1
    W_out = (Wp - KW) // s + 1
    # Stride-1 equivalent (phase-plane) raster dimensions.
    Hq = H_out + (KH - 1) // s
    Wq = W_out + (KW - 1) // s
    T = KH * KW

    # Static tap metadata: (phase plane, raster element offset) per tap.
    taps_full = []
    for kh in range(KH):
        for kw in range(KW):
            taps_full.append(((kh % s) * s + (kw % s), (kh // s) * Wq + (kw // s)))
    phase_keep = sorted({p for p, _ in taps_full})
    phase_pos = {p: i for i, p in enumerate(phase_keep)}
    taps = [(phase_pos[p], o) for p, o in taps_full]
    P = len(phase_keep)
    off_max = max(o for _, o in taps)
    halo = _round_up(off_max, 8) if off_max > 0 else 0

    fold = (T > 1) and (Cin_g < 128)          # fold taps into one matmul for small Cin_g
    TK = T * Cin_g

    # ---- BN (inference) folded into per-output-channel scale & bias ----
    inv_std = lax.rsqrt(running_var.astype(jnp.float32) + eps)
    scale = gamma.astype(jnp.float32) * inv_std                       # (Cout,)
    bias = beta.astype(jnp.float32) - running_mean.astype(jnp.float32) * scale

    # ---- output-channel layout: exact for small Cout_g (masked stores), else 128-dense ----
    Cout_gp = Cout_g if Cout_g <= 32 else _round_up(Cout_g, 128)

    # ---- generation-aware VMEM budget & tile sizes ----
    try:
        vmem_cap = int(pltpu.get_tpu_info().vmem_capacity_bytes)
    except Exception:
        vmem_cap = 64 * 1024 * 1024           # conservative fallback (v7x-sized)
    vmem_limit = min(int(vmem_cap * 0.7), 96 * 1024 * 1024)

    # Cout tiling only when the (double-buffered) weight block would blow the budget.
    weight_budget = vmem_limit // 4
    tn = Cout_gp
    if Cout_gp % 128 == 0 and 2 * 2 * T * Cin_g * Cout_gp > weight_budget:
        tn = 128
        divisors = [d for d in range(128, Cout_gp, 128) if Cout_gp % d == 0]
        for d in sorted(divisors, reverse=True):
            if 2 * 2 * T * Cin_g * d <= weight_budget:
                tn = d
                break
    NT = Cout_gp // tn

    M_raster = Hq * Wq
    tm_cap = 1024 if vmem_cap >= 96 * 1024 * 1024 else 512
    tm = min(tm_cap, _round_up(M_raster, 8))

    def est_vmem(tm_):
        e = 2 * P * (tm_ + halo) * Cin_g * 2          # x window (bf16, double-buffered)
        e += 2 * T * Cin_g * tn * 2                   # weights (bf16)
        e += 2 * tn * 4 * 2                           # bias (f32)
        e += 2 * tm_ * tn * 2                         # output (bf16)
        if fold:
            e += tm_ * _round_up(TK, 128) * 2         # fold scratch
        return e

    while tm > 64 and est_vmem(tm) > int(0.8 * vmem_limit):
        tm = _round_up(tm // 2, 8)

    MT = -(-M_raster // tm)
    M_pad = MT * tm
    win = tm + halo

    # ---- weights: OIHW -> (G, T, Cin_g, Cout_gp), BN scale folded (f32), then bf16 ----
    w_f = w.astype(jnp.float32) * scale[:, None, None, None]
    w_f = w_f.reshape(G, Cout_g, Cin_g, KH, KW)
    w_f = jnp.transpose(w_f, (0, 3, 4, 2, 1)).reshape(G, T, Cin_g, Cout_g)
    w_r = jnp.pad(w_f, ((0, 0), (0, 0), (0, 0), (0, Cout_gp - Cout_g))).astype(jnp.bfloat16)
    if fold:
        w_r = w_r.reshape(G, TK, Cout_gp)             # (kh, kw, cin) flattened -> matches buf
    b_r = jnp.pad(bias.reshape(G, 1, Cout_g), ((0, 0), (0, 0), (0, Cout_gp - Cout_g)))

    # ---- input: NCHW -> phase-plane raster (N, G, P, L, Cin_g), bf16 (single pass) ----
    x_nhwc = jnp.transpose(x, (0, 2, 3, 1)).astype(jnp.bfloat16)      # (N, H, W, Cin)
    pad_h = max(0, Hq * s - Hp)
    pad_w = max(0, Wq * s - Wp)
    x_pad = jnp.pad(x_nhwc, ((0, 0), (padding, padding + pad_h),
                             (padding, padding + pad_w), (0, 0)))
    x_pad = x_pad[:, :Hq * s, :Wq * s, :]
    x_r = x_pad.reshape(N, Hq, s, Wq, s, G, Cin_g)
    x_r = jnp.transpose(x_r, (0, 5, 2, 4, 1, 3, 6)).reshape(N, G, s * s, Hq * Wq, Cin_g)
    if P != s * s:
        # Keep only the phase planes actually read by some tap (e.g. 1x1 stride-2 conv).
        x_r = x_r[:, :, jnp.asarray(phase_keep, dtype=jnp.int32)]

    # Overlapping (tm + halo) windows, materialized once (~(1 + halo/tm)x input bytes).
    if halo > 0:
        L = M_pad + tm
        x_r = jnp.pad(x_r, ((0, 0), (0, 0), (0, 0), (0, L - M_raster), (0, 0)))
        body = x_r[:, :, :, :M_pad, :].reshape(N, G, P, MT, tm, Cin_g)
        tail = x_r[:, :, :, tm:tm + M_pad, :].reshape(
            N, G, P, MT, tm, Cin_g)[:, :, :, :, :halo, :]
        x_win = jnp.concatenate([body, tail], axis=4)
    else:
        x_r = jnp.pad(x_r, ((0, 0), (0, 0), (0, 0), (0, M_pad - M_raster), (0, 0)))
        x_win = x_r.reshape(N, G, P, MT, tm, Cin_g)
    x_win = x_win.reshape(N, G, P, MT * win, Cin_g)

    kernel = functools.partial(_conv_bn_relu_kernel, taps=taps, tm=tm, cin_g=Cin_g,
                               fold=fold, apply_relu=is_relu)

    # grid = (G, NT, MT, N): weight block constant across the two inner axes; the
    # usually-large raster axis is the outermost >1-extent parallel axis (megacore split).
    x_spec = pl.BlockSpec((1, 1, P, win, Cin_g), lambda g, j, m, n: (n, g, 0, m, 0))
    if fold:
        w_spec = pl.BlockSpec((1, TK, tn), lambda g, j, m, n: (g, 0, j))
    else:
        w_spec = pl.BlockSpec((1, T, Cin_g, tn), lambda g, j, m, n: (g, 0, 0, j))
    b_spec = pl.BlockSpec((1, 1, tn), lambda g, j, m, n: (g, 0, j))
    o_spec = pl.BlockSpec((1, 1, tm, tn), lambda g, j, m, n: (n, g, m, j))

    scratch_shapes = [pltpu.VMEM((tm, TK), jnp.bfloat16)] if fold else []

    out = pl.pallas_call(
        kernel,
        out_shape=jax.ShapeDtypeStruct((N, G, M_pad, Cout_gp), jnp.bfloat16),
        grid=(G, NT, MT, N),
        in_specs=[x_spec, w_spec, b_spec],
        out_specs=o_spec,
        scratch_shapes=scratch_shapes,
        compiler_params=pltpu.CompilerParams(
            dimension_semantics=("parallel", "parallel", "parallel", "parallel"),
            vmem_limit_bytes=vmem_limit,
        ),
    )(x_win, w_r, b_r)

    # ---- extract valid outputs: padded raster -> (N, H_out, W_out, Cout) -> NCHW f32 ----
    y = out[:, :, :M_raster, :Cout_g].astype(jnp.float32)
    y = y.reshape(N, G, Hq, Wq, Cout_g)[:, :, :H_out, :W_out, :]
    y = jnp.transpose(y, (0, 1, 4, 2, 3)).reshape(N, Cout, H_out, W_out)
    return y


def _reference_f32(x, w, gamma, beta, rmean, rvar, *, stride, padding, groups, is_relu,
                   eps=1e-5):
    y = lax.conv_general_dilated(
        x.astype(jnp.float32), w.astype(jnp.float32),
        window_strides=(stride, stride),
        padding=[(padding, padding), (padding, padding)],
        dimension_numbers=("NCHW", "OIHW", "NCHW"),
        feature_group_count=groups,
        precision=lax.Precision.HIGHEST)
    inv_std = lax.rsqrt(rvar + eps)
    y = (y - rmean[None, :, None, None]) * (gamma * inv_std)[None, :, None, None] \
        + beta[None, :, None, None]
    if is_relu:
        y = jnp.maximum(y, 0.0)
    return y


def _reference_bf16_inputs(x, w, gamma, beta, rmean, rvar, *, stride, padding, groups,
                           is_relu, eps=1e-5):
    # Same bf16 input/weight rounding + f32 accumulation as the kernel.
    inv_std = lax.rsqrt(rvar + eps)
    scale = gamma * inv_std
    bias = beta - rmean * scale
    x_b = x.astype(jnp.bfloat16).astype(jnp.float32)
    w_b = (w.astype(jnp.float32) * scale[:, None, None, None]).astype(jnp.bfloat16) \
        .astype(jnp.float32)
    y = lax.conv_general_dilated(
        x_b, w_b, window_strides=(stride, stride),
        padding=[(padding, padding), (padding, padding)],
        dimension_numbers=("NCHW", "OIHW", "NCHW"),
        feature_group_count=groups,
        precision=lax.Precision.HIGHEST)
    y = y + bias[None, :, None, None]
    if is_relu:
        y = jnp.maximum(y, 0.0)
    return y


if __name__ == "__main__":
    # Small configs exercising: fold path + ReLU, strided/grouped (multi phase-plane),
    # and 1x1 (per-tap / no-halo) paths.
    configs = [
        # (N, Cin, H, W, Cout, K, stride, padding, groups, is_relu)
        ("3x3_s1_g1_relu", 2, 4, 16, 16, 8, 3, 1, 1, 1, True),
        ("3x3_s2_g2",      2, 8, 16, 16, 8, 3, 2, 1, 2, False),
        ("1x1_s1_g1_relu", 2, 32, 16, 16, 16, 1, 1, 0, 1, True),
    ]

    key = jax.random.PRNGKey(0)
    for name, N, Cin, H, W, Cout, K, stride, padding, groups, is_relu in configs:
        key, kx, kw_, kg, kb, km, kv = jax.random.split(key, 7)
        x = jax.random.normal(kx, (N, Cin, H, W), dtype=jnp.float32)
        w = jax.random.normal(kw_, (Cout, Cin // groups, K, K), dtype=jnp.float32) * 0.1
        gamma = jax.random.uniform(kg, (Cout,), minval=0.5, maxval=1.5, dtype=jnp.float32)
        beta = jax.random.normal(kb, (Cout,), dtype=jnp.float32) * 0.1
        rmean = jax.random.normal(km, (Cout,), dtype=jnp.float32) * 0.1
        rvar = jax.random.uniform(kv, (Cout,), minval=0.5, maxval=1.5, dtype=jnp.float32)

        out = conv_bn_relu_forward(x, w, gamma, beta, rmean, rvar,
                                   stride=stride, padding=padding, groups=groups,
                                   is_relu=is_relu)
        out = jax.block_until_ready(out)

        H_out = (H + 2 * padding - K) // stride + 1
        W_out = (W + 2 * padding - K) // stride + 1
        assert out.shape == (N, Cout, H_out, W_out), (name, out.shape)

        # Tight check vs a reference with identical bf16 rounding of inputs and output.
        ref_b = _reference_bf16_inputs(x, w, gamma, beta, rmean, rvar,
                                       stride=stride, padding=padding, groups=groups,
                                       is_relu=is_relu)
        ref_b = ref_b.astype(jnp.bfloat16).astype(jnp.float32)
        assert jnp.allclose(out, ref_b, atol=1e-2, rtol=1e-2), f"{name}: bf16-ref mismatch"

        # Loose check vs the pure-f32 ConvBnRelu reference.
        ref_f = _reference_f32(x, w, gamma, beta, rmean, rvar,
                               stride=stride, padding=padding, groups=groups,
                               is_relu=is_relu)
        assert jnp.allclose(out, ref_f, atol=4e-2, rtol=4e-2), f"{name}: f32-ref mismatch"

    print("KERNEL_OK")
</pallas_src>

<mosaic_0001>
module attributes {stable_mosaic.version = 11 : i64} {
  func.func @_conv_bn_relu_kernel(%arg0: i32, %arg1: i32, %arg2: i32, %arg3: i32, %arg4: memref<1x1x1x368x4xbf16, #tpu.memory_space<vmem>>, %arg5: memref<1x36x8xbf16, #tpu.memory_space<vmem>>, %arg6: memref<1x1x8xf32, #tpu.memory_space<vmem>>, %arg7: memref<1x1x328x8xbf16, #tpu.memory_space<vmem>>, %arg8: memref<328x36xbf16, #tpu.memory_space<vmem>>) attributes {dimension_semantics = [#tpu.dimension_semantics<parallel>, #tpu.dimension_semantics<parallel>, #tpu.dimension_semantics<parallel>, #tpu.dimension_semantics<parallel>], iteration_bounds = array<i64: 1, 1, 1, 2>, scalar_prefetch = 0 : i64, scratch_operands = 1 : i64, tpu.core_type = #tpu.core_type<tc>, window_params = [{transform_indices = @transform_0, window_bounds = array<i64: 1, 1, 1, 368, 4>}, {transform_indices = @transform_1, window_bounds = array<i64: 1, 36, 8>}, {transform_indices = @transform_2, window_bounds = array<i64: 1, 1, 8>}, {transform_indices = @transform_3, window_bounds = array<i64: 1, 1, 328, 8>}]} {
    %c0 = arith.constant 0 : index
    %c0_0 = arith.constant 0 : index
    %c0_1 = arith.constant 0 : index
    %c0_2 = arith.constant 0 : index
    %c0_3 = arith.constant 0 : index
    %0 = vector.load %arg4[%c0, %c0_0, %c0_1, %c0_2, %c0_3] : memref<1x1x1x368x4xbf16, #tpu.memory_space<vmem>>, vector<1x1x1x328x4xbf16>
    %1 = vector.shape_cast %0 : vector<1x1x1x328x4xbf16> to vector<328x4xbf16>
    %c0_4 = arith.constant 0 : index
    %c0_5 = arith.constant 0 : index
    %2 = vector.load %arg8[%c0_4, %c0_5] : memref<328x36xbf16, #tpu.memory_space<vmem>>, vector<328x4xbf16>
    tpu.vector_store %arg8[%c0_4, %c0_5], %1 {strides = array<i32>} : memref<328x36xbf16, #tpu.memory_space<vmem>>, vector<328x4xbf16>,
    %c0_6 = arith.constant 0 : index
    %c0_7 = arith.constant 0 : index
    %c0_8 = arith.constant 0 : index
    %c1 = arith.constant 1 : index
    %c0_9 = arith.constant 0 : index
    %3 = vector.load %arg4[%c0_6, %c0_7, %c0_8, %c1, %c0_9] : memref<1x1x1x368x4xbf16, #tpu.memory_space<vmem>>, vector<1x1x1x328x4xbf16>
    %4 = vector.shape_cast %3 : vector<1x1x1x328x4xbf16> to vector<328x4xbf16>
    %c0_10 = arith.constant 0 : index
    %c4 = arith.constant 4 : index
    %5 = vector.load %arg8[%c0_10, %c4] : memref<328x36xbf16, #tpu.memory_space<vmem>>, vector<328x4xbf16>
    tpu.vector_store %arg8[%c0_10, %c4], %4 {strides = array<i32>} : memref<328x36xbf16, #tpu.memory_space<vmem>>, vector<328x4xbf16>,
    %c0_11 = arith.constant 0 : index
    %c0_12 = arith.constant 0 : index
    %c0_13 = arith.constant 0 : index
    %c2 = arith.constant 2 : index
    %c0_14 = arith.constant 0 : index
    %6 = vector.load %arg4[%c0_11, %c0_12, %c0_13, %c2, %c0_14] : memref<1x1x1x368x4xbf16, #tpu.memory_space<vmem>>, vector<1x1x1x328x4xbf16>
    %7 = vector.shape_cast %6 : vector<1x1x1x328x4xbf16> to vector<328x4xbf16>
    %c0_15 = arith.constant 0 : index
    %c8 = arith.constant 8 : index
    %8 = vector.load %arg8[%c0_15, %c8] : memref<328x36xbf16, #tpu.memory_space<vmem>>, vector<328x4xbf16>
    tpu.vector_store %arg8[%c0_15, %c8], %7 {strides = array<i32>} : memref<328x36xbf16, #tpu.memory_space<vmem>>, vector<328x4xbf16>,
    %c0_16 = arith.constant 0 : index
    %c0_17 = arith.constant 0 : index
    %c0_18 = arith.constant 0 : index
    %c18 = arith.constant 18 : index
    %c0_19 = arith.constant 0 : index
    %9 = vector.load %arg4[%c0_16, %c0_17, %c0_18, %c18, %c0_19] : memref<1x1x1x368x4xbf16, #tpu.memory_space<vmem>>, vector<1x1x1x328x4xbf16>
    %10 = vector.shape_cast %9 : vector<1x1x1x328x4xbf16> to vector<328x4xbf16>
    %c0_20 = arith.constant 0 : index
    %c12 = arith.constant 12 : index
    %11 = vector.load %arg8[%c0_20, %c12] : memref<328x36xbf16, #tpu.memory_space<vmem>>, vector<328x4xbf16>
    tpu.vector_store %arg8[%c0_20, %c12], %10 {strides = array<i32>} : memref<328x36xbf16, #tpu.memory_space<vmem>>, vector<328x4xbf16>,
    %c0_21 = arith.constant 0 : index
    %c0_22 = arith.constant 0 : index
    %c0_23 = arith.constant 0 : index
    %c19 = arith.constant 19 : index
    %c0_24 = arith.constant 0 : index
    %12 = vector.load %arg4[%c0_21, %c0_22, %c0_23, %c19, %c0_24] : memref<1x1x1x368x4xbf16, #tpu.memory_space<vmem>>, vector<1x1x1x328x4xbf16>
    %13 = vector.shape_cast %12 : vector<1x1x1x328x4xbf16> to vector<328x4xbf16>
    %c0_25 = arith.constant 0 : index
    %c16 = arith.constant 16 : index
    %14 = vector.load %arg8[%c0_25, %c16] : memref<328x36xbf16, #tpu.memory_space<vmem>>, vector<328x4xbf16>
    tpu.vector_store %arg8[%c0_25, %c16], %13 {strides = array<i32>} : memref<328x36xbf16, #tpu.memory_space<vmem>>, vector<328x4xbf16>,
    %c0_26 = arith.constant 0 : index
    %c0_27 = arith.constant 0 : index
    %c0_28 = arith.constant 0 : index
    %c20 = arith.constant 20 : index
    %c0_29 = arith.constant 0 : index
    %15 = vector.load %arg4[%c0_26, %c0_27, %c0_28, %c20, %c0_29] : memref<1x1x1x368x4xbf16, #tpu.memory_space<vmem>>, vector<1x1x1x328x4xbf16>
    %16 = vector.shape_cast %15 : vector<1x1x1x328x4xbf16> to vector<328x4xbf16>
    %c0_30 = arith.constant 0 : index
    %c20_31 = arith.constant 20 : index
    %17 = vector.load %arg8[%c0_30, %c20_31] : memref<328x36xbf16, #tpu.memory_space<vmem>>, vector<328x4xbf16>
    tpu.vector_store %arg8[%c0_30, %c20_31], %16 {strides = array<i32>} : memref<328x36xbf16, #tpu.memory_space<vmem>>, vector<328x4xbf16>,
    %c0_32 = arith.constant 0 : index
    %c0_33 = arith.constant 0 : index
    %c0_34 = arith.constant 0 : index
    %c36 = arith.constant 36 : index
    %c0_35 = arith.constant 0 : index
    %18 = vector.load %arg4[%c0_32, %c0_33, %c0_34, %c36, %c0_35] : memref<1x1x1x368x4xbf16, #tpu.memory_space<vmem>>, vector<1x1x1x328x4xbf16>
    %19 = vector.shape_cast %18 : vector<1x1x1x328x4xbf16> to vector<328x4xbf16>
    %c0_36 = arith.constant 0 : index
    %c24 = arith.constant 24 : index
    %20 = vector.load %arg8[%c0_36, %c24] : memref<328x36xbf16, #tpu.memory_space<vmem>>, vector<328x4xbf16>
    tpu.vector_store %arg8[%c0_36, %c24], %19 {strides = array<i32>} : memref<328x36xbf16, #tpu.memory_space<vmem>>, vector<328x4xbf16>,
    %c0_37 = arith.constant 0 : index
    %c0_38 = arith.constant 0 : index
    %c0_39 = arith.constant 0 : index
    %c37 = arith.constant 37 : index
    %c0_40 = arith.constant 0 : index
    %21 = vector.load %arg4[%c0_37, %c0_38, %c0_39, %c37, %c0_40] : memref<1x1x1x368x4xbf16, #tpu.memory_space<vmem>>, vector<1x1x1x328x4xbf16>
    %22 = vector.shape_cast %21 : vector<1x1x1x328x4xbf16> to vector<328x4xbf16>
    %c0_41 = arith.constant 0 : index
    %c28 = arith.constant 28 : index
    %23 = vector.load %arg8[%c0_41, %c28] : memref<328x36xbf16, #tpu.memory_space<vmem>>, vector<328x4xbf16>
    tpu.vector_store %arg8[%c0_41, %c28], %22 {strides = array<i32>} : memref<328x36xbf16, #tpu.memory_space<vmem>>, vector<328x4xbf16>,
    %c0_42 = arith.constant 0 : index
    %c0_43 = arith.constant 0 : index
    %c0_44 = arith.constant 0 : index
    %c38 = arith.constant 38 : index
    %c0_45 = arith.constant 0 : index
    %24 = vector.load %arg4[%c0_42, %c0_43, %c0_44, %c38, %c0_45] : memref<1x1x1x368x4xbf16, #tpu.memory_space<vmem>>, vector<1x1x1x328x4xbf16>
    %25 = vector.shape_cast %24 : vector<1x1x1x328x4xbf16> to vector<328x4xbf16>
    %c0_46 = arith.constant 0 : index
    %c32 = arith.constant 32 : index
    %26 = vector.load %arg8[%c0_46, %c32] : memref<328x36xbf16, #tpu.memory_space<vmem>>, vector<328x4xbf16>
    tpu.vector_store %arg8[%c0_46, %c32], %25 {strides = array<i32>} : memref<328x36xbf16, #tpu.memory_space<vmem>>, vector<328x4xbf16>,
    %c0_47 = arith.constant 0 : index
    %c0_48 = arith.constant 0 : index
    %27 = vector.load %arg8[%c0_47, %c0_48] : memref<328x36xbf16, #tpu.memory_space<vmem>>, vector<328x36xbf16>
    %c0_49 = arith.constant 0 : index
    %c0_50 = arith.constant 0 : index
    %c0_51 = arith.constant 0 : index
    %28 = vector.load %arg5[%c0_49, %c0_50, %c0_51] : memref<1x36x8xbf16, #tpu.memory_space<vmem>>, vector<1x36x8xbf16>
    %29 = vector.shape_cast %28 : vector<1x36x8xbf16> to vector<36x8xbf16>
    %cst = arith.constant dense<0.000000e+00> : vector<328x8xf32>
    %30 = tpu.matmul %27, %29, %cst {dimension_numbers = #tpu.dot_dimension_numbers<[1], [0], [0], [1], [0, 0, 1, 1], [], []>} : vector<328x36xbf16>, vector<36x8xbf16>, vector<328x8xf32> -> vector<328x8xf32>
    %c0_52 = arith.constant 0 : index
    %c0_53 = arith.constant 0 : index
    %c0_54 = arith.constant 0 : index
    %31 = vector.load %arg6[%c0_52, %c0_53, %c0_54] : memref<1x1x8xf32, #tpu.memory_space<vmem>>, vector<1x1x8xf32>
    %32 = vector.shape_cast %31 : vector<1x1x8xf32> to vector<1x8xf32>
    %33 = vector.broadcast %32 : vector<1x8xf32> to vector<328x8xf32>
    %34 = arith.addf %30, %33 : vector<328x8xf32>
    %cst_55 = arith.constant 0.000000e+00 : f32
    %35 = vector.broadcast %cst_55 : f32 to vector<328x8xf32>
    %36 = arith.maximumf %34, %35 : vector<328x8xf32>
    %37 = arith.truncf %36 : vector<328x8xf32> to vector<328x8xbf16>
    %c0_56 = arith.constant 0 : index
    %c0_57 = arith.constant 0 : index
    %c0_58 = arith.constant 0 : index
    %c0_59 = arith.constant 0 : index
    %38 = vector.load %arg7[%c0_56, %c0_57, %c0_58, %c0_59] : memref<1x1x328x8xbf16, #tpu.memory_space<vmem>>, vector<1x1x328x8xbf16>
    %39 = vector.shape_cast %38 : vector<1x1x328x8xbf16> to vector<328x8xbf16>
    %40 = vector.shape_cast %37 : vector<328x8xbf16> to vector<1x1x328x8xbf16>
    tpu.vector_store %arg7[%c0_56, %c0_57, %c0_58, %c0_59], %40 {strides = array<i32>} : memref<1x1x328x8xbf16, #tpu.memory_space<vmem>>, vector<1x1x328x8xbf16>,
    return
  }
  func.func @transform_0(%arg0: i32, %arg1: i32, %arg2: i32, %arg3: i32) -> (i32, i32, i32, i32, i32) {
    %c0_i32 = arith.constant 0 : i32
    %c0_i32_0 = arith.constant 0 : i32
    %c0_i32_1 = arith.constant 0 : i32
    return %arg3, %arg0, %c0_i32, %arg2, %c0_i32_0 : i32, i32, i32, i32, i32
  }
  func.func @transform_1(%arg0: i32, %arg1: i32, %arg2: i32, %arg3: i32) -> (i32, i32, i32) {
    %c0_i32 = arith.constant 0 : i32
    %c0_i32_0 = arith.constant 0 : i32
    return %arg0, %c0_i32, %arg1 : i32, i32, i32
  }
  func.func @transform_2(%arg0: i32, %arg1: i32, %arg2: i32, %arg3: i32) -> (i32, i32, i32) {
    %c0_i32 = arith.constant 0 : i32
    %c0_i32_0 = arith.constant 0 : i32
    return %arg0, %c0_i32, %arg1 : i32, i32, i32
  }
  func.func @transform_3(%arg0: i32, %arg1: i32, %arg2: i32, %arg3: i32) -> (i32, i32, i32, i32) {
    %c0_i32 = arith.constant 0 : i32
    return %arg3, %arg0, %arg2, %arg1 : i32, i32, i32, i32
  }
}

</mosaic_0001>

<bundles_post_ra>
// kernel: tpu_custom_call.1
= control target key start
LH: loop header
LB: loop body
LE: loop exit
PB: predicated region body
PF: predicated region fallthrough
CT: control target
= control target key end

     0   :  { %s5376_s12 = smov 0   ;;  %s5378_s13 = smov 0   ;;  %s8003_s0 = inlined_call_operand.vmem [shape: bf16[2,1,1,368,4], index: 0, kind: input, shape index: {}]   ;;  %s8004_s1 = inlined_call_operand.vmem [shape: bf16[1,36,8], index: 1, kind: input, shape index: {}]   ;;  %s8005_s2 = inlined_call_operand.vmem [shape: f32[1,1,8], index: 2, kind: input, shape index: {}]   ;;  %s8006_s3 = inlined_call_operand.vmem [shape: bf16[2,1,328,8], index: 3, kind: output, shape index: {}]  }
   0x1   :  { %s5380_s14 = smov 0  }
   0x2 LB: > { %s28_s15 = sadd.s32 1, %s5340_s13  ;;  %p5004_p0 = scmp.ge.s32.totalorder %s5344_s14, 1  ;;  %s5344_s14 = sphi %s5380_s14, %s13_s14   ;;  %s5340_s13 = sphi %s5378_s13, %s8020_s13   ;;  %s5336_s12 = sphi %s5376_s12, %s8019_s12  }
   0x3   : > { %p29_p1 = scmp.ge.s32.totalorder %s28_s15, 2  ;;  %p210_p2 = scmp.lt.s32.totalorder %s5344_s14, 3 }
   0x5   : > { %s8022_s15 = smov (%p29_p1, %s28_s15), 0  ;;  %p211_p3 = pnand %p5004_p0, %p210_p2 }
   0x6   : > { %p268_p4 = scmp.lt.s32.totalorder (!%p211_p3), %s5336_s12, 1  ;;  %vm438_vm0 = vsmask.f32 (!%p211_p3), 3328  ;;  %vm439_vm1 = vsmask.f32 (!%p211_p3), 7440  ;;  %s5346_s20 = smov (!%p211_p3), 4  }
   0x7   : > { %214 = sbr.rel (%p211_p3) target bundleno = 1024 (0x400), region = 32  ;;  %vm5411_vm2 = vmor (!%p211_p3), %vm438_vm0, %vm439_vm1  ;;  %vm354_vm3 = vcmask (!%p211_p3), 27648   ;;  %vm1104_vm4 = vcmask (!%p211_p3), 1042432   ;;  %vm1105_vm5 = vcmask (!%p211_p3), 1046532   ;;  %s5347_s21 = smov (!%p211_p3), 8   ;;  %vm978_vm7 = vcmask (!%p211_p3), 60448  }
   0x8   : > { %vm5687_vm6 = vmor (!%p211_p3), %vm1104_vm4, %vm1105_vm5  ;;  %s5348_s22 = smov (!%p211_p3), 12   ;;  %vm1354_vm8 = vcmask (!%p211_p3), 93248   ;;  %vm1811_vm9 = vsmask.f32 (!%p211_p3), 2304  ;;  %vm1812_vm10 = vsmask.f32 (!%p211_p3), 6416 }
   0x9   : > { %vm6124_vm11 = vmor (!%p211_p3), %vm1811_vm9, %vm1812_vm10  ;;  %s5349_s23 = smov (!%p211_p3), 16   ;;  %vm1727_vm12 = vcmask (!%p211_p3), 126048   ;;  %vm2481_vm13 = vcmask (!%p211_p3), 1041408   ;;  %vm2482_vm14 = vcmask (!%p211_p3), 1045508   ;;  %vm3188_vm0 = vsmask.f32 (!%p211_p3), 1280 }
   0xa   : > { %vm6231_vm15 = vmor (!%p211_p3), %vm2481_vm13, %vm2482_vm14  ;;  %vm3189_vm1 = vsmask.f32 (!%p211_p3), 5392  ;;  %s5350_s24 = smov (!%p211_p3), 20   ;;  %vm3859_vm4 = vcmask (!%p211_p3), 1044484   ;;  %s5352_s27 = smov (!%p211_p3), 24   ;;  %vm3104_vm9 = vcmask (!%p211_p3), 224448  }
   0xb   : > { %s5353_s5 = smov (!%p211_p3), 28   ;;  %s5354_s6 = smov (!%p211_p3), 32   ;;  %vm3732_vm10 = vcmask (!%p211_p3), 257248  }
   0xe   : > { %s8024_s12 = smov (!%p268_p4, %s5336_s12), 1 }
   0xf   : > { %s5262_s16 = smul.u32 184, %s8024_s12 }
  0x10   : > { %s5263_s9 = smul.u32 164, %s8024_s12 }
  0x11   : > { %s5400_s19 = scalar_lea.vmem %s8003_s0, %s5262_s16 }
  0x12   : > { %v398_v0 = vld [vmem:[%s5400_s19 + $0x8] sm:$0xf]  ;;  %v399_v1 = vld [vmem:[%s5400_s19 + $0xc] sm:$0xf]  ;;  %v396_v2 = vld [vmem:[%s5400_s19] sm:$0xf]  ;;  %s7754_s12 = scalar_lea.vmem %s8006_s3, %s5263_s9 }
  0x13   : > { %v461_v3 = vshll.u32 %v398_v0, 16  ;;  %v465_v4 = vshrl.u32 %v398_v0, 16  ;;  %v471_v5 = vshll.u32 %v399_v1, 16  ;;  %v475_v6 = vshrl.u32 %v399_v1, 16  ;;  %v397_v7 = vld [vmem:[%s5400_s19 + $0x4] sm:$0xf] }
  0x14   : > { %v442_v8 = vshrl.u32 %v396_v2, 16  ;;  %v445_v9 = vshll.u32 %v396_v2, 16  ;;  %v451_v10 = vshll.u32 %v397_v7, 16  ;;  %v455_v11 = vshrl.u32 %v397_v7, 16  ;;  %v400_v12 = vld [vmem:[%s5400_s19 + $0x10] sm:$0xf] }
  0x15   : > { %v463_v13 = vrot.slane %v461_v3, 5  ;;  %v467_v14 = vrot.slane %v465_v4, 4  ;;  %v473_v15 = vrot.slane %v471_v5, 5  ;;  %v477_v16 = vrot.slane %v475_v6, 4  ;;  %v401_v17 = vld [vmem:[%s5400_s19 + $0x14] sm:$0xf] }
  0x16   : > { %v444_v18 = vrot.slane %v442_v8, 4  ;;  %v447_v19 = vrot.slane %v445_v9, 5  ;;  %v453_v20 = vrot.slane %v451_v10, 5  ;;  %v457_v21 = vrot.slane %v455_v11, 4  ;;  %v402_v22 = vld [vmem:[%s5400_s19 + $0x18] sm:$0xf] }
  0x17   : > { %v468_v23 = vor.u32 %v467_v14, %v463_v13  ;;  %v478_v24 = vor.u32 %v477_v16, %v473_v15  ;;  %v481_v25 = vshll.u32 %v400_v12, 16  ;;  %v485_v26 = vshrl.u32 %v400_v12, 16  ;;  %v403_v36 = vld [vmem:[%s5400_s19 + $0x1c] sm:$0xf]  ;;  %v404_v41 = vld [vmem:[%s5400_s19 + $0x20] sm:$0xf] }
  0x18   : > { %v448_v28 = vor.u32 %v447_v19, %v444_v18  ;;  %v458_v29 = vor.u32 %v457_v21, %v453_v20  ;;  %v491_v30 = vshll.u32 %v401_v17, 16  ;;  %v495_v31 = vshrl.u32 %v401_v17, 16  ;;  %v405_v46 = vld [vmem:[%s5400_s19 + $0x24] sm:$0xf]  ;;  %v406_v58 = vld [vmem:[%s5400_s19 + $0x28] sm:$0xf] }
  0x19   : > { %v469_v32 = vrot.slane %v468_v23, 4  ;;  %v479_v33 = vrot.slane %v478_v24, 4  ;;  %v483_v34 = vrot.slane %v481_v25, 5  ;;  %v501_v35 = vshll.u32 %v402_v22, 16  ;;  %v407_v0 = vld [vmem:[%s5400_s19 + $0x2c] sm:$0xf] }
  0x1a   : > { %v449_v37 = vrot.slane %v448_v28, 4  ;;  %v459_v38 = vrot.slane %v458_v29, 4  ;;  %v493_v39 = vrot.slane %v491_v30, 5  ;;  %v497_v40 = vrot.slane %v495_v31, 4  ;;  %v408_v9 = vld [vmem:[%s5400_s19 + $0x30] sm:$0xf] }
  0x1b   : > { %v474_v42 = vsel %vm5411_vm2, %v469_v32, %v473_v15  ;;  %v484_v43 = vsel %vm5411_vm2, %v479_v33, %v483_v34  ;;  %v503_v44 = vrot.slane %v501_v35, 5  ;;  %v505_v45 = vshrl.u32 %v402_v22, 16  ;;  %v409_v17 = vld [vmem:[%s5400_s19 + $0x34] sm:$0xf]  ;;  %v410_v22 = vld [vmem:[%s5400_s19 + $0x38] sm:$0xf] }
  0x1c   : > { %859 = vrot.lane.b32.xlu1 %v474_v42, %s5346_s20  ;;  %v454_v47 = vsel %vm5411_vm2, %v449_v37, %v453_v20  ;;  %v464_v48 = vsel %vm5411_vm2, %v459_v38, %v463_v13  ;;  %v498_v49 = vor.u32 %v497_v40, %v493_v39  ;;  %v487_v50 = vrot.slane %v485_v26, 4  ;;  %v411_v32 = vld [vmem:[%s5400_s19 + $0x3c] sm:$0xf]  ;;  %v412_v37 = vld [vmem:[%s5400_s19 + $0x40] sm:$0xf] }
  0x1d   : > { %855 = vrot.lane.b32.xlu0 %v454_v47, %s5346_s20  ;;  %v511_v51 = vshll.u32 %v403_v36, 16  ;;  %v515_v52 = vshrl.u32 %v403_v36, 16  ;;  %v521_v53 = vshll.u32 %v404_v41, 16  ;;  %v525_v54 = vshrl.u32 %v404_v41, 16 }
  0x1e   : > { %v499_v55 = vrot.slane %v498_v49, 4  ;;  %v488_v56 = vor.u32 %v487_v50, %v483_v34  ;;  %v507_v57 = vrot.slane %v505_v45, 4  ;;  %v531_v59 = vshll.u32 %v405_v46, 16  ;;  %v413_v50 = vld [vmem:[%s5400_s19 + $0x44] sm:$0xf] }
  0x1f   : > { %v513_v60 = vrot.slane %v511_v51, 5  ;;  %v517_v61 = vrot.slane %v515_v52, 4  ;;  %v523_v62 = vrot.slane %v521_v53, 5  ;;  %v535_v63 = vshrl.u32 %v405_v46, 16 }
  0x20   : > { %861 = vrot.lane.b32.xlu1 %v484_v43, %s5346_s20  ;;  %v504_v1 = vsel %vm5411_vm2, %v499_v55, %v503_v44  ;;  %v489_v2 = vrot.slane %v488_v56, 4  ;;  %v508_v3 = vor.u32 %v507_v57, %v503_v44  ;;  %v533_v4 = vrot.slane %v531_v59, 5  ;;  %v414_v55 = vld [vmem:[%s5400_s19 + $0x48] sm:$0xf] }
  0x21   : > { %857 = vrot.lane.b32.xlu0 %v464_v48, %s5346_s20  ;;  %v518_v5 = vor.u32 %v517_v61, %v513_v60  ;;  %v537_v6 = vrot.slane %v535_v63, 4  ;;  %v541_v7 = vshll.u32 %v406_v58, 16  ;;  %v545_v8 = vshrl.u32 %v406_v58, 16 }
  0x22   : > { %v494_v10 = vsel %vm5411_vm2, %v489_v2, %v493_v39  ;;  %v509_v11 = vrot.slane %v508_v3, 4  ;;  %v527_v12 = vrot.slane %v525_v54, 4  ;;  %v551_v13 = vshll.u32 %v407_v0, 16 }
  0x23   : > { %v519_v14 = vrot.slane %v518_v5, 4  ;;  %v538_v15 = vor.u32 %v537_v6, %v533_v4  ;;  %v555_v16 = vshrl.u32 %v407_v0, 16  ;;  %v543_v18 = vrot.slane %v541_v7, 5  ;;  %v415_v0 = vld [vmem:[%s5400_s19 + $0x4c] sm:$0xf] }
  0x24   : > { %865 = vrot.lane.b32.xlu1 %v504_v1, %s5346_s20  ;;  %v528_v19 = vor.u32 %v527_v12, %v523_v62  ;;  %v553_v20 = vrot.slane %v551_v13, 5  ;;  %v561_v21 = vshll.u32 %v408_v9, 16  ;;  %v565_v26 = vshrl.u32 %v408_v9, 16  ;;  %v416_v5 = vld [vmem:[%s5400_s19 + $0x50] sm:$0xf] }
  0x25   : > { %863 = vrot.lane.b32.xlu0 %v494_v10, %s5346_s20  ;;  %v524_v23 = vsel %vm5411_vm2, %v519_v14, %v523_v62  ;;  %v539_v24 = vrot.slane %v538_v15, 4  ;;  %v557_v25 = vrot.slane %v555_v16, 4  ;;  %v514_v28 = vsel %vm5411_vm2, %v509_v11, %v513_v60 }
  0x26   : > { %v529_v29 = vrot.slane %v528_v19, 4  ;;  %v547_v30 = vrot.slane %v545_v8, 4  ;;  %v571_v31 = vshll.u32 %v409_v17, 16  ;;  %v563_v34 = vrot.slane %v561_v21, 5 }
  0x27   : > { %v558_v33 = vor.u32 %v557_v25, %v553_v20  ;;  %v575_v35 = vshrl.u32 %v409_v17, 16  ;;  %v581_v36 = vshll.u32 %v410_v22, 16  ;;  %v544_v38 = vsel %vm5411_vm2, %v539_v24, %v543_v18  ;;  %v417_v17 = vld [vmem:[%s5400_s19 + $0x54] sm:$0xf] }
  0x28   : > { %869 = vrot.lane.b32.xlu1 %v524_v23, %s5346_s20  ;;  %v534_v39 = vsel %vm5411_vm2, %v529_v29, %v533_v4  ;;  %v548_v40 = vor.u32 %v547_v30, %v543_v18  ;;  %v573_v41 = vrot.slane %v571_v31, 5  ;;  %v585_v44 = vshrl.u32 %v410_v22, 16  ;;  %v418_v22 = vld [vmem:[%s5400_s19 + $0x58] sm:$0xf]  ;;  %v419_v31 = vld [vmem:[%s5400_s19 + $0x5c] sm:$0xf] }
  0x29   : > { %867 = vrot.lane.b32.xlu0 %v514_v28, %s5346_s20  ;;  %v559_v42 = vrot.slane %v558_v33, 4  ;;  %v577_v43 = vrot.slane %v575_v35, 4  ;;  %v567_v45 = vrot.slane %v565_v26, 4  ;;  %v591_v47 = vshll.u32 %v411_v32, 16 }
  0x2a   : > { %v549_v46 = vrot.slane %v548_v40, 4  ;;  %v595_v48 = vshrl.u32 %v411_v32, 16  ;;  %v601_v49 = vshll.u32 %v412_v37, 16  ;;  %v583_v53 = vrot.slane %v581_v36, 5  ;;  %v420_v36 = vld [vmem:[%s5400_s19 + $0x60] sm:$0xf] }
  0x2b   : > { %v564_v51 = vsel %vm5411_vm2, %v559_v42, %v563_v34  ;;  %v578_v52 = vor.u32 %v577_v43, %v573_v41  ;;  %v568_v54 = vor.u32 %v567_v45, %v563_v34  ;;  %v593_v57 = vrot.slane %v591_v47, 5 }
  0x2c   : > { %873 = vrot.lane.b32.xlu1 %v544_v38, %s5346_s20  ;;  %v554_v56 = vsel %vm5411_vm2, %v549_v46, %v553_v20  ;;  %v597_v58 = vrot.slane %v595_v48, 4  ;;  %v605_v59 = vshrl.u32 %v412_v37, 16  ;;  %v587_v62 = vrot.slane %v585_v44, 4 }
  0x2d   : > { %871 = vrot.lane.b32.xlu0 %v534_v39, %s5346_s20  ;;  %v579_v60 = vrot.slane %v578_v52, 4  ;;  %v569_v61 = vrot.slane %v568_v54, 4  ;;  %v611_v63 = vshll.u32 %v413_v50, 16  ;;  %v603_v2 = vrot.slane %v601_v49, 5  ;;  %v421_v49 = vld [vmem:[%s5400_s19 + $0x64] sm:$0xf] }
  0x2e   : > { %v598_v1 = vor.u32 %v597_v58, %v593_v57  ;;  %v615_v3 = vshrl.u32 %v413_v50, 16  ;;  %v621_v4 = vshll.u32 %v414_v55, 16  ;;  %v588_v6 = vor.u32 %v587_v62, %v583_v53 }
  0x2f   : > { %v5463_v7 = vrot.slane %v611_v63, 5  ;;  %v625_v8 = vshrl.u32 %v414_v55, 16  ;;  %v584_v9 = vsel %vm5411_vm2, %v579_v60, %v583_v53  ;;  %v607_v12 = vrot.slane %v605_v59, 4  ;;  %v422_v60 = vld [vmem:[%s5400_s19 + $0x68] sm:$0xf] }
  0x30   : > { %877 = vrot.lane.b32.xlu1 %v564_v51, %s5346_s20  ;;  %v599_v10 = vrot.slane %v598_v1, 4  ;;  %v617_v11 = vrot.slane %v615_v3, 4  ;;  %v574_v13 = vsel %vm5411_vm2, %v569_v61, %v573_v41  ;;  %v631_v14 = vshll.u32 %v415_v0, 16 }
  0x31   : > { %875 = vrot.lane.b32.xlu0 %v554_v56, %s5346_s20  ;;  %v635_v15 = vshrl.u32 %v415_v0, 16  ;;  %v641_v16 = vshll.u32 %v416_v5, 16  ;;  %v589_v18 = vrot.slane %v588_v6, 4  ;;  %v623_v20 = vrot.slane %v621_v4, 5 }
  0x32   : > { %v618_v19 = vor.u32 %v617_v11, %v5463_v7  ;;  %v608_v21 = vor.u32 %v607_v12, %v603_v2  ;;  %v5474_v23 = vrot.slane %v631_v14, 5  ;;  %v645_v25 = vshrl.u32 %v416_v5, 16  ;;  %v315_v12 = vld [vmem:[%s5400_s19 + $0x8] sm:$0xf] }
  0x33   : > { %v637_v24 = vrot.slane %v635_v15, 4  ;;  %v604_v26 = vsel %vm5411_vm2, %v599_v10, %v603_v2  ;;  %v627_v29 = vrot.slane %v625_v8, 4  ;;  %v651_v30 = vshll.u32 %v417_v17, 16  ;;  %v423_v2 = vld [vmem:[%s5400_s19 + $0x6c] sm:$0xf] }
  0x34   : > { %881 = vrot.lane.b32.xlu1 %v584_v9, %s5346_s20  ;;  %v619_v28 = vrot.slane %v618_v19, 4  ;;  %v643_v33 = vrot.slane %v641_v16, 5  ;;  %v655_v34 = vshrl.u32 %v417_v17, 16  ;;  %v661_v35 = vshll.u32 %v418_v22, 16  ;;  %v425_v16 = vld [vmem:[%s5400_s19 + $0x74] sm:$0xf] }
  0x35   : > { %879 = vrot.lane.b32.xlu0 %v574_v13, %s5346_s20  ;;  %v638_v32 = vor.u32 %v637_v24, %v5474_v23  ;;  %v594_v37 = vsel %vm5411_vm2, %v589_v18, %v593_v57  ;;  %v609_v38 = vrot.slane %v608_v21, 4  ;;  %v628_v39 = vor.u32 %v627_v29, %v623_v20  ;;  %357 = vst.msk [vmem:[#allocation2 + $0x8] sm:$0xf] %vm354_vm3, %v315_v12  ;;  %v313_v17 = vld [vmem:[%s5400_s19] sm:$0xf] }
  0x36   : > { %v5485_v40 = vrot.slane %v651_v30, 5  ;;  %v624_v41 = vsel %vm5411_vm2, %v619_v28, %v623_v20  ;;  %v657_v42 = vrot.slane %v655_v34, 4  ;;  %v665_v43 = vshrl.u32 %v418_v22, 16  ;;  %v426_v22 = vld [vmem:[%s5400_s19 + $0x78] sm:$0xf] }
  0x37   : > { %v647_v44 = vrot.slane %v645_v25, 4  ;;  %v639_v45 = vrot.slane %v638_v32, 4  ;;  %v671_v46 = vshll.u32 %v419_v31, 16  ;;  %v675_v47 = vshrl.u32 %v419_v31, 16  ;;  %355 = vst.msk [vmem:[#allocation2] sm:$0xf] %vm354_vm3, %v313_v17 }
  0x38   : > { %885 = vrot.lane.b32.xlu1 %v604_v26, %s5346_s20  ;;  %v681_v48 = vshll.u32 %v420_v36, 16  ;;  %v629_v50 = vrot.slane %v628_v39, 4  ;;  %v658_v51 = vor.u32 %v657_v42, %v5485_v40  ;;  %v663_v52 = vrot.slane %v661_v35, 5  ;;  %v316_v28 = vld [vmem:[%s5400_s19 + $0xc] sm:$0xf] }
  0x39   : > { %883 = vrot.lane.b32.xlu0 %v594_v37, %s5346_s20  ;;  %v648_v53 = vor.u32 %v647_v44, %v643_v33  ;;  %v614_v54 = vsel %vm5411_vm2, %v609_v38, %v5463_v7  ;;  %v5496_v55 = vrot.slane %v671_v46, 5  ;;  %v677_v56 = vrot.slane %v675_v47, 4  ;;  %v424_v7 = vld [vmem:[%s5400_s19 + $0x70] sm:$0xf]  ;;  %358 = vst.msk [vmem:[#allocation2 + $0xc] sm:$0xf] %vm354_vm3, %v316_v28 }
  0x3a   : > { %v685_v57 = vshrl.u32 %v420_v36, 16  ;;  %v659_v58 = vrot.slane %v658_v51, 4  ;;  %v667_v59 = vrot.slane %v665_v43, 4  ;;  %v691_v61 = vshll.u32 %v421_v49, 16  ;;  %v427_v37 = vld [vmem:[%s5400_s19 + $0x7c] sm:$0xf] }
  0x3b   : > { %v644_v62 = vsel %vm5411_vm2, %v639_v45, %v643_v33  ;;  %v678_v63 = vor.u32 %v677_v56, %v5496_v55  ;;  %v5503_v0 = vrot.slane %v681_v48, 5  ;;  %v695_v1 = vshrl.u32 %v421_v49, 16  ;;  %v314_v33 = vld [vmem:[%s5400_s19 + $0x4] sm:$0xf]  ;;  %v428_v42 = vld [vmem:[%s5400_s19 + $0x80] sm:$0xf] }
  0x3c   : > { %889 = vrot.lane.b32.xlu1 %v624_v41, %s5346_s20  ;;  %v634_v3 = vsel %vm5411_vm2, %v629_v50, %v5474_v23  ;;  %v649_v4 = vrot.slane %v648_v53, 4  ;;  %v668_v5 = vor.u32 %v667_v59, %v663_v52  ;;  %v5510_v6 = vrot.slane %v691_v61, 5  ;;  %356 = vst.msk [vmem:[#allocation2 + $0x4] sm:$0xf] %vm354_vm3, %v314_v33  ;;  %v318_v43 = vld [vmem:[%s5400_s19 + $0x14] sm:$0xf] }
  0x3d   : > { %887 = vrot.lane.b32.xlu0 %v614_v54, %s5346_s20  ;;  %v697_v8 = vrot.slane %v695_v1, 4  ;;  %v701_v9 = vshll.u32 %v422_v60, 16  ;;  %v705_v10 = vshrl.u32 %v422_v60, 16  ;;  %v687_v11 = vrot.slane %v685_v57, 4  ;;  %360 = vst.msk [vmem:[#allocation2 + $0x14] sm:$0xf] %vm354_vm3, %v318_v43 }
  0x3e   : > { %v664_v13 = vsel %vm5411_vm2, %v659_v58, %v663_v52  ;;  %v711_v14 = vshll.u32 %v423_v2, 16  ;;  %v715_v15 = vshrl.u32 %v423_v2, 16  ;;  %v679_v18 = vrot.slane %v678_v63, 4  ;;  %v317_v48 = vld [vmem:[%s5400_s19 + $0x10] sm:$0xf] }
  0x3f   : > { %v669_v19 = vrot.slane %v668_v5, 4  ;;  %v698_v20 = vor.u32 %v697_v8, %v5510_v6  ;;  %v688_v21 = vor.u32 %v687_v11, %v5503_v0  ;;  %v654_v23 = vsel %vm5411_vm2, %v649_v4, %v5485_v40  ;;  %v429_v53 = vld [vmem:[%s5400_s19 + $0x84] sm:$0xf]  ;;  %359 = vst.msk [vmem:[#allocation2 + $0x10] sm:$0xf] %vm354_vm3, %v317_v48 }
  0x40   : > { %893 = vrot.lane.b32.xlu1 %v644_v62, %s5346_s20  ;;  %v5528_v24 = vrot.slane %v711_v14, 5  ;;  %v717_v25 = vrot.slane %v715_v15, 4  ;;  %v721_v26 = vshll.u32 %v424_v7, 16  ;;  %v703_v29 = vrot.slane %v701_v9, 5  ;;  %v430_v56 = vld [vmem:[%s5400_s19 + $0x88] sm:$0xf] }
  0x41   : > { %891 = vrot.lane.b32.xlu0 %v634_v3, %s5346_s20  ;;  %v725_v30 = vshrl.u32 %v424_v7, 16  ;;  %v707_v31 = vrot.slane %v705_v10, 4  ;;  %v731_v32 = vshll.u32 %v425_v16, 16  ;;  %v699_v34 = vrot.slane %v698_v20, 4  ;;  %v320_v57 = vld [vmem:[%s5400_s19 + $0x1c] sm:$0xf] }
  0x42   : > { %v735_v35 = vshrl.u32 %v425_v16, 16  ;;  %v741_v36 = vshll.u32 %v426_v22, 16  ;;  %v684_v38 = vsel %vm5411_vm2, %v679_v18, %v5503_v0  ;;  %v674_v39 = vsel %vm5411_vm2, %v669_v19, %v5496_v55  ;;  %362 = vst.msk [vmem:[#allocation2 + $0x1c] sm:$0xf] %vm354_vm3, %v320_v57  ;;  %v319_v62 = vld [vmem:[%s5400_s19 + $0x18] sm:$0xf] }
  0x43   : > { %v689_v40 = vrot.slane %v688_v21, 4  ;;  %v718_v41 = vor.u32 %v717_v25, %v5528_v24  ;;  %v5546_v44 = vrot.slane %v721_v26, 5  ;;  %v5548_v45 = vrot.slane %v731_v32, 5  ;;  %361 = vst.msk [vmem:[#allocation2 + $0x18] sm:$0xf] %vm354_vm3, %v319_v62 }
  0x44   : > { %897 = vrot.lane.b32.xlu1 %v664_v13, %s5346_s20  ;;  %v737_v46 = vrot.slane %v735_v35, 4  ;;  %v745_v47 = vshrl.u32 %v426_v22, 16  ;;  %v708_v49 = vor.u32 %v707_v31, %v703_v29  ;;  %v727_v50 = vrot.slane %v725_v30, 4  ;;  %v431_v7 = vld [vmem:[%s5400_s19 + $0x8c] sm:$0xf] }
  0x45   : > { %895 = vrot.lane.b32.xlu0 %v654_v23, %s5346_s20  ;;  %v751_v51 = vshll.u32 %v427_v37, 16  ;;  %v755_v52 = vshrl.u32 %v427_v37, 16  ;;  %v704_v54 = vsel %vm5411_vm2, %v699_v34, %v703_v29  ;;  %v5556_v55 = vrot.slane %v741_v36, 5  ;;  %v322_v11 = vld [vmem:[%s5400_s19 + $0x24] sm:$0xf] }
  0x46   : > { %v694_v58 = vsel %vm5411_vm2, %v689_v40, %v5510_v6  ;;  %v719_v59 = vrot.slane %v718_v41, 4  ;;  %v738_v63 = vor.u32 %v737_v46, %v5548_v45  ;;  %v761_v0 = vshll.u32 %v428_v42, 16  ;;  %v321_v12 = vld [vmem:[%s5400_s19 + $0x20] sm:$0xf]  ;;  %364 = vst.msk [vmem:[#allocation2 + $0x24] sm:$0xf] %vm354_vm3, %v322_v11 }
  0x47   : > { %v5564_v60 = vrot.slane %v751_v51, 5  ;;  %v757_v61 = vrot.slane %v755_v52, 4  ;;  %v747_v1 = vrot.slane %v745_v47, 4  ;;  %v771_v2 = vshll.u32 %v429_v53, 16  ;;  %363 = vst.msk [vmem:[#allocation2 + $0x20] sm:$0xf] %vm354_vm3, %v321_v12 }
  0x48   : > { %901 = vrot.lane.b32.xlu1 %v684_v38, %s5346_s20  ;;  %v709_v3 = vrot.slane %v708_v49, 4  ;;  %v728_v4 = vor.u32 %v727_v50, %v5546_v44  ;;  %v765_v5 = vshrl.u32 %v428_v42, 16  ;;  %v775_v6 = vshrl.u32 %v429_v53, 16  ;;  %v433_v21 = vld [vmem:[%s5400_s19 + $0x94] sm:$0xf] }
  0x49   : > { %899 = vrot.lane.b32.xlu0 %v674_v39, %s5346_s20  ;;  %v758_v8 = vor.u32 %v757_v61, %v5564_v60  ;;  %v748_v9 = vor.u32 %v747_v1, %v5556_v55  ;;  %v781_v10 = vshll.u32 %v430_v56, 16  ;;  %v724_v13 = vsel %vm5411_vm2, %v719_v59, %v5546_v44  ;;  %v324_v26 = vld [vmem:[%s5400_s19 + $0x2c] sm:$0xf]  ;;  %v323_v28 = vld [vmem:[%s5400_s19 + $0x28] sm:$0xf] }
  0x4a   : > { %v5581_v14 = vrot.slane %v771_v2, 5  ;;  %v777_v15 = vrot.slane %v775_v6, 4  ;;  %v785_v16 = vshrl.u32 %v430_v56, 16  ;;  %v739_v17 = vrot.slane %v738_v63, 4  ;;  %v432_v32 = vld [vmem:[%s5400_s19 + $0x90] sm:$0xf] }
  0x4b   : > { %v763_v18 = vrot.slane %v761_v0, 5  ;;  %v791_v19 = vshll.u32 %v431_v7, 16  ;;  %v795_v20 = vshrl.u32 %v431_v7, 16  ;;  %v714_v22 = vsel %vm5411_vm2, %v709_v3, %v5528_v24  ;;  %366 = vst.msk [vmem:[#allocation2 + $0x2c] sm:$0xf] %vm354_vm3, %v324_v26 }
  0x4c   : > { %905 = vrot.lane.b32.xlu1 %v704_v54, %s5346_s20  ;;  %v729_v23 = vrot.slane %v728_v4, 4  ;;  %v767_v25 = vrot.slane %v765_v5, 4  ;;  %v759_v29 = vrot.slane %v758_v8, 4  ;;  %v749_v30 = vrot.slane %v748_v9, 4  ;;  %365 = vst.msk [vmem:[#allocation2 + $0x28] sm:$0xf] %vm354_vm3, %v323_v28 }
  0x4d   : > { %903 = vrot.lane.b32.xlu0 %v694_v58, %s5346_s20  ;;  %v5592_v31 = vrot.slane %v781_v10, 5  ;;  %v778_v24 = vor.u32 %v777_v15, %v5581_v14  ;;  %v5599_v33 = vrot.slane %v791_v19, 5  ;;  %v797_v34 = vrot.slane %v795_v20, 4  ;;  %v434_v37 = vld [vmem:[%s5400_s19 + $0x98] sm:$0xf] }
  0x4e   : > { %v787_v35 = vrot.slane %v785_v16, 4  ;;  %v744_v36 = vsel %vm5411_vm2, %v739_v17, %v5556_v55  ;;  %v811_v38 = vshll.u32 %v433_v21, 16  ;;  %v815_v39 = vshrl.u32 %v433_v21, 16  ;;  %v326_v40 = vld [vmem:[%s5400_s19 + $0x34] sm:$0xf] }
  0x4f   : > { %v734_v41 = vsel %vm5411_vm2, %v729_v23, %v5548_v45  ;;  %v768_v42 = vor.u32 %v767_v25, %v763_v18  ;;  %v801_v43 = vshll.u32 %v432_v32, 16  ;;  %v805_v44 = vshrl.u32 %v432_v32, 16  ;;  %v435_v46 = vld [vmem:[%s5400_s19 + $0x9c] sm:$0xf]  ;;  %368 = vst.msk [vmem:[#allocation2 + $0x34] sm:$0xf] %vm354_vm3, %v326_v40 }
  0x50   : > { %909 = vrot.lane.b32.xlu1 %v724_v13, %s5346_s20  ;;  %v325_v47 = vld [vmem:[%s5400_s19 + $0x30] sm:$0xf]  ;;  %v764_v48 = vsel %vm5411_vm2, %v759_v29, %v763_v18  ;;  %v754_v49 = vsel %vm5411_vm2, %v749_v30, %v5564_v60  ;;  %v779_v45 = vrot.slane %v778_v24, 4  ;;  %v798_v50 = vor.u32 %v797_v34, %v5599_v33  ;;  %v328_v53 = vld [vmem:[%s5400_s19 + $0x3c] sm:$0xf] }
  0x51   : > { %907 = vrot.lane.b32.xlu0 %v714_v22, %s5346_s20  ;;  %367 = vst.msk [vmem:[#allocation2 + $0x30] sm:$0xf] %vm354_vm3, %v325_v47  ;;  %v788_v51 = vor.u32 %v787_v35, %v5592_v31  ;;  %v821_v52 = vshll.u32 %v434_v37, 16  ;;  %v5624_v54 = vrot.slane %v811_v38, 5  ;;  %v817_v55 = vrot.slane %v815_v39, 4 }
  0x52   : > { %v831_v56 = vshll.u32 %v435_v46, 16  ;;  %v835_v57 = vshrl.u32 %v435_v46, 16  ;;  %370 = vst.msk [vmem:[#allocation2 + $0x3c] sm:$0xf] %vm354_vm3, %v328_v53  ;;  %v327_v58 = vld [vmem:[%s5400_s19 + $0x38] sm:$0xf]  ;;  %v784_v1 = vsel %vm5411_vm2, %v779_v45, %v5592_v31 }
  0x53   : > { %v769_v59 = vrot.slane %v768_v42, 4  ;;  %v803_v60 = vrot.slane %v801_v43, 5  ;;  %v825_v61 = vshrl.u32 %v434_v37, 16  ;;  %v807_v62 = vrot.slane %v805_v44, 4  ;;  %v436_v63 = vld [vmem:[%s5400_s19 + $0xa0] sm:$0xf] }
  0x54   : > { %913 = vrot.lane.b32.xlu1 %v744_v36, %s5346_s20  ;;  %369 = vst.msk [vmem:[#allocation2 + $0x38] sm:$0xf] %vm354_vm3, %v327_v58  ;;  %v330_v0 = vld [vmem:[%s5400_s19 + $0x44] sm:$0xf]  ;;  %v799_v2 = vrot.slane %v798_v50, 4  ;;  %v789_v3 = vrot.slane %v788_v51, 4  ;;  %v818_v6 = vor.u32 %v817_v55, %v5624_v54 }
  0x55   : > { %911 = vrot.lane.b32.xlu0 %v734_v41, %s5346_s20  ;;  %v823_v4 = vrot.slane %v821_v52, 5  ;;  %372 = vst.msk [vmem:[#allocation2 + $0x44] sm:$0xf] %vm354_vm3, %v330_v0  ;;  %v329_v5 = vld [vmem:[%s5400_s19 + $0x40] sm:$0xf]  ;;  %v5639_v7 = vrot.slane %v831_v56, 5  ;;  %v774_v10 = vsel %vm5411_vm2, %v769_v59, %v5581_v14  ;;  %v808_v11 = vor.u32 %v807_v62, %v803_v60 }
  0x56   : > { %v837_v8 = vrot.slane %v835_v57, 4  ;;  %v841_v9 = vshll.u32 %v436_v63, 16  ;;  %371 = vst.msk [vmem:[#allocation2 + $0x40] sm:$0xf] %vm354_vm3, %v329_v5  ;;  %v845_v12 = vshrl.u32 %v436_v63, 16  ;;  %v827_v13 = vrot.slane %v825_v61, 4 }
  0x57   : > { %v332_v15 = vld [vmem:[%s5400_s19 + $0x4c] sm:$0xf]  ;;  %v331_v16 = vld [vmem:[%s5400_s19 + $0x48] sm:$0xf]  ;;  %v804_v17 = vsel %vm5411_vm2, %v799_v2, %v803_v60  ;;  %v794_v14 = vsel %vm5411_vm2, %v789_v3, %v5599_v33  ;;  %v819_v18 = vrot.slane %v818_v6, 4  ;;  %v809_v22 = vrot.slane %v808_v11, 4 }
  0x58   : > { %917 = vrot.lane.b32.xlu1 %v764_v48, %s5346_s20  ;;  %374 = vst.msk [vmem:[#allocation2 + $0x4c] sm:$0xf] %vm354_vm3, %v332_v15  ;;  %373 = vst.msk [vmem:[#allocation2 + $0x48] sm:$0xf] %vm354_vm3, %v331_v16  ;;  %v838_v19 = vor.u32 %v837_v8, %v5639_v7  ;;  %v334_v20 = vld [vmem:[%s5400_s19 + $0x54] sm:$0xf]  ;;  %v828_v25 = vor.u32 %v827_v13, %v823_v4 }
  0x59   : > { %915 = vrot.lane.b32.xlu0 %v754_v49, %s5346_s20  ;;  %v333_v21 = vld [vmem:[%s5400_s19 + $0x50] sm:$0xf]  ;;  %v843_v23 = vrot.slane %v841_v9, 5  ;;  %v847_v26 = vrot.slane %v845_v12, 4  ;;  %376 = vst.msk [vmem:[#allocation2 + $0x54] sm:$0xf] %vm354_vm3, %v334_v20  ;;  %v824_v30 = vsel %vm5411_vm2, %v819_v18, %v823_v4  ;;  %v814_v33 = vsel %vm5411_vm2, %v809_v22, %v5624_v54 }
  0x5a   : > { %375 = vst.msk [vmem:[#allocation2 + $0x50] sm:$0xf] %vm354_vm3, %v333_v21  ;;  %v437_v28 = vld [vmem:[%s5400_s19 + $0xa4] sm:$0x1]  ;;  %v336_v29 = vld [vmem:[%s5400_s19 + $0x5c] sm:$0xf] }
  0x5b   : > { %v839_v31 = vrot.slane %v838_v19, 4  ;;  %v1020_v32 = vld [vmem:[%s5400_s19] sm:$0xe]  ;;  %378 = vst.msk [vmem:[#allocation2 + $0x5c] sm:$0xf] %vm354_vm3, %v336_v29  ;;  %v829_v34 = vrot.slane %v828_v25, 4  ;;  %v848_v36 = vor.u32 %v847_v26, %v843_v23 }
  0x5c   : > { %921 = vrot.lane.b32.xlu1 %v784_v1, %s5346_s20  ;;  %v335_v24 = vld [vmem:[%s5400_s19 + $0x58] sm:$0xf]  ;;  %v1021_v35 = vld [vmem:[%s5400_s19 + $0x4] sm:$0xf]  ;;  %v851_v37 = vshll.u32 %v437_v28, 16  ;;  %v5007_v42 = vrot.slane %v1020_v32, 9 }
  0x5d   : > { %919 = vrot.lane.b32.xlu0 %v774_v10, %s5346_s20  ;;  %v1022_v38 = vld [vmem:[%s5400_s19 + $0x8] sm:$0xf]  ;;  %377 = vst.msk [vmem:[#allocation2 + $0x58] sm:$0xf] %vm354_vm3, %v335_v24  ;;  %v338_v39 = vld [vmem:[%s5400_s19 + $0x64] sm:$0xf]  ;;  %v844_v41 = vsel %vm5411_vm2, %v839_v31, %v843_v23  ;;  %v834_v46 = vsel %vm5411_vm2, %v829_v34, %v5639_v7 }
  0x5e   : > { %v337_v40 = vld [vmem:[%s5400_s19 + $0x60] sm:$0xf]  ;;  %380 = vst.msk [vmem:[#allocation2 + $0x64] sm:$0xf] %vm354_vm3, %v338_v39  ;;  %v1109_v43 = vrot.slane %v1021_v35, 5  ;;  %v1112_v44 = vrot.slane %v1022_v38, 5 }
  0x5f   : > { %379 = vst.msk [vmem:[#allocation2 + $0x60] sm:$0xf] %vm354_vm3, %v337_v40  ;;  %v849_v48 = vrot.slane %v848_v36, 4  ;;  %v853_v49 = vrot.slane %v851_v37, 5  ;;  %v1023_v45 = vld [vmem:[%s5400_s19 + $0xc] sm:$0xf] }
  0x60   : > { %925 = vrot.lane.b32.xlu1 %v804_v17, %s5346_s20  ;;  %v1024_v50 = vld [vmem:[%s5400_s19 + $0x10] sm:$0xf]  ;;  %v340_v51 = vld [vmem:[%s5400_s19 + $0x6c] sm:$0xf]  ;;  %v1025_v52 = vld [vmem:[%s5400_s19 + $0x14] sm:$0xf]  ;;  %v1110_v54 = vsel %vm5687_vm6, %v5007_v42, %v1109_v43 }
  0x61   : > { %923 = vrot.lane.b32.xlu0 %v794_v14, %s5346_s20  ;;  %382 = vst.msk [vmem:[#allocation2 + $0x6c] sm:$0xf] %vm354_vm3, %v340_v51  ;;  %v339_v53 = vld [vmem:[%s5400_s19 + $0x68] sm:$0xf]  ;;  %v1114_v55 = vrot.slane %v1112_v44, 4  ;;  %v1115_v56 = vrot.slane %v1023_v45, 5  ;;  %v854_v59 = vsel %vm5411_vm2, %v849_v48, %v853_v49  ;;  %vm6270_vm2 = vmor %vm3188_vm0, %vm3189_vm1 }
  0x62   : > { %v1118_v57 = vrot.slane %v1024_v50, 5  ;;  %381 = vst.msk [vmem:[#allocation2 + $0x68] sm:$0xf] %vm354_vm3, %v339_v53  ;;  %v342_v58 = vld [vmem:[%s5400_s19 + $0x74] sm:$0xf]  ;;  %v1111_v60 = vrot.slane %v1109_v43, 4 }
  0x63   : > { %v1026_v61 = vld [vmem:[%s5400_s19 + $0x18] sm:$0xf]  ;;  %384 = vst.msk [vmem:[#allocation2 + $0x74] sm:$0xf] %vm354_vm3, %v342_v58  ;;  %v341_v62 = vld [vmem:[%s5400_s19 + $0x70] sm:$0xf]  ;;  %v1116_v27 = vsel %vm5687_vm6, %v1114_v55, %v1115_v56 }
  0x64   : > { %929 = vrot.lane.b32.xlu1 %v824_v30, %s5346_s20  ;;  %383 = vst.msk [vmem:[#allocation2 + $0x70] sm:$0xf] %vm354_vm3, %v341_v62  ;;  %v1027_v63 = vld [vmem:[%s5400_s19 + $0x1c] sm:$0xf]  ;;  %v1120_v0 = vrot.slane %v1118_v57, 4  ;;  %v1121_v1 = vrot.slane %v1025_v52, 5  ;;  %v1113_v4 = vsel %vm5687_vm6, %v1111_v60, %v1112_v44 }
  0x65   : > { %927 = vrot.lane.b32.xlu0 %v814_v33, %s5346_s20  ;;  %v1124_v2 = vrot.slane %v1026_v61, 5  ;;  %v344_v3 = vld [vmem:[%s5400_s19 + $0x7c] sm:$0xf]  ;;  %v1117_v5 = vrot.slane %v1115_v56, 4  ;;  %v1028_v6 = vld [vmem:[%s5400_s19 + $0x20] sm:$0xf] }
  0x66   : > { %386 = vst.msk [vmem:[#allocation2 + $0x7c] sm:$0xf] %vm354_vm3, %v344_v3  ;;  %v343_v7 = vld [vmem:[%s5400_s19 + $0x78] sm:$0xf]  ;;  %v346_v8 = vld [vmem:[%s5400_s19 + $0x84] sm:$0xf]  ;;  %v1122_v10 = vsel %vm5687_vm6, %v1120_v0, %v1121_v1 }
  0x67   : > { %385 = vst.msk [vmem:[#allocation2 + $0x78] sm:$0xf] %vm354_vm3, %v343_v7  ;;  %388 = vst.msk [vmem:[#allocation2 + $0x84] sm:$0xf] %vm354_vm3, %v346_v8  ;;  %v345_v9 = vld [vmem:[%s5400_s19 + $0x80] sm:$0xf]  ;;  %v1119_v15 = vsel %vm5687_vm6, %v1117_v5, %v1118_v57 }
  0x68   : > { %933 = vrot.lane.b32.xlu1 %v844_v41, %s5346_s20  ;;  %v1126_v11 = vrot.slane %v1124_v2, 4  ;;  %v1127_v12 = vrot.slane %v1027_v63, 5  ;;  %v1130_v13 = vrot.slane %v1028_v6, 5  ;;  %387 = vst.msk [vmem:[#allocation2 + $0x80] sm:$0xf] %vm354_vm3, %v345_v9  ;;  %v1123_v16 = vrot.slane %v1121_v1, 4 }
  0x69   : > { %931 = vrot.lane.b32.xlu0 %v834_v46, %s5346_s20  ;;  %v1029_v17 = vld [vmem:[%s5400_s19 + $0x24] sm:$0xf]  ;;  %v1030_v14 = vld [vmem:[%s5400_s19 + $0x28] sm:$0xf]  ;;  %v348_v18 = vld [vmem:[%s5400_s19 + $0x8c] sm:$0xf] }
  0x6a   : > { %v1031_v19 = vld [vmem:[%s5400_s19 + $0x2c] sm:$0xf]  ;;  %390 = vst.msk [vmem:[#allocation2 + $0x8c] sm:$0xf] %vm354_vm3, %v348_v18  ;;  %v347_v20 = vld [vmem:[%s5400_s19 + $0x88] sm:$0xf]  ;;  %v1128_v21 = vsel %vm5687_vm6, %v1126_v11, %v1127_v12  ;;  %v1125_v28 = vsel %vm5687_vm6, %v1123_v16, %v1124_v2 }
  0x6b   : > { %v1132_v22 = vrot.slane %v1130_v13, 4  ;;  %v1133_v23 = vrot.slane %v1029_v17, 5  ;;  %v1136_v25 = vrot.slane %v1030_v14, 5  ;;  %389 = vst.msk [vmem:[#allocation2 + $0x88] sm:$0xf] %vm354_vm3, %v347_v20  ;;  %v1129_v29 = vrot.slane %v1127_v12, 4 }
  0x6c   : > { %1231 = vrot.lane.b32.xlu1 %v1110_v54, %s5347_s21  ;;  %v350_v26 = vld [vmem:[%s5400_s19 + $0x94] sm:$0xf]  ;;  %v1032_v30 = vld [vmem:[%s5400_s19 + $0x30] sm:$0xf]  ;;  %v1139_v34 = vrot.slane %v1031_v19, 5 }
  0x6d   : > { %935 = vrot.lane.b32.xlu0 %v854_v59, %s5346_s20  ;;  %392 = vst.msk [vmem:[#allocation2 + $0x94] sm:$0xf] %vm354_vm3, %v350_v26  ;;  %v349_v31 = vld [vmem:[%s5400_s19 + $0x90] sm:$0xf]  ;;  %v1033_v32 = vld [vmem:[%s5400_s19 + $0x34] sm:$0xf]  ;;  %v1134_v24 = vsel %vm5687_vm6, %v1132_v22, %v1133_v23  ;;  %v1131_v37 = vsel %vm5687_vm6, %v1129_v29, %v1130_v13 }
  0x6e   : > { %391 = vst.msk [vmem:[#allocation2 + $0x90] sm:$0xf] %vm354_vm3, %v349_v31  ;;  %v1138_v33 = vrot.slane %v1136_v25, 4  ;;  %v1142_v35 = vrot.slane %v1032_v30, 5  ;;  %v352_v36 = vld [vmem:[%s5400_s19 + $0x9c] sm:$0xf] }
  0x6f   : > { %v1135_v38 = vrot.slane %v1133_v23, 4  ;;  %v1034_v39 = vld [vmem:[%s5400_s19 + $0x38] sm:$0xf]  ;;  %394 = vst.msk [vmem:[#allocation2 + $0x9c] sm:$0xf] %vm354_vm3, %v352_v36  ;;  %v1145_v44 = vrot.slane %v1033_v32, 5 }
  0x70   : > { %1235 = vrot.lane.b32.xlu1 %v1116_v27, %s5347_s21  ;;  %v351_v40 = vld [vmem:[%s5400_s19 + $0x98] sm:$0xf]  ;;  %v353_v41 = vld [vmem:[%s5400_s19 + $0xa0] sm:$0xf]  ;;  %v1140_v42 = vsel %vm5687_vm6, %v1138_v33, %v1139_v34  ;;  %v1144_v43 = vrot.slane %v1142_v35, 4  ;;  %v1148_v46 = vrot.slane %v1034_v39, 5 }
  0x71   : > { %1233 = vrot.lane.b32.xlu0 %v1113_v4, %s5347_s21  ;;  %393 = vst.msk [vmem:[#allocation2 + $0x98] sm:$0xf] %vm354_vm3, %v351_v40  ;;  %395 = vst.msk [vmem:[#allocation2 + $0xa0] sm:$0xf] %vm354_vm3, %v353_v41  ;;  %v1137_v48 = vsel %vm5687_vm6, %v1135_v38, %v1136_v25  ;;  %v1141_v49 = vrot.slane %v1139_v34, 4  ;;  %v1147_v56 = vrot.slane %v1145_v44, 4 }
  0x72   : > { %v1035_v45 = vld [vmem:[%s5400_s19 + $0x3c] sm:$0xf]  ;;  %v1036_v50 = vld [vmem:[%s5400_s19 + $0x40] sm:$0xf]  ;;  %v1146_v51 = vsel %vm5687_vm6, %v1144_v43, %v1145_v44  ;;  %v1150_v52 = vrot.slane %v1148_v46, 4  ;;  %vm3858_vm3 = vcmask 1040384  }
  0x73   : > { %v1151_v53 = vrot.slane %v1035_v45, 5  ;;  %v1154_v54 = vrot.slane %v1036_v50, 5  ;;  %v1143_v55 = vsel %vm5687_vm6, %v1141_v49, %v1142_v35  ;;  %v1037_v57 = vld [vmem:[%s5400_s19 + $0x44] sm:$0xf]  ;;  %v1038_v58 = vld [vmem:[%s5400_s19 + $0x48] sm:$0xf]  ;;  %v1149_v63 = vsel %vm5687_vm6, %v1147_v56, %v1148_v46  ;;  %vm6294_vm5 = vmor %vm3858_vm3, %vm3859_vm4 }
  0x74   : > { %1239 = vrot.lane.b32.xlu1 %v1122_v10, %s5347_s21  ;;  %v1157_v61 = vrot.slane %v1037_v57, 5  ;;  %v1160_v62 = vrot.slane %v1038_v58, 5  ;;  %v1039_v0 = vld [vmem:[%s5400_s19 + $0x4c] sm:$0xf]  ;;  %v1040_v1 = vld [vmem:[%s5400_s19 + $0x50] sm:$0xf] }
  0x75   : > { %1237 = vrot.lane.b32.xlu0 %v1119_v15, %s5347_s21  ;;  %v1152_v59 = vsel %vm5687_vm6, %v1150_v52, %v1151_v53  ;;  %v1156_v60 = vrot.slane %v1154_v54, 4  ;;  %v1153_v27 = vrot.slane %v1151_v53, 4  ;;  %v1163_v4 = vrot.slane %v1039_v0, 5  ;;  %v1041_v8 = vld [vmem:[%s5400_s19 + $0x54] sm:$0xf] }
  0x76   : > { %v1162_v3 = vrot.slane %v1160_v62, 4  ;;  %v1166_v5 = vrot.slane %v1040_v1, 5  ;;  %v1159_v7 = vrot.slane %v1157_v61, 4  ;;  %v1042_v9 = vld [vmem:[%s5400_s19 + $0x58] sm:$0xf]  ;;  %v1169_v12 = vrot.slane %v1041_v8, 5 }
  0x77   : > { %v1158_v2 = vsel %vm5687_vm6, %v1156_v60, %v1157_v61  ;;  %v1155_v6 = vsel %vm5687_vm6, %v1153_v27, %v1154_v54  ;;  %v1172_v13 = vrot.slane %v1042_v9, 5  ;;  %v1165_v17 = vrot.slane %v1163_v4, 4  ;;  %v1043_v14 = vld [vmem:[%s5400_s19 + $0x5c] sm:$0xf]  ;;  %v1044_v18 = vld [vmem:[%s5400_s19 + $0x60] sm:$0xf] }
  0x78   : > { %1243 = vrot.lane.b32.xlu1 %v1128_v21, %s5347_s21  ;;  %v1164_v10 = vsel %vm5687_vm6, %v1162_v3, %v1163_v4  ;;  %v1168_v11 = vrot.slane %v1166_v5, 4  ;;  %v1161_v16 = vsel %vm5687_vm6, %v1159_v7, %v1160_v62  ;;  %v1175_v22 = vrot.slane %v1043_v14, 5  ;;  %v1045_v29 = vld [vmem:[%s5400_s19 + $0x64] sm:$0xf]  ;;  %v1046_v30 = vld [vmem:[%s5400_s19 + $0x68] sm:$0xf] }
  0x79   : > { %1241 = vrot.lane.b32.xlu0 %v1125_v28, %s5347_s21  ;;  %v1174_v21 = vrot.slane %v1172_v13, 4  ;;  %v1178_v23 = vrot.slane %v1044_v18, 5  ;;  %v1167_v26 = vsel %vm5687_vm6, %v1165_v17, %v1166_v5  ;;  %v1171_v28 = vrot.slane %v1169_v12, 4  ;;  %v1047_v38 = vld [vmem:[%s5400_s19 + $0x6c] sm:$0xf] }
  0x7a   : > { %v1170_v20 = vsel %vm5687_vm6, %v1168_v11, %v1169_v12  ;;  %v1181_v33 = vrot.slane %v1045_v29, 5  ;;  %v1184_v34 = vrot.slane %v1046_v30, 5  ;;  %v1048_v39 = vld [vmem:[%s5400_s19 + $0x70] sm:$0xf]  ;;  %v1187_v43 = vrot.slane %v1047_v38, 5 }
  0x7b   : > { %v1176_v32 = vsel %vm5687_vm6, %v1174_v21, %v1175_v22  ;;  %v1173_v36 = vsel %vm5687_vm6, %v1171_v28, %v1172_v13  ;;  %v1190_v44 = vrot.slane %v1048_v39, 5  ;;  %v1049_v45 = vld [vmem:[%s5400_s19 + $0x74] sm:$0xf]  ;;  %v1050_v50 = vld [vmem:[%s5400_s19 + $0x78] sm:$0xf] }
  0x7c   : > { %1247 = vrot.lane.b32.xlu1 %v1134_v24, %s5347_s21  ;;  %v1180_v24 = vrot.slane %v1178_v23, 4  ;;  %v1183_v49 = vrot.slane %v1181_v33, 4  ;;  %v1193_v54 = vrot.slane %v1049_v45, 5  ;;  %v1189_v58 = vrot.slane %v1187_v43, 4  ;;  %v1052_v60 = vld [vmem:[%s5400_s19 + $0x80] sm:$0xf] }
  0x7d   : > { %1245 = vrot.lane.b32.xlu0 %v1131_v37, %s5347_s21  ;;  %v1177_v37 = vrot.slane %v1175_v22, 4  ;;  %v1192_v53 = vrot.slane %v1190_v44, 4  ;;  %v1202_v0 = vrot.slane %v1052_v60, 5  ;;  %v1053_v4 = vld [vmem:[%s5400_s19 + $0x84] sm:$0xf] }
  0x7e   : > { %v1182_v41 = vsel %vm5687_vm6, %v1180_v24, %v1181_v33  ;;  %v1185_v57 = vsel %vm5687_vm6, %v1183_v49, %v1184_v34  ;;  %v1195_v3 = vrot.slane %v1193_v54, 4  ;;  %v1054_v5 = vld [vmem:[%s5400_s19 + $0x88] sm:$0xf]  ;;  %v1205_v9 = vrot.slane %v1053_v4, 5 }
  0x7f   : > { %v1194_v62 = vsel %vm5687_vm6, %v1192_v53, %v1193_v54  ;;  %v1204_v8 = vrot.slane %v1202_v0, 4 }
  0x80   : > { %1251 = vrot.lane.b32.xlu1 %v1140_v42, %s5347_s21  ;;  %v1186_v42 = vrot.slane %v1184_v34, 4 }
  0x81   : > { %1249 = vrot.lane.b32.xlu0 %v1137_v48, %s5347_s21  ;;  %v1179_v48 = vsel %vm5687_vm6, %v1177_v37, %v1178_v23  ;;  %v1206_v14 = vsel %vm5687_vm6, %v1204_v8, %v1205_v9  ;;  %v1207_v23 = vrot.slane %v1205_v9, 4 }
  0x82   : > { %v1188_v52 = vsel %vm5687_vm6, %v1186_v42, %v1187_v43 }
  0x84   : > { %1255 = vrot.lane.b32.xlu1 %v1146_v51, %s5347_s21 }
  0x85   : > { %1253 = vrot.lane.b32.xlu0 %v1143_v55, %s5347_s21  ;;  %v1196_v55 = vrot.slane %v1050_v50, 5 }
  0x87   : > { %v1197_v12 = vsel %vm5687_vm6, %v1195_v3, %v1196_v55  ;;  %v1401_v3 = vld [vmem:[%s5400_s19 + $0x1c] sm:$0xf] }
  0x88   : > { %1259 = vrot.lane.b32.xlu1 %v1152_v59, %s5347_s21  ;;  %v1051_v59 = vld [vmem:[%s5400_s19 + $0x7c] sm:$0xf]  ;;  %v1494_v8 = vrot.slane %v1401_v3, 5 }
  0x89   : > { %1257 = vrot.lane.b32.xlu0 %v1149_v63, %s5347_s21  ;;  %v1198_v63 = vrot.slane %v1196_v55, 4  ;;  %v1199_v27 = vrot.slane %v1051_v59, 5  ;;  %v1396_v59 = vld [vmem:[%s5400_s19 + $0x8] sm:$0xe] }
  0x8b   : > { %v1200_v7 = vsel %vm5687_vm6, %v1198_v63, %v1199_v27  ;;  %v1201_v13 = vrot.slane %v1199_v27, 4 }
  0x8c   : > { %1263 = vrot.lane.b32.xlu1 %v1158_v2, %s5347_s21  ;;  %v1191_v2 = vsel %vm5687_vm6, %v1189_v58, %v1190_v44 }
  0x8d   : > { %1261 = vrot.lane.b32.xlu0 %v1155_v6, %s5347_s21  ;;  %v1203_v22 = vsel %vm5687_vm6, %v1201_v13, %v1202_v0  ;;  %v1403_v13 = vld [vmem:[%s5400_s19 + $0x24] sm:$0xf] }
  0x8e   : > { %v860_v15 = vpop.permute.xlu1 %859 }
  0x8f   : > { %981 = vst.msk [vmem:[#allocation2 + $0x8] sm:$0xf] %vm978_vm7, %v860_v15  ;;  %v856_v19 = vpop.permute.xlu0 %855  ;;  %v1055_v15 = vld [vmem:[%s5400_s19 + $0x8c] sm:$0xf] }
  0x90   : > { %979 = vst.msk [vmem:[#allocation2] sm:$0xf] %vm978_vm7, %v856_v19  ;;  %1267 = vrot.lane.b32.xlu1 %v1164_v10, %s5347_s21  ;;  %v1208_v10 = vrot.slane %v1054_v5, 5  ;;  %v1211_v19 = vrot.slane %v1055_v15, 5 }
  0x91   : > { %1265 = vrot.lane.b32.xlu0 %v1161_v16, %s5347_s21  ;;  %v1056_v16 = vld [vmem:[%s5400_s19 + $0x90] sm:$0xf] }
  0x92   : > { %v862_v25 = vpop.permute.xlu1 %861  ;;  %v1210_v18 = vrot.slane %v1208_v10, 4  ;;  %v1209_v33 = vsel %vm5687_vm6, %v1207_v23, %v1208_v10  ;;  %v1213_v34 = vrot.slane %v1211_v19, 4  ;;  %v1405_v23 = vld [vmem:[%s5400_s19 + $0x2c] sm:$0xf] }
  0x93   : > { %982 = vst.msk [vmem:[#allocation2 + $0xc] sm:$0xf] %vm978_vm7, %v862_v25  ;;  %v858_v31 = vpop.permute.xlu0 %857  ;;  %v1057_v25 = vld [vmem:[%s5400_s19 + $0x94] sm:$0xf] }
  0x94   : > { %980 = vst.msk [vmem:[#allocation2 + $0x4] sm:$0xf] %vm978_vm7, %v858_v31  ;;  %1271 = vrot.lane.b32.xlu1 %v1170_v20, %s5347_s21  ;;  %v1214_v20 = vrot.slane %v1056_v16, 5  ;;  %v1212_v29 = vsel %vm5687_vm6, %v1210_v18, %v1211_v19  ;;  %v1217_v31 = vrot.slane %v1057_v25, 5  ;;  %v1500_v18 = vrot.slane %v1403_v13, 5 }
  0x95   : > { %1269 = vrot.lane.b32.xlu0 %v1167_v26, %s5347_s21  ;;  %v1058_v26 = vld [vmem:[%s5400_s19 + $0x98] sm:$0xf] }
  0x96   : > { %v866_v35 = vpop.permute.xlu1 %865  ;;  %v1216_v30 = vrot.slane %v1214_v20, 4  ;;  %v1215_v43 = vsel %vm5687_vm6, %v1213_v34, %v1214_v20  ;;  %v1219_v44 = vrot.slane %v1217_v31, 4  ;;  %v1407_v34 = vld [vmem:[%s5400_s19 + $0x34] sm:$0xf] }
  0x97   : > { %984 = vst.msk [vmem:[#allocation2 + $0x14] sm:$0xf] %vm978_vm7, %v866_v35  ;;  %v864_v40 = vpop.permute.xlu0 %863  ;;  %v1059_v35 = vld [vmem:[%s5400_s19 + $0x9c] sm:$0xf] }
  0x98   : > { %983 = vst.msk [vmem:[#allocation2 + $0x10] sm:$0xf] %vm978_vm7, %v864_v40  ;;  %1275 = vrot.lane.b32.xlu1 %v1176_v32, %s5347_s21  ;;  %v1220_v32 = vrot.slane %v1058_v26, 5  ;;  %v1218_v38 = vsel %vm5687_vm6, %v1216_v30, %v1217_v31  ;;  %v1223_v40 = vrot.slane %v1059_v35, 5  ;;  %v1506_v30 = vrot.slane %v1405_v23, 5 }
  0x99   : > { %1273 = vrot.lane.b32.xlu0 %v1173_v36, %s5347_s21  ;;  %v1060_v36 = vld [vmem:[%s5400_s19 + $0xa0] sm:$0xf] }
  0x9a   : > { %v870_v46 = vpop.permute.xlu1 %869  ;;  %v1222_v39 = vrot.slane %v1220_v32, 4  ;;  %v1221_v54 = vsel %vm5687_vm6, %v1219_v44, %v1220_v32  ;;  %v1225_v55 = vrot.slane %v1223_v40, 4  ;;  %v1409_v44 = vld [vmem:[%s5400_s19 + $0x3c] sm:$0xf] }
  0x9b   : > { %986 = vst.msk [vmem:[#allocation2 + $0x1c] sm:$0xf] %vm978_vm7, %v870_v46  ;;  %v868_v51 = vpop.permute.xlu0 %867  ;;  %v1061_v46 = vld [vmem:[%s5400_s19 + $0xa4] sm:$0x1] }
  0x9c   : > { %985 = vst.msk [vmem:[#allocation2 + $0x18] sm:$0xf] %vm978_vm7, %v868_v51  ;;  %1279 = vrot.lane.b32.xlu1 %v1182_v41, %s5347_s21  ;;  %v1226_v41 = vrot.slane %v1060_v36, 5  ;;  %v1224_v45 = vsel %vm5687_vm6, %v1222_v39, %v1223_v40  ;;  %v1229_v51 = vrot.slane %v1061_v46, 5  ;;  %v1512_v39 = vrot.slane %v1407_v34, 5 }
  0x9d   : > { %1277 = vrot.lane.b32.xlu0 %v1179_v48, %s5347_s21  ;;  %v1397_v48 = vld [vmem:[%s5400_s19 + $0xc] sm:$0xf] }
  0x9e   : > { %v874_v56 = vpop.permute.xlu1 %873  ;;  %v1228_v50 = vrot.slane %v1226_v41, 4  ;;  %v1227_v0 = vsel %vm5687_vm6, %v1225_v55, %v1226_v41  ;;  %v1411_v55 = vld [vmem:[%s5400_s19 + $0x44] sm:$0xf] }
  0x9f   : > { %988 = vst.msk [vmem:[#allocation2 + $0x24] sm:$0xf] %vm978_vm7, %v874_v56  ;;  %v872_v61 = vpop.permute.xlu0 %871  ;;  %v1398_v56 = vld [vmem:[%s5400_s19 + $0x10] sm:$0xf] }
  0xa0   : > { %987 = vst.msk [vmem:[#allocation2 + $0x20] sm:$0xf] %vm978_vm7, %v872_v61  ;;  %1283 = vrot.lane.b32.xlu1 %v1188_v52, %s5347_s21  ;;  %v1482_v52 = vrot.slane %v1397_v48, 5  ;;  %v1230_v60 = vsel %vm5687_vm6, %v1228_v50, %v1229_v51  ;;  %v1518_v50 = vrot.slane %v1409_v44, 5 }
  0xa1   : > { %1281 = vrot.lane.b32.xlu0 %v1185_v57, %s5347_s21  ;;  %v1399_v57 = vld [vmem:[%s5400_s19 + $0x14] sm:$0xf] }
  0xa2   : > { %v878_v1 = vpop.permute.xlu1 %877  ;;  %v1484_v61 = vrot.slane %v1482_v52, 4  ;;  %v1488_v63 = vrot.slane %v1399_v57, 5 }
  0xa3   : > { %990 = vst.msk [vmem:[#allocation2 + $0x2c] sm:$0xf] %vm978_vm7, %v878_v1  ;;  %v876_v6 = vpop.permute.xlu0 %875  ;;  %v5008_v1 = vrot.slane %v1396_v59, 9 }
  0xa4   : > { %989 = vst.msk [vmem:[#allocation2 + $0x28] sm:$0xf] %vm978_vm7, %v876_v6  ;;  %1287 = vrot.lane.b32.xlu1 %v1194_v62, %s5347_s21  ;;  %v1485_v62 = vrot.slane %v1398_v56, 5  ;;  %v1490_v6 = vrot.slane %v1488_v63, 4 }
  0xa5   : > { %1285 = vrot.lane.b32.xlu0 %v1191_v2, %s5347_s21  ;;  %v1400_v2 = vld [vmem:[%s5400_s19 + $0x18] sm:$0xf]  ;;  %v1483_v10 = vsel %vm5687_vm6, %v5008_v1, %v1482_v52 }
  0xa6   : > { %v882_v11 = vpop.permute.xlu1 %881  ;;  %v1486_v5 = vsel %vm5687_vm6, %v1484_v61, %v1485_v62 }
  0xa7   : > { %992 = vst.msk [vmem:[#allocation2 + $0x34] sm:$0xf] %vm978_vm7, %v882_v11  ;;  %v880_v17 = vpop.permute.xlu0 %879  ;;  %v1487_v11 = vrot.slane %v1485_v62, 4 }
  0xa8   : > { %991 = vst.msk [vmem:[#allocation2 + $0x30] sm:$0xf] %vm978_vm7, %v880_v17  ;;  %1291 = vrot.lane.b32.xlu1 %v1200_v7, %s5347_s21  ;;  %v1491_v7 = vrot.slane %v1400_v2, 5  ;;  %v1496_v17 = vrot.slane %v1494_v8, 4 }
  0xa9   : > { %1289 = vrot.lane.b32.xlu0 %v1197_v12, %s5347_s21  ;;  %v1402_v12 = vld [vmem:[%s5400_s19 + $0x20] sm:$0xf]  ;;  %v1489_v20 = vsel %vm5687_vm6, %v1487_v11, %v1488_v63 }
  0xaa   : > { %v886_v21 = vpop.permute.xlu1 %885  ;;  %v1492_v16 = vsel %vm5687_vm6, %v1490_v6, %v1491_v7 }
  0xab   : > { %994 = vst.msk [vmem:[#allocation2 + $0x3c] sm:$0xf] %vm978_vm7, %v886_v21  ;;  %v884_v28 = vpop.permute.xlu0 %883  ;;  %v1493_v21 = vrot.slane %v1491_v7, 4 }
  0xac   : > { %993 = vst.msk [vmem:[#allocation2 + $0x38] sm:$0xf] %vm978_vm7, %v884_v28  ;;  %1295 = vrot.lane.b32.xlu1 %v1206_v14, %s5347_s21  ;;  %v1497_v14 = vrot.slane %v1402_v12, 5  ;;  %v1502_v28 = vrot.slane %v1500_v18, 4 }
  0xad   : > { %1293 = vrot.lane.b32.xlu0 %v1203_v22, %s5347_s21  ;;  %v1404_v22 = vld [vmem:[%s5400_s19 + $0x28] sm:$0xf]  ;;  %v1495_v32 = vsel %vm5687_vm6, %v1493_v21, %v1494_v8 }
  0xae   : > { %v890_v24 = vpop.permute.xlu1 %889  ;;  %v1498_v26 = vsel %vm5687_vm6, %v1496_v17, %v1497_v14 }
  0xaf   : > { %996 = vst.msk [vmem:[#allocation2 + $0x44] sm:$0xf] %vm978_vm7, %v890_v24  ;;  %v888_v37 = vpop.permute.xlu0 %887  ;;  %v1499_v24 = vrot.slane %v1497_v14, 4 }
  0xb0   : > { %995 = vst.msk [vmem:[#allocation2 + $0x40] sm:$0xf] %vm978_vm7, %v888_v37  ;;  %1299 = vrot.lane.b32.xlu1 %v1212_v29, %s5347_s21  ;;  %v1503_v29 = vrot.slane %v1404_v22, 5  ;;  %v1508_v37 = vrot.slane %v1506_v30, 4 }
  0xb1   : > { %1297 = vrot.lane.b32.xlu0 %v1209_v33, %s5347_s21  ;;  %v1406_v33 = vld [vmem:[%s5400_s19 + $0x30] sm:$0xf]  ;;  %v1501_v41 = vsel %vm5687_vm6, %v1499_v24, %v1500_v18 }
  0xb2   : > { %v894_v42 = vpop.permute.xlu1 %893  ;;  %v1504_v36 = vsel %vm5687_vm6, %v1502_v28, %v1503_v29 }
  0xb3   : > { %998 = vst.msk [vmem:[#allocation2 + $0x4c] sm:$0xf] %vm978_vm7, %v894_v42  ;;  %v892_v49 = vpop.permute.xlu0 %891  ;;  %v1505_v42 = vrot.slane %v1503_v29, 4 }
  0xb4   : > { %997 = vst.msk [vmem:[#allocation2 + $0x48] sm:$0xf] %vm978_vm7, %v892_v49  ;;  %1303 = vrot.lane.b32.xlu1 %v1218_v38, %s5347_s21  ;;  %v1509_v38 = vrot.slane %v1406_v33, 5  ;;  %v1514_v49 = vrot.slane %v1512_v39, 4 }
  0xb5   : > { %1301 = vrot.lane.b32.xlu0 %v1215_v43, %s5347_s21  ;;  %v1408_v43 = vld [vmem:[%s5400_s19 + $0x38] sm:$0xf]  ;;  %v1507_v52 = vsel %vm5687_vm6, %v1505_v42, %v1506_v30 }
  0xb6   : > { %v898_v53 = vpop.permute.xlu1 %897  ;;  %v1510_v48 = vsel %vm5687_vm6, %v1508_v37, %v1509_v38 }
  0xb7   : > { %1000 = vst.msk [vmem:[#allocation2 + $0x54] sm:$0xf] %vm978_vm7, %v898_v53  ;;  %v896_v58 = vpop.permute.xlu0 %895  ;;  %v1511_v53 = vrot.slane %v1509_v38, 4 }
  0xb8   : > { %999 = vst.msk [vmem:[#allocation2 + $0x50] sm:$0xf] %vm978_vm7, %v896_v58  ;;  %1307 = vrot.lane.b32.xlu1 %v1224_v45, %s5347_s21  ;;  %v1515_v45 = vrot.slane %v1408_v43, 5  ;;  %v1520_v58 = vrot.slane %v1518_v50, 4 }
  0xb9   : > { %1305 = vrot.lane.b32.xlu0 %v1221_v54, %s5347_s21  ;;  %v1410_v54 = vld [vmem:[%s5400_s19 + $0x40] sm:$0xf]  ;;  %v1513_v62 = vsel %vm5687_vm6, %v1511_v53, %v1512_v39 }
  0xba   : > { %v902_v27 = vpop.permute.xlu1 %901  ;;  %v1516_v57 = vsel %vm5687_vm6, %v1514_v49, %v1515_v45  ;;  %v1521_v59 = vrot.slane %v1410_v54, 5  ;;  %v1517_v63 = vrot.slane %v1515_v45, 4 }
  0xbb   : > { %1002 = vst.msk [vmem:[#allocation2 + $0x5c] sm:$0xf] %vm978_vm7, %v902_v27  ;;  %v900_v4 = vpop.permute.xlu0 %899  ;;  %v1412_v27 = vld [vmem:[%s5400_s19 + $0x48] sm:$0xf] }
  0xbc   : > { %1001 = vst.msk [vmem:[#allocation2 + $0x58] sm:$0xf] %vm978_vm7, %v900_v4  ;;  %1311 = vrot.lane.b32.xlu1 %v1230_v60, %s5347_s21  ;;  %v1524_v60 = vrot.slane %v1411_v55, 5  ;;  %v1522_v2 = vsel %vm5687_vm6, %v1520_v58, %v1521_v59  ;;  %v1527_v4 = vrot.slane %v1412_v27, 5  ;;  %v1519_v7 = vsel %vm5687_vm6, %v1517_v63, %v1518_v50 }
  0xbd   : > { %1309 = vrot.lane.b32.xlu0 %v1227_v0, %s5347_s21  ;;  %v1413_v0 = vld [vmem:[%s5400_s19 + $0x4c] sm:$0xf]  ;;  %v1523_v8 = vrot.slane %v1521_v59, 4 }
  0xbe   : > { %v906_v9 = vpop.permute.xlu1 %905  ;;  %v1526_v3 = vrot.slane %v1524_v60, 4  ;;  %v1529_v18 = vrot.slane %v1527_v4, 4 }
  0xbf   : > { %1004 = vst.msk [vmem:[#allocation2 + $0x64] sm:$0xf] %vm978_vm7, %v906_v9  ;;  %v904_v15 = vpop.permute.xlu0 %903  ;;  %v1414_v9 = vld [vmem:[%s5400_s19 + $0x50] sm:$0xf]  ;;  %v1525_v14 = vsel %vm5687_vm6, %v1523_v8, %v1524_v60 }
  0xc0   : > { %1003 = vst.msk [vmem:[#allocation2 + $0x60] sm:$0xf] %vm978_vm7, %v904_v15  ;;  %1606 = vrot.lane.b32.xlu1 %v1486_v5, %s5348_s22  ;;  %v1530_v5 = vrot.slane %v1413_v0, 5  ;;  %v1528_v12 = vsel %vm5687_vm6, %v1526_v3, %v1527_v4  ;;  %v1533_v15 = vrot.slane %v1414_v9, 5 }
  0xc1   : > { %1604 = vrot.lane.b32.xlu0 %v1483_v10, %s5348_s22  ;;  %v1415_v10 = vld [vmem:[%s5400_s19 + $0x54] sm:$0xf] }
  0xc2   : > { %v910_v19 = vpop.permute.xlu1 %909  ;;  %v1532_v13 = vrot.slane %v1530_v5, 4  ;;  %v1531_v29 = vsel %vm5687_vm6, %v1529_v18, %v1530_v5  ;;  %v1535_v30 = vrot.slane %v1533_v15, 4 }
  0xc3   : > { %1006 = vst.msk [vmem:[#allocation2 + $0x6c] sm:$0xf] %vm978_vm7, %v910_v19  ;;  %v908_v25 = vpop.permute.xlu0 %907  ;;  %v1416_v19 = vld [vmem:[%s5400_s19 + $0x58] sm:$0xf] }
  0xc4   : > { %1005 = vst.msk [vmem:[#allocation2 + $0x68] sm:$0xf] %vm978_vm7, %v908_v25  ;;  %1610 = vrot.lane.b32.xlu1 %v1492_v16, %s5348_s22  ;;  %v1536_v16 = vrot.slane %v1415_v10, 5  ;;  %v1534_v22 = vsel %vm5687_vm6, %v1532_v13, %v1533_v15  ;;  %v1539_v25 = vrot.slane %v1416_v19, 5 }
  0xc5   : > { %1608 = vrot.lane.b32.xlu0 %v1489_v20, %s5348_s22  ;;  %v1417_v20 = vld [vmem:[%s5400_s19 + $0x5c] sm:$0xf] }
  0xc6   : > { %v914_v31 = vpop.permute.xlu1 %913  ;;  %v1538_v23 = vrot.slane %v1536_v16, 4  ;;  %v1537_v38 = vsel %vm5687_vm6, %v1535_v30, %v1536_v16  ;;  %v1541_v39 = vrot.slane %v1539_v25, 4 }
  0xc7   : > { %1008 = vst.msk [vmem:[#allocation2 + $0x74] sm:$0xf] %vm978_vm7, %v914_v31  ;;  %v912_v35 = vpop.permute.xlu0 %911  ;;  %v1418_v31 = vld [vmem:[%s5400_s19 + $0x60] sm:$0xf] }
  0xc8   : > { %1007 = vst.msk [vmem:[#allocation2 + $0x70] sm:$0xf] %vm978_vm7, %v912_v35  ;;  %1614 = vrot.lane.b32.xlu1 %v1498_v26, %s5348_s22  ;;  %v1542_v26 = vrot.slane %v1417_v20, 5  ;;  %v1540_v33 = vsel %vm5687_vm6, %v1538_v23, %v1539_v25  ;;  %v1545_v35 = vrot.slane %v1418_v31, 5  ;;  %v1431_v23 = vld [vmem:[%s5400_s19 + $0x94] sm:$0xf] }
  0xc9   : > { %1612 = vrot.lane.b32.xlu0 %v1495_v32, %s5348_s22  ;;  %v1419_v32 = vld [vmem:[%s5400_s19 + $0x64] sm:$0xf]  ;;  %v1584_v31 = vrot.slane %v1431_v23, 5 }
  0xca   : > { %v918_v40 = vpop.permute.xlu1 %917  ;;  %v1544_v34 = vrot.slane %v1542_v26, 4  ;;  %v1543_v45 = vsel %vm5687_vm6, %v1541_v39, %v1542_v26  ;;  %v1547_v50 = vrot.slane %v1545_v35, 4  ;;  %v1769_v39 = vld [vmem:[%s5400_s19 + $0x8] sm:$0xe] }
  0xcb   : > { %1010 = vst.msk [vmem:[#allocation2 + $0x7c] sm:$0xf] %vm978_vm7, %v918_v40  ;;  %v916_v46 = vpop.permute.xlu0 %915  ;;  %v1420_v40 = vld [vmem:[%s5400_s19 + $0x68] sm:$0xf] }
  0xcc   : > { %1009 = vst.msk [vmem:[#allocation2 + $0x78] sm:$0xf] %vm978_vm7, %v916_v46  ;;  %1618 = vrot.lane.b32.xlu1 %v1504_v36, %s5348_s22  ;;  %v1548_v36 = vrot.slane %v1419_v32, 5  ;;  %v1546_v43 = vsel %vm5687_vm6, %v1544_v34, %v1545_v35  ;;  %v1551_v46 = vrot.slane %v1420_v40, 5  ;;  %v1432_v34 = vld [vmem:[%s5400_s19 + $0x98] sm:$0xf] }
  0xcd   : > { %1616 = vrot.lane.b32.xlu0 %v1501_v41, %s5348_s22  ;;  %v1421_v41 = vld [vmem:[%s5400_s19 + $0x6c] sm:$0xf]  ;;  %v1433_v35 = vld [vmem:[%s5400_s19 + $0x9c] sm:$0xf] }
  0xce   : > { %v922_v51 = vpop.permute.xlu1 %921  ;;  %v1550_v44 = vrot.slane %v1548_v36, 4  ;;  %v1549_v59 = vsel %vm5687_vm6, %v1547_v50, %v1548_v36  ;;  %v1553_v60 = vrot.slane %v1551_v46, 4  ;;  %v1818_v50 = vshll.u32 %v1769_v39, 16 }
  0xcf   : > { %1012 = vst.msk [vmem:[#allocation2 + $0x84] sm:$0xf] %vm978_vm7, %v922_v51  ;;  %v920_v56 = vpop.permute.xlu0 %919  ;;  %v1422_v51 = vld [vmem:[%s5400_s19 + $0x70] sm:$0xf] }
  0xd0   : > { %1011 = vst.msk [vmem:[#allocation2 + $0x80] sm:$0xf] %vm978_vm7, %v920_v56  ;;  %1622 = vrot.lane.b32.xlu1 %v1510_v48, %s5348_s22  ;;  %v1554_v48 = vrot.slane %v1421_v41, 5  ;;  %v1552_v54 = vsel %vm5687_vm6, %v1550_v44, %v1551_v46  ;;  %v1557_v56 = vrot.slane %v1422_v51, 5  ;;  %v1434_v41 = vld [vmem:[%s5400_s19 + $0xa0] sm:$0xf] }
  0xd1   : > { %1620 = vrot.lane.b32.xlu0 %v1507_v52, %s5348_s22  ;;  %v1423_v52 = vld [vmem:[%s5400_s19 + $0x74] sm:$0xf]  ;;  %v1590_v44 = vrot.slane %v1433_v35, 5  ;;  %v6080_v46 = vld [vmem:[%s5400_s19 + $0xa4] sm:$0xf] }
  0xd2   : > { %v926_v61 = vpop.permute.xlu1 %925  ;;  %v1556_v55 = vrot.slane %v1554_v48, 4  ;;  %v1555_v4 = vsel %vm5687_vm6, %v1553_v60, %v1554_v48  ;;  %v1559_v5 = vrot.slane %v1557_v56, 4 }
  0xd3   : > { %1014 = vst.msk [vmem:[#allocation2 + $0x8c] sm:$0xf] %vm978_vm7, %v926_v61  ;;  %v924_v1 = vpop.permute.xlu0 %923  ;;  %v1424_v61 = vld [vmem:[%s5400_s19 + $0x78] sm:$0xf] }
  0xd4   : > { %1013 = vst.msk [vmem:[#allocation2 + $0x88] sm:$0xf] %vm978_vm7, %v924_v1  ;;  %1626 = vrot.lane.b32.xlu1 %v1516_v57, %s5348_s22  ;;  %v1560_v57 = vrot.slane %v1423_v52, 5  ;;  %v1558_v27 = vsel %vm5687_vm6, %v1556_v55, %v1557_v56  ;;  %v1563_v1 = vrot.slane %v1424_v61, 5  ;;  %v1593_v56 = vrot.slane %v1434_v41, 5 }
  0xd5   : > { %1624 = vrot.lane.b32.xlu0 %v1513_v62, %s5348_s22  ;;  %v1425_v62 = vld [vmem:[%s5400_s19 + $0x7c] sm:$0xf]  ;;  %v1592_v61 = vrot.slane %v1590_v44, 4 }
  0xd6   : > { %v930_v6 = vpop.permute.xlu1 %929  ;;  %v1562_v0 = vrot.slane %v1560_v57, 4  ;;  %v1561_v15 = vsel %vm5687_vm6, %v1559_v5, %v1560_v57  ;;  %v1565_v16 = vrot.slane %v1563_v1, 4 }
  0xd7   : > { %1016 = vst.msk [vmem:[#allocation2 + $0x94] sm:$0xf] %vm978_vm7, %v930_v6  ;;  %v928_v11 = vpop.permute.xlu0 %927  ;;  %v1426_v6 = vld [vmem:[%s5400_s19 + $0x80] sm:$0xf] }
  0xd8   : > { %1015 = vst.msk [vmem:[#allocation2 + $0x90] sm:$0xf] %vm978_vm7, %v928_v11  ;;  %1630 = vrot.lane.b32.xlu1 %v1522_v2, %s5348_s22  ;;  %v1566_v2 = vrot.slane %v1425_v62, 5  ;;  %v1564_v9 = vsel %vm5687_vm6, %v1562_v0, %v1563_v1  ;;  %v1569_v11 = vrot.slane %v1426_v6, 5  ;;  %v1436_v62 = vld [vmem:[%s5400_s19 + $0xa8] sm:$0xf] }
  0xd9   : > { %1628 = vrot.lane.b32.xlu0 %v1519_v7, %s5348_s22  ;;  %v1427_v7 = vld [vmem:[%s5400_s19 + $0x84] sm:$0xf]  ;;  %v1820_v1 = vrot.slane %v1818_v50, 6 }
  0xda   : > { %v934_v17 = vpop.permute.xlu1 %933  ;;  %v1568_v10 = vrot.slane %v1566_v2, 4  ;;  %v1567_v26 = vsel %vm5687_vm6, %v1565_v16, %v1566_v2  ;;  %v1772_v2 = vld [vmem:[%s5400_s19 + $0x14] sm:$0xf]  ;;  %v1594_v16 = vsel %vm5687_vm6, %v1592_v61, %v1593_v56  ;;  %v1778_v61 = vld [vmem:[%s5400_s19 + $0x2c] sm:$0xf] }
  0xdb   : > { %1018 = vst.msk [vmem:[#allocation2 + $0x9c] sm:$0xf] %vm978_vm7, %v934_v17  ;;  %v932_v21 = vpop.permute.xlu0 %931  ;;  %v1428_v17 = vld [vmem:[%s5400_s19 + $0x88] sm:$0xf] }
  0xdc   : > { %1017 = vst.msk [vmem:[#allocation2 + $0x98] sm:$0xf] %vm978_vm7, %v932_v21  ;;  %1634 = vrot.lane.b32.xlu1 %v1528_v12, %s5348_s22  ;;  %v1572_v12 = vrot.slane %v1427_v7, 5  ;;  %v1570_v19 = vsel %vm5687_vm6, %v1568_v10, %v1569_v11  ;;  %v1575_v21 = vrot.slane %v1428_v17, 5 }
  0xdd   : > { %1632 = vrot.lane.b32.xlu0 %v1525_v14, %s5348_s22  ;;  %v1429_v14 = vld [vmem:[%s5400_s19 + $0x8c] sm:$0xf] }
  0xde   : > { %v1232_v28 = vpop.permute.xlu1 %1231  ;;  %v1574_v20 = vrot.slane %v1572_v12, 4 }
  0xdf   : > { %1355 = vst.msk [vmem:[#allocation2] sm:$0xf] %vm1354_vm8, %v1232_v28  ;;  %v936_v24 = vpop.permute.xlu0 %935  ;;  %v1571_v28 = vrot.slane %v1569_v11, 4 }
  0xe0   : > { %1019 = vst.msk [vmem:[#allocation2 + $0xa0] sm:$0xf] %vm978_vm7, %v936_v24  ;;  %1638 = vrot.lane.b32.xlu1 %v1534_v22, %s5348_s22  ;;  %v1578_v22 = vrot.slane %v1429_v14, 5  ;;  %v1576_v32 = vsel %vm5687_vm6, %v1574_v20, %v1575_v21  ;;  %v1844_v14 = vshrl.u32 %v1772_v2, 16  ;;  %vm2355_vm7 = vcmask 158848  }
  0xe1   : > { %1636 = vrot.lane.b32.xlu0 %v1531_v29, %s5348_s22  ;;  %v1430_v29 = vld [vmem:[%s5400_s19 + $0x90] sm:$0xf] }
  0xe2   : > { %v1236_v37 = vpop.permute.xlu1 %1235  ;;  %v1580_v24 = vrot.slane %v1578_v22, 4 }
  0xe3   : > { %1357 = vst.msk [vmem:[#allocation2 + $0x8] sm:$0xf] %vm1354_vm8, %v1236_v37  ;;  %v1234_v42 = vpop.permute.xlu0 %1233  ;;  %v1573_v37 = vsel %vm5687_vm6, %v1571_v28, %v1572_v12  ;;  %v1599_v12 = vrot.slane %v1436_v62, 5 }
  0xe4   : > { %1356 = vst.msk [vmem:[#allocation2 + $0x4] sm:$0xf] %vm1354_vm8, %v1234_v42  ;;  %1642 = vrot.lane.b32.xlu1 %v1540_v33, %s5348_s22  ;;  %v1581_v33 = vrot.slane %v1430_v29, 5  ;;  %v1586_v42 = vrot.slane %v1584_v31, 4 }
  0xe5   : > { %1640 = vrot.lane.b32.xlu0 %v1537_v38, %s5348_s22  ;;  %v1577_v38 = vrot.slane %v1575_v21, 4  ;;  %v1601_v41 = vrot.slane %v1599_v12, 4 }
  0xe6   : > { %v1240_v49 = vpop.permute.xlu1 %1239  ;;  %v1582_v48 = vsel %vm5687_vm6, %v1580_v24, %v1581_v33 }
  0xe7   : > { %1359 = vst.msk [vmem:[#allocation2 + $0x10] sm:$0xf] %vm1354_vm8, %v1240_v49  ;;  %v1238_v53 = vpop.permute.xlu0 %1237  ;;  %v1770_v49 = vld [vmem:[%s5400_s19 + $0xc] sm:$0xf]  ;;  %v1579_v52 = vsel %vm5687_vm6, %v1577_v38, %v1578_v22  ;;  %v1776_v38 = vld [vmem:[%s5400_s19 + $0x24] sm:$0xf] }
  0xe8   : > { %1358 = vst.msk [vmem:[#allocation2 + $0xc] sm:$0xf] %vm1354_vm8, %v1238_v53  ;;  %1646 = vrot.lane.b32.xlu1 %v1546_v43, %s5348_s22  ;;  %v1587_v43 = vrot.slane %v1432_v34, 5  ;;  %v1583_v53 = vrot.slane %v1581_v33, 4 }
  0xe9   : > { %1644 = vrot.lane.b32.xlu0 %v1543_v45, %s5348_s22  ;;  %v1815_v45 = vshrl.u32 %v1769_v39, 16 }
  0xea   : > { %v1244_v58 = vpop.permute.xlu1 %1243  ;;  %v1589_v57 = vrot.slane %v1587_v43, 4  ;;  %v1588_v60 = vsel %vm5687_vm6, %v1586_v42, %v1587_v43  ;;  %v1585_v6 = vsel %vm5687_vm6, %v1583_v53, %v1584_v31  ;;  %v1777_v43 = vld [vmem:[%s5400_s19 + $0x28] sm:$0xf] }
  0xeb   : > { %1361 = vst.msk [vmem:[#allocation2 + $0x18] sm:$0xf] %vm1354_vm8, %v1244_v58  ;;  %v1242_v63 = vpop.permute.xlu0 %1241  ;;  %v1596_v58 = vrot.slane %v6080_v46, 5  ;;  %v1817_v0 = vrot.slane %v1815_v45, 5 }
  0xec   : > { %1360 = vst.msk [vmem:[#allocation2 + $0x14] sm:$0xf] %vm1354_vm8, %v1242_v63  ;;  %1650 = vrot.lane.b32.xlu1 %v1552_v54, %s5348_s22  ;;  %v1771_v54 = vld [vmem:[%s5400_s19 + $0x10] sm:$0xf]  ;;  %v1824_v63 = vshrl.u32 %v1770_v49, 16  ;;  %v1591_v10 = vsel %vm5687_vm6, %v1589_v57, %v1590_v44  ;;  %v1894_v57 = vshrl.u32 %v1777_v43, 16 }
  0xed   : > { %1648 = vrot.lane.b32.xlu0 %v1549_v59, %s5348_s22  ;;  %v1773_v59 = vld [vmem:[%s5400_s19 + $0x18] sm:$0xf]  ;;  %v1598_v11 = vrot.slane %v1596_v58, 4  ;;  %v1821_v20 = vor.u32 %v1820_v1, %v1817_v0 }
  0xee   : > { %v1248_v3 = vpop.permute.xlu1 %1247  ;;  %v1854_v7 = vshrl.u32 %v1773_v59, 16  ;;  %v1826_v17 = vrot.slane %v1824_v63, 5  ;;  %v1896_v47 = vrot.slane %v1894_v57, 5 }
  0xef   : > { %1363 = vst.msk [vmem:[#allocation2 + $0x20] sm:$0xf] %vm1354_vm8, %v1248_v3  ;;  %v1246_v8 = vpop.permute.xlu0 %1245  ;;  %v1834_v3 = vshrl.u32 %v1771_v54, 16  ;;  %v1600_v34 = vsel %vm5687_vm6, %v1598_v11, %v1599_v12  ;;  %v1822_v39 = vrot.slane %v1821_v20, 4  ;;  %v1907_v11 = vshll.u32 %v1778_v61, 16 }
  0xf0   : > { %1362 = vst.msk [vmem:[#allocation2 + $0x1c] sm:$0xf] %vm1354_vm8, %v1246_v8  ;;  %1654 = vrot.lane.b32.xlu1 %v1558_v27, %s5348_s22  ;;  %v1827_v27 = vshll.u32 %v1770_v49, 16  ;;  %v1857_v8 = vshll.u32 %v1773_v59, 16  ;;  %v1856_v28 = vrot.slane %v1854_v7, 5 }
  0xf1   : > { %1652 = vrot.lane.b32.xlu0 %v1555_v4, %s5348_s22  ;;  %v1837_v4 = vshll.u32 %v1771_v54, 16  ;;  %v1836_v22 = vrot.slane %v1834_v3, 5  ;;  %v1884_v54 = vshrl.u32 %v1776_v38, 16 }
  0xf2   : > { %v1252_v13 = vpop.permute.xlu1 %1251  ;;  %v1829_v21 = vrot.slane %v1827_v27, 6  ;;  %v1859_v29 = vrot.slane %v1857_v8, 6  ;;  %v1781_v8 = vld [vmem:[%s5400_s19 + $0x38] sm:$0xf] }
  0xf3   : > { %1365 = vst.msk [vmem:[#allocation2 + $0x28] sm:$0xf] %vm1354_vm8, %v1252_v13  ;;  %v1250_v18 = vpop.permute.xlu0 %1249  ;;  %v1595_v13 = vrot.slane %v1593_v56, 4  ;;  %v1839_v23 = vrot.slane %v1837_v4, 6 }
  0xf4   : > { %1364 = vst.msk [vmem:[#allocation2 + $0x24] sm:$0xf] %vm1354_vm8, %v1250_v18  ;;  %1658 = vrot.lane.b32.xlu1 %v1564_v9, %s5348_s22  ;;  %v1847_v18 = vshll.u32 %v1772_v2, 16  ;;  %v1860_v49 = vor.u32 %v1859_v29, %v1856_v28  ;;  %v1779_v2 = vld [vmem:[%s5400_s19 + $0x30] sm:$0xf] }
  0xf5   : > { %1656 = vrot.lane.b32.xlu0 %v1561_v15, %s5348_s22  ;;  %v1774_v15 = vld [vmem:[%s5400_s19 + $0x1c] sm:$0xf]  ;;  %v1597_v35 = vsel %vm5687_vm6, %v1595_v13, %v1596_v58  ;;  %v1840_v42 = vor.u32 %v1839_v23, %v1836_v22  ;;  %v1897_v58 = vshll.u32 %v1777_v43, 16  ;;  %v1914_v13 = vshrl.u32 %v1779_v2, 16 }
  0xf6   : > { %v1256_v25 = vpop.permute.xlu1 %1255  ;;  %v1867_v31 = vshll.u32 %v1774_v15, 16  ;;  %v1862_v4 = vrot.slane %v1860_v49, 4 }
  0xf7   : > { %1367 = vst.msk [vmem:[#allocation2 + $0x30] sm:$0xf] %vm1354_vm8, %v1256_v25  ;;  %v1254_v30 = vpop.permute.xlu0 %1253 }
  0xf8   : > { %1366 = vst.msk [vmem:[#allocation2 + $0x2c] sm:$0xf] %vm1354_vm8, %v1254_v30  ;;  %1662 = vrot.lane.b32.xlu1 %v1570_v19, %s5348_s22  ;;  %v1775_v19 = vld [vmem:[%s5400_s19 + $0x20] sm:$0xf]  ;;  %v1864_v30 = vshrl.u32 %v1774_v15, 16  ;;  %v1869_v50 = vrot.slane %v1867_v31, 6 }
  0xf9   : > { %1660 = vrot.lane.b32.xlu0 %v1567_v26, %s5348_s22  ;;  %v1437_v26 = vld [vmem:[%s5400_s19 + $0xac] sm:$0x1]  ;;  %v1874_v24 = vshrl.u32 %v1775_v19, 16  ;;  %v1877_v33 = vshll.u32 %v1775_v19, 16  ;;  %v1917_v15 = vshll.u32 %v1779_v2, 16  ;;  %v1937_v19 = vshll.u32 %v1781_v8, 16 }
  0xfa   : > { %v1260_v36 = vpop.permute.xlu1 %1259  ;;  %v1866_v45 = vrot.slane %v1864_v30, 5  ;;  %v1909_v31 = vrot.slane %v1907_v11, 6 }
  0xfb   : > { %1369 = vst.msk [vmem:[#allocation2 + $0x38] sm:$0xf] %vm1354_vm8, %v1260_v36  ;;  %v1258_v40 = vpop.permute.xlu0 %1257  ;;  %v1846_v36 = vrot.slane %v1844_v14, 5  ;;  %v1879_v53 = vrot.slane %v1877_v33, 6  ;;  %v1780_v14 = vld [vmem:[%s5400_s19 + $0x34] sm:$0xf] }
  0xfc   : > { %1368 = vst.msk [vmem:[#allocation2 + $0x34] sm:$0xf] %vm1354_vm8, %v1258_v40  ;;  %1666 = vrot.lane.b32.xlu1 %v1576_v32, %s5348_s22  ;;  %v1830_v40 = vor.u32 %v1829_v21, %v1826_v17  ;;  %v1870_v0 = vor.u32 %v1869_v50, %v1866_v45  ;;  %v1919_v33 = vrot.slane %v1917_v15, 6  ;;  %v1784_v45 = vld [vmem:[%s5400_s19 + $0x44] sm:$0xf] }
  0xfd   : > { %1664 = vrot.lane.b32.xlu0 %v1573_v37, %s5348_s22  ;;  %v1849_v37 = vrot.slane %v1847_v18, 6  ;;  %v1934_v18 = vshrl.u32 %v1781_v8, 16 }
  0xfe   : > { %v1264_v51 = vpop.permute.xlu1 %1263  ;;  %v1831_v59 = vsel %vm6124_vm11, %v1822_v39, %v1830_v40  ;;  %v1832_v27 = vrot.slane %v1830_v40, 4  ;;  %v1871_v21 = vsel %vm6124_vm11, %v1862_v4, %v1870_v0 }
  0xff   : > { %1371 = vst.msk [vmem:[#allocation2 + $0x40] sm:$0xf] %vm1354_vm8, %v1264_v51  ;;  %v1262_v55 = vpop.permute.xlu0 %1261  ;;  %v1850_v56 = vor.u32 %v1849_v37, %v1846_v36  ;;  %v1936_v37 = vrot.slane %v1934_v18, 5 }
 0x100   : > { %1370 = vst.msk [vmem:[#allocation2 + $0x3c] sm:$0xf] %vm1354_vm8, %v1262_v55  ;;  %1670 = vrot.lane.b32.xlu1 %v1582_v48, %s5348_s22  ;;  %v1602_v48 = vrot.slane %v1437_v26, 5  ;;  %v1887_v55 = vshll.u32 %v1776_v38, 16  ;;  %v1841_v17 = vsel %vm6124_vm11, %v1832_v27, %v1840_v42  ;;  %v1782_v26 = vld [vmem:[%s5400_s19 + $0x3c] sm:$0xf] }
 0x101   : > { %1668 = vrot.lane.b32.xlu0 %v1579_v52, %s5348_s22  ;;  %v1876_v52 = vrot.slane %v1874_v24, 5  ;;  %v1852_v1 = vrot.slane %v1850_v56, 4  ;;  %v1916_v24 = vrot.slane %v1914_v13, 5  ;;  %v1939_v38 = vrot.slane %v1937_v19, 6 }
 0x102   : > { %v1268_v5 = vpop.permute.xlu1 %1267  ;;  %v1603_v63 = vsel %vm5687_vm6, %v1601_v41, %v1602_v48  ;;  %v1889_v7 = vrot.slane %v1887_v55, 6  ;;  %v1944_v39 = vshrl.u32 %v1782_v26, 16  ;;  %v1947_v40 = vshll.u32 %v1782_v26, 16  ;;  %v1788_v26 = vld [vmem:[%s5400_s19 + $0x54] sm:$0xf] }
 0x103   : > { %1373 = vst.msk [vmem:[#allocation2 + $0x48] sm:$0xf] %vm1354_vm8, %v1268_v5  ;;  %v1266_v9 = vpop.permute.xlu0 %1265  ;;  %v1880_v5 = vor.u32 %v1879_v53, %v1876_v52  ;;  %v1861_v22 = vsel %vm6124_vm11, %v1852_v1, %v1860_v49  ;;  %v1940_v57 = vor.u32 %v1939_v38, %v1936_v37  ;;  %v1967_v27 = vshll.u32 %v1784_v45, 16 }
 0x104   : > { %1372 = vst.msk [vmem:[#allocation2 + $0x44] sm:$0xf] %vm1354_vm8, %v1266_v9  ;;  %1674 = vrot.lane.b32.xlu1 %v1588_v60, %s5348_s22  ;;  %v1842_v60 = vrot.slane %v1840_v42, 4  ;;  %v1899_v9 = vrot.slane %v1897_v58, 6  ;;  %v1946_v58 = vrot.slane %v1944_v39, 5  ;;  %v2007_v37 = vshll.u32 %v1788_v26, 16 }
 0x105   : > { %1672 = vrot.lane.b32.xlu0 %v1585_v6, %s5348_s22  ;;  %v1886_v6 = vrot.slane %v1884_v54, 5  ;;  %v1882_v28 = vrot.slane %v1880_v5, 4  ;;  %v1785_v54 = vld [vmem:[%s5400_s19 + $0x48] sm:$0xf]  ;;  %v1969_v15 = vrot.slane %v1967_v27, 6  ;;  %vm5355_vm6 = vmmov 0  }
 0x106   : > { %v1272_v25 = vpop.permute.xlu1 %1271  ;;  %v1851_v12 = vsel %vm6124_vm11, %v1842_v60, %v1850_v56  ;;  %v1900_v29 = vor.u32 %v1899_v9, %v1896_v47  ;;  %v1977_v1 = vshll.u32 %v1785_v54, 16  ;;  %v1942_v47 = vrot.slane %v1940_v57, 4  ;;  %v1787_v9 = vld [vmem:[%s5400_s19 + $0x50] sm:$0xf]  ;;  %v3147_v27 = vld [vmem:[%s5400_s19 + $0x14] sm:$0xf] }
 0x107   : > { %1375 = vst.msk [vmem:[#allocation2 + $0x50] sm:$0xf] %vm1354_vm8, %v1272_v25  ;;  %v1270_v32 = vpop.permute.xlu0 %1269  ;;  %v1890_v23 = vor.u32 %v1889_v7, %v1886_v6  ;;  %v1872_v25 = vrot.slane %v1870_v0, 4  ;;  %v1974_v0 = vshrl.u32 %v1785_v54, 16 }
 0x108   : > { %1374 = vst.msk [vmem:[#allocation2 + $0x4c] sm:$0xf] %vm1354_vm8, %v1270_v32  ;;  %1678 = vrot.lane.b32.xlu1 %v1594_v16, %s5348_s22  ;;  %v1783_v32 = vld [vmem:[%s5400_s19 + $0x40] sm:$0xf]  ;;  %v1902_v50 = vrot.slane %v1900_v29, 4 }
 0x109   : > { %1676 = vrot.lane.b32.xlu0 %v1591_v10, %s5348_s22  ;;  %v1904_v10 = vshrl.u32 %v1778_v61, 16  ;;  %v1954_v42 = vshrl.u32 %v1783_v32, 16  ;;  %v1957_v43 = vshll.u32 %v1783_v32, 16  ;;  %v1881_v48 = vsel %vm6124_vm11, %v1872_v25, %v1880_v5  ;;  %v1786_v5 = vld [vmem:[%s5400_s19 + $0x4c] sm:$0xf] }
 0x10a   : > { %v1276_v44 = vpop.permute.xlu1 %1275  ;;  %v1892_v56 = vrot.slane %v1890_v23, 4  ;;  %v1987_v18 = vshll.u32 %v1786_v5, 16 }
 0x10b   : > { %1377 = vst.msk [vmem:[#allocation2 + $0x58] sm:$0xf] %vm1354_vm8, %v1276_v44  ;;  %v1274_v51 = vpop.permute.xlu0 %1273  ;;  %v1906_v30 = vrot.slane %v1904_v10, 5  ;;  %v1891_v44 = vsel %vm6124_vm11, %v1882_v28, %v1890_v23  ;;  %v1956_v61 = vrot.slane %v1954_v42, 5  ;;  %v1789_v42 = vld [vmem:[%s5400_s19 + $0x58] sm:$0xf] }
 0x10c   : > { %1376 = vst.msk [vmem:[#allocation2 + $0x54] sm:$0xf] %vm1354_vm8, %v1274_v51  ;;  %1682 = vrot.lane.b32.xlu1 %v1600_v34, %s5348_s22  ;;  %v1924_v34 = vshrl.u32 %v1780_v14, 16  ;;  %v1920_v51 = vor.u32 %v1919_v33, %v1916_v24  ;;  %v1901_v7 = vsel %vm6124_vm11, %v1892_v56, %v1900_v29  ;;  %v1989_v33 = vrot.slane %v1987_v18, 6 }
 0x10d   : > { %1680 = vrot.lane.b32.xlu0 %v1597_v35, %s5348_s22  ;;  %v1927_v35 = vshll.u32 %v1780_v14, 16  ;;  %v1910_v49 = vor.u32 %v1909_v31, %v1906_v30  ;;  %v1984_v14 = vshrl.u32 %v1786_v5, 16  ;;  %v2017_v56 = vshll.u32 %v1789_v42, 16 }
 0x10e   : > { %v1280_v62 = vpop.permute.xlu1 %1279  ;;  %v1926_v52 = vrot.slane %v1924_v34, 5 }
 0x10f   : > { %1379 = vst.msk [vmem:[#allocation2 + $0x60] sm:$0xf] %vm1354_vm8, %v1280_v62  ;;  %v1278_v3 = vpop.permute.xlu0 %1277  ;;  %v1929_v53 = vrot.slane %v1927_v35, 6  ;;  %v1959_v62 = vrot.slane %v1957_v43, 6  ;;  %v1911_v2 = vsel %vm6124_vm11, %v1902_v50, %v1910_v49  ;;  %v1912_v8 = vrot.slane %v1910_v49, 4 }
 0x110   : > { %1378 = vst.msk [vmem:[#allocation2 + $0x5c] sm:$0xf] %vm1354_vm8, %v1278_v3  ;;  %2232 = vrot.lane.b32.xlu1 %v1831_v59, %s5349_s23  ;;  %v1949_v59 = vrot.slane %v1947_v40, 6  ;;  %v1922_v3 = vrot.slane %v1920_v51, 4  ;;  %v1986_v24 = vrot.slane %v1984_v14, 5  ;;  %v2009_v50 = vrot.slane %v2007_v37, 6 }
 0x111   : > { %1684 = vrot.lane.b32.xlu0 %v1603_v63, %s5348_s22  ;;  %v1964_v63 = vshrl.u32 %v1784_v45, 16  ;;  %v1930_v4 = vor.u32 %v1929_v53, %v1926_v52  ;;  %v1921_v23 = vsel %vm6124_vm11, %v1912_v8, %v1920_v51  ;;  %v3146_v51 = vld [vmem:[%s5400_s19 + $0x10] sm:$0xc]  ;;  %v2019_v5 = vrot.slane %v2017_v56, 6  ;;  %v2774_v8 = vld [vmem:[%s5400_s19 + $0x14] sm:$0xf] }
 0x112   : > { %v1284_v16 = vpop.permute.xlu1 %1283  ;;  %v1950_v11 = vor.u32 %v1949_v59, %v1946_v58  ;;  %v3192_v58 = vshrl.u32 %v3146_v51, 16  ;;  %v3195_v59 = vshll.u32 %v3146_v51, 16  ;;  %v1791_v37 = vld [vmem:[%s5400_s19 + $0x60] sm:$0xf] }
 0x113   : > { %1381 = vst.msk [vmem:[#allocation2 + $0x68] sm:$0xf] %vm1354_vm8, %v1284_v16  ;;  %v1282_v20 = vpop.permute.xlu0 %1281  ;;  %v1966_v13 = vrot.slane %v1964_v63, 5  ;;  %v1976_v16 = vrot.slane %v1974_v0, 5  ;;  %v1931_v19 = vsel %vm6124_vm11, %v1922_v3, %v1930_v4  ;;  %v1932_v25 = vrot.slane %v1930_v4, 4 }
 0x114   : > { %1380 = vst.msk [vmem:[#allocation2 + $0x64] sm:$0xf] %vm1354_vm8, %v1282_v20  ;;  %2236 = vrot.lane.b32.xlu1 %v1851_v12, %s5349_s23  ;;  %v1960_v12 = vor.u32 %v1959_v62, %v1956_v61  ;;  %v1994_v20 = vshrl.u32 %v1787_v9, 16  ;;  %v1951_v29 = vsel %vm6124_vm11, %v1942_v47, %v1950_v11  ;;  %v1952_v40 = vrot.slane %v1950_v11, 4  ;;  %v2397_v63 = vld [vmem:[%s5400_s19 + $0x8] sm:$0xc] }
 0x115   : > { %2234 = vrot.lane.b32.xlu0 %v1841_v17, %s5349_s23  ;;  %v1979_v17 = vrot.slane %v1977_v1, 6  ;;  %v1970_v31 = vor.u32 %v1969_v15, %v1966_v13  ;;  %v1941_v39 = vsel %vm6124_vm11, %v1932_v25, %v1940_v57  ;;  %v2398_v3 = vld [vmem:[%s5400_s19 + $0xc] sm:$0xf]  ;;  %v3194_v47 = vrot.slane %v3192_v58, 6 }
 0x116   : > { %v1288_v36 = vpop.permute.xlu1 %1287  ;;  %v1962_v30 = vrot.slane %v1960_v12, 4  ;;  %v1996_v34 = vrot.slane %v1994_v20, 5  ;;  %v1961_v53 = vsel %vm6124_vm11, %v1952_v40, %v1960_v12  ;;  %v3204_v11 = vshll.u32 %v3147_v27, 16 }
 0x117   : > { %1383 = vst.msk [vmem:[#allocation2 + $0x70] sm:$0xf] %vm1354_vm8, %v1288_v36  ;;  %v1286_v41 = vpop.permute.xlu0 %1285  ;;  %v1980_v32 = vor.u32 %v1979_v17, %v1976_v16  ;;  %v2004_v36 = vshrl.u32 %v1788_v26, 16  ;;  %v1972_v54 = vrot.slane %v1970_v31, 4  ;;  %v5009_v13 = vrot.slane %v2397_v63, 10  ;;  %v5299_v63 = vld [vmem:[%s8004_s1 + $0x8] sm:$0xff]  }
 0x118   : > { %1382 = vst.msk [vmem:[#allocation2 + $0x6c] sm:$0xf] %vm1354_vm8, %v1286_v41  ;;  %2240 = vrot.lane.b32.xlu1 %v1871_v21, %s5349_s23  ;;  %v1997_v21 = vshll.u32 %v1787_v9, 16  ;;  %v1971_v43 = vsel %vm6124_vm11, %v1962_v30, %v1970_v31  ;;  %v3197_v9 = vrot.slane %v3195_v59, 7  ;;  %v2486_v15 = vrot.slane %v2398_v3, 6 }
 0x119   : > { %2238 = vrot.lane.b32.xlu0 %v1861_v22, %s5349_s23  ;;  %v2006_v45 = vrot.slane %v2004_v36, 5  ;;  %v1981_v1 = vsel %vm6124_vm11, %v1972_v54, %v1980_v32  ;;  %v6225_v16 = vld [vmem:[%s5400_s19 + $0x10] sm:$0xf]  ;;  %v3148_v26 = vld [vmem:[%s5400_s19 + $0x18] sm:$0xf]  ;;  %v3206_v31 = vrot.slane %v3204_v11, 7 }
 0x11a   : > { %v1292_v55 = vpop.permute.xlu1 %1291  ;;  %v1999_v35 = vrot.slane %v1997_v21, 6  ;;  %v2488_v25 = vrot.slane %v2486_v15, 4  ;;  %v3214_v36 = vshll.u32 %v3148_v26, 16  ;;  %v2034_v51 = vshrl.u32 %v1791_v37, 16 }
 0x11b   : > { %1385 = vst.msk [vmem:[#allocation2 + $0x78] sm:$0xf] %vm1354_vm8, %v1292_v55  ;;  %v1290_v60 = vpop.permute.xlu0 %1289  ;;  %v2014_v55 = vshrl.u32 %v1789_v42, 16  ;;  %v2010_v62 = vor.u32 %v2009_v50, %v2006_v45  ;;  %v3775_v50 = vld [vmem:[%s5400_s19 + $0x14] sm:$0xf] }
 0x11c   : > { %1384 = vst.msk [vmem:[#allocation2 + $0x74] sm:$0xf] %vm1354_vm8, %v1290_v60  ;;  %2244 = vrot.lane.b32.xlu1 %v1891_v44, %s5349_s23  ;;  %v1982_v44 = vrot.slane %v1980_v32, 4  ;;  %v2000_v49 = vor.u32 %v1999_v35, %v1996_v34  ;;  %v2487_v32 = vsel %vm6231_vm15, %v5009_v13, %v2486_v15  ;;  %v3211_v35 = vshrl.u32 %v3148_v26, 16 }
 0x11d   : > { %2242 = vrot.lane.b32.xlu0 %v1881_v48, %s5349_s23  ;;  %v1990_v48 = vor.u32 %v1989_v33, %v1986_v24  ;;  %v2016_v4 = vrot.slane %v2014_v55, 5  ;;  %v6246_v24 = vld [vmem:[%s5400_s19 + $0x18] sm:$0xf]  ;;  %v3216_v56 = vrot.slane %v3214_v36, 7 }
 0x11e   : > { %v1296_v6 = vpop.permute.xlu1 %1295  ;;  %v2002_v61 = vrot.slane %v2000_v49, 4  ;;  %v2862_v45 = vrot.slane %v6246_v24, 6  ;;  %v3213_v55 = vrot.slane %v3211_v35, 6  ;;  %v5300_v11 = vld [vmem:[%s8004_s1 + $0x10] ss:$0 sps:$4 sm:$0x33]  }
 0x11f   : > { %1387 = vst.msk [vmem:[#allocation2 + $0x80] sm:$0xf] %vm1354_vm8, %v1296_v6  ;;  %v1294_v10 = vpop.permute.xlu0 %1293  ;;  %v1991_v60 = vsel %vm6124_vm11, %v1982_v44, %v1990_v48  ;;  %v6235_v20 = vor.u32 %v2019_v5, %v2016_v4  ;;  %v5298_v44 = vld [vmem:[%s8004_s1] sm:$0xff]   ;;  %v3149_v35 = vld [vmem:[%s5400_s19 + $0x1c] sm:$0xf] }
 0x120   : > { %1386 = vst.msk [vmem:[#allocation2 + $0x7c] sm:$0xf] %vm1354_vm8, %v1294_v10  ;;  %2248 = vrot.lane.b32.xlu1 %v1911_v2, %s5349_s23  ;;  %v1992_v2 = vrot.slane %v1990_v48, 4  ;;  %v3201_v10 = vshrl.u32 %v3147_v27, 16  ;;  %v2011_v12 = vsel %vm6124_vm11, %v2002_v61, %v2010_v62  ;;  %v3863_v61 = vrot.slane %v3775_v50, 7 }
 0x121   : > { %2246 = vrot.lane.b32.xlu0 %v1901_v7, %s5349_s23  ;;  %v2773_v7 = vld [vmem:[%s5400_s19 + $0x10] sm:$0xc]  ;;  %v3224_v50 = vshll.u32 %v3149_v35, 16 }
 0x122   : > { %v1300_v22 = vpop.permute.xlu1 %1299  ;;  %v2001_v14 = vsel %vm6124_vm11, %v1992_v2, %v2000_v49  ;;  %v3203_v30 = vrot.slane %v3201_v10, 6  ;;  %v1793_v10 = vld [vmem:[%s5400_s19 + $0x68] sm:$0xf]  ;;  %v3865_v15 = vrot.slane %v3863_v61, 4 }
 0x123   : > { %1389 = vst.msk [vmem:[#allocation2 + $0x88] sm:$0xf] %vm1354_vm8, %v1300_v22  ;;  %v1298_v28 = vpop.permute.xlu0 %1297  ;;  %v5010_v22 = vrot.slane %v2773_v7, 10  ;;  %v2057_v26 = vshll.u32 %v1793_v10, 16 }
 0x124   : > { %1388 = vst.msk [vmem:[#allocation2 + $0x84] sm:$0xf] %vm1354_vm8, %v1298_v28  ;;  %2252 = vrot.lane.b32.xlu1 %v1931_v19, %s5349_s23  ;;  %v2012_v19 = vrot.slane %v2010_v62, 4  ;;  %v2489_v28 = vrot.slane %v6225_v16, 6  ;;  %v6261_v42 = vor.u32 %v3206_v31, %v3203_v30  ;;  %v2400_v62 = vld [vmem:[%s5400_s19 + $0x14] sm:$0xf] }
 0x125   : > { %2250 = vrot.lane.b32.xlu0 %v1921_v23, %s5349_s23  ;;  %v2859_v23 = vrot.slane %v2774_v8, 6  ;;  %v6306_v8 = vor.u32 %v3216_v56, %v3213_v55  ;;  %v2492_v13 = vrot.slane %v2400_v62, 6  ;;  %v3226_v62 = vrot.slane %v3224_v50, 7 }
 0x126   : > { %v1304_v38 = vpop.permute.xlu1 %1303  ;;  %v2021_v34 = vsel %vm6124_vm11, %v2012_v19, %v6235_v20  ;;  %v2490_v40 = vsel %vm6231_vm15, %v2488_v25, %v2489_v28  ;;  %v3209_v7 = vrot.slane %v6261_v42, 4  ;;  %v2054_v25 = vshrl.u32 %v1793_v10, 16 }
 0x127   : > { %1391 = vst.msk [vmem:[#allocation2 + $0x90] sm:$0xf] %vm1354_vm8, %v1304_v38  ;;  %v1302_v41 = vpop.permute.xlu0 %1301  ;;  %v2861_v49 = vrot.slane %v2859_v23, 4 }
 0x128   : > { %1390 = vst.msk [vmem:[#allocation2 + $0x8c] sm:$0xf] %vm1354_vm8, %v1302_v41  ;;  %2256 = vrot.lane.b32.xlu1 %v1951_v29, %s5349_s23  ;;  %v3198_v29 = vor.u32 %v3197_v9, %v3194_v47  ;;  %v2491_v9 = vrot.slane %v2489_v28, 4 }
 0x129   : > { %2254 = vrot.lane.b32.xlu0 %v1941_v39, %s5349_s23  ;;  %v2860_v39 = vsel %vm6231_vm15, %v5010_v22, %v2859_v23  ;;  %v3218_v23 = vsel %vm6270_vm2, %v3209_v7, %v6306_v8 }
 0x12a   : > { %v1308_v52 = vpop.permute.xlu1 %1307  ;;  %v3199_v41 = vrot.slane %v3198_v29, 4  ;;  %v6331_v29 = vld [vmem:[%s5400_s19 + $0x18] sm:$0xf]  ;;  %v2493_v30 = vsel %vm6231_vm15, %v2491_v9, %v2492_v13  ;;  %v3168_v9 = vld [vmem:[%s5400_s19 + $0x68] sm:$0xf] }
 0x12b   : > { %1393 = vst.msk [vmem:[#allocation2 + $0x98] sm:$0xf] %vm1354_vm8, %v1308_v52  ;;  %v1306_v57 = vpop.permute.xlu0 %1305  ;;  %v2037_v52 = vshll.u32 %v1791_v37, 16  ;;  %v2494_v37 = vrot.slane %v2492_v13, 4 }
 0x12c   : > { %1392 = vst.msk [vmem:[#allocation2 + $0x94] sm:$0xf] %vm1354_vm8, %v1306_v57  ;;  %2260 = vrot.lane.b32.xlu1 %v1971_v43, %s5349_s23  ;;  %v3774_v43 = vld [vmem:[%s5400_s19 + $0x10] sm:$0x8]  ;;  %v1792_v57 = vld [vmem:[%s5400_s19 + $0x64] sm:$0xf]  ;;  %v3208_v59 = vsel %vm6270_vm2, %v3199_v41, %v6261_v42 }
 0x12d   : > { %2258 = vrot.lane.b32.xlu0 %v1961_v53, %s5349_s23  ;;  %v5351_v53 = vmov 0.0   ;;  %v2039_v2 = vrot.slane %v2037_v52, 6  ;;  %v2044_v3 = vshrl.u32 %v1792_v57, 16  ;;  %v2047_v4 = vshll.u32 %v1792_v57, 16  ;;  %v6351_v41 = vld [vmem:[%s5400_s19 + $0x60] sm:$0xf] }
 0x12e   : > { %v1312_v0 = vpop.permute.xlu1 %1311  ;;  %5166 = vmatprep.subr.bf16.mxu0 %v5351_v53  ;;  %5256 = vmatprep.subr.bf16.mxu1 %v5351_v53  ;;  %v2549_v52 = vrot.slane %v6351_v41, 6  ;;  %v6370_v57 = vld [vmem:[%s5400_s19 + $0x20] sm:$0xf] }
 0x12f   : > { %1395 = vst.msk [vmem:[#allocation2 + $0xa0] sm:$0xf] %vm1354_vm8, %v1312_v0  ;;  %v1310_v6 = vpop.permute.xlu0 %1309  ;;  %5167 = vmatpush3.bf16.msra.mxu0 %v5298_v44  ;;  %5259 = vmatpush3.bf16.msra.mxu1 %v5298_v44  ;;  %v6299_v0 = vld [vmem:[%s5400_s19 + $0x18] sm:$0xf]  ;;  %v2049_v19 = vrot.slane %v2047_v4, 6 }
 0x130   : > { %1394 = vst.msk [vmem:[#allocation2 + $0x9c] sm:$0xf] %vm1354_vm8, %v1310_v6  ;;  %2264 = vrot.lane.b32.xlu1 %v1991_v60, %s5349_s23  ;;  %5168 = vmatprep.subr.bf16.mxu0 %v5351_v53  ;;  %v5011_v60 = vrot.slane %v3774_v43, 11  ;;  %v2863_v6 = vsel %vm6231_vm15, %v2861_v49, %v2862_v45  ;;  %v3866_v16 = vrot.slane %v6299_v0, 7  ;;  %v2864_v43 = vrot.slane %v2862_v45, 4 }
 0x131   : > { %2262 = vrot.lane.b32.xlu0 %v1981_v1, %s5349_s23  ;;  %5257 = vmatprep.subr.bf16.mxu1 %v5351_v53  ;;  %v2036_v1 = vrot.slane %v2034_v51, 5  ;;  %v3221_v49 = vshrl.u32 %v3149_v35, 16  ;;  %v2420_v45 = vld [vmem:[%s5400_s19 + $0x64] sm:$0xf]  ;;  %v6383_v4 = vld [vmem:[%s5400_s19 + $0x68] sm:$0xf] }
 0x132   : > { %v1607_v17 = vpop.permute.xlu1 %1606  ;;  %5172 = vmatprep.mubr.msk.bf16.mxu0 %vm5355_vm6, %v5351_v53  ;;  %v3867_v31 = vsel %vm6294_vm5, %v3865_v15, %v3866_v16  ;;  %5216 = vmatprep.mubr.msk.bf16.mxu1 %vm5355_vm6, %v5351_v53  ;;  %v2922_v15 = vrot.slane %v6383_v4, 6  ;;  %vm2731_vm8 = vcmask 191648  }
 0x133   : > { %1729 = vst.msk [vmem:[#allocation2 + $0x4] sm:$0xf] %vm1727_vm12, %v1607_v17  ;;  %v1605_v21 = vpop.permute.xlu0 %1604  ;;  %5169 = vmatpush3.bf16.msra.mxu0 %v5299_v63  ;;  %5260 = vmatpush3.bf16.msra.mxu1 %v5299_v63  ;;  %v6323_v17 = vor.u32 %v2039_v2, %v2036_v1  ;;  %v2551_v63 = vrot.slane %v2549_v52, 4  ;;  %v2552_v1 = vrot.slane %v2420_v45, 6  ;;  %v3868_v45 = vrot.slane %v3866_v16, 4 }
 0x134   : > { %1728 = vst.msk [vmem:[#allocation2] sm:$0xf] %vm1727_vm12, %v1605_v21  ;;  %2268 = vrot.lane.b32.xlu1 %v2011_v12, %s5349_s23  ;;  %5170 = vmatprep.subr.bf16.mxu0 %v5351_v53  ;;  %v3864_v12 = vsel %vm6294_vm5, %v5011_v60, %v3863_v61  ;;  %v4387_v21 = vsel %vm2481_vm13, %v5300_v11, 0  ;;  %v3223_v61 = vrot.slane %v3221_v49, 6  ;;  %v6391_v11 = vld [vmem:[%s5400_s19 + $0x68] sm:$0xf] }
 0x135   : > { %2266 = vrot.lane.b32.xlu0 %v2001_v14, %s5349_s23  ;;  %5258 = vmatprep.subr.bf16.mxu1 %v5351_v53  ;;  %v2046_v14 = vrot.slane %v2044_v3, 5  ;;  %v2868_v3 = vrot.slane %v6370_v57, 6  ;;  %v6525_v57 = vld [vmem:[%s5400_s19 + $0x28] sm:$0xf]  ;;  %vm4321_vm13 = vcmask 293888  }
 0x136   : > { %v1611_v33 = vpop.permute.xlu1 %1610  ;;  %v3227_v13 = vor.u32 %v3226_v62, %v3223_v61 }
 0x137   : > { %1731 = vst.msk [vmem:[#allocation2 + $0xc] sm:$0xf] %vm1727_vm12, %v1611_v33  ;;  %v1609_v38 = vpop.permute.xlu0 %1608  ;;  %5171 = vmatpush3.bf16.msra.mxu0 %v4387_v21  ;;  %5261 = vmatpush3.bf16.msra.mxu1 %v4387_v21  ;;  %v2050_v33 = vor.u32 %v2049_v19, %v2046_v14  ;;  %v2553_v14 = vsel %vm6231_vm15, %v2551_v63, %v2552_v1  ;;  %v2796_v21 = vld [vmem:[%s5400_s19 + $0x6c] sm:$0xf] }
 0x138   : > { %1730 = vst.msk [vmem:[#allocation2 + $0x8] sm:$0xf] %vm1727_vm12, %v1609_v38  ;;  %2608 = vrot.lane.b32.xlu1 %v2487_v32, %s5350_s24  ;;  %v2042_v32 = vrot.slane %v6323_v17, 4  ;;  %v2495_v38 = vrot.slane %v6331_v29, 6  ;;  %v2925_v35 = vrot.slane %v2796_v21, 6  ;;  %v3229_v49 = vrot.slane %v3227_v13, 4 }
 0x139   : > { %2270 = vrot.lane.b32.xlu0 %v2021_v34, %s5349_s23  ;;  %v2776_v34 = vld [vmem:[%s5400_s19 + $0x1c] sm:$0xf]  ;;  %v2052_v56 = vrot.slane %v2050_v33, 4 }
 0x13a   : > { %v1615_v54 = vpop.permute.xlu1 %1614  ;;  %v2865_v44 = vrot.slane %v2776_v34, 6  ;;  %v2051_v51 = vsel %vm6124_vm11, %v2042_v32, %v2050_v33  ;;  %v2496_v55 = vsel %vm6231_vm15, %v2494_v37, %v2495_v38  ;;  %v2924_v34 = vrot.slane %v2922_v15, 4 }
 0x13b   : > { %1733 = vst.msk [vmem:[#allocation2 + $0x14] sm:$0xf] %vm1727_vm12, %v1615_v54  ;;  %v1613_v58 = vpop.permute.xlu0 %1612 }
 0x13c   : > { %1732 = vst.msk [vmem:[#allocation2 + $0x10] sm:$0xf] %vm1727_vm12, %v1613_v58  ;;  %2981 = vrot.lane.b32.xlu1 %v2860_v39, %s5352_s27  ;;  %v2056_v39 = vrot.slane %v2054_v25, 5  ;;  %v2866_v60 = vsel %vm6231_vm15, %v2864_v43, %v2865_v44  ;;  %v2867_v2 = vrot.slane %v2865_v44, 4 }
 0x13d   : > { %2610 = vrot.lane.b32.xlu0 %v2490_v40, %s5350_s24  ;;  %v2059_v40 = vrot.slane %v2057_v26, 6  ;;  %v2554_v26 = vrot.slane %v2552_v1, 4  ;;  %v6438_v1 = vld [vmem:[%s5400_s19 + $0x68] sm:$0xf] }
 0x13e   : > { %v1619_v5 = vpop.permute.xlu1 %1618  ;;  %v2869_v19 = vsel %vm6231_vm15, %v2867_v2, %v2868_v3 }
 0x13f   : > { %1735 = vst.msk [vmem:[#allocation2 + $0x1c] sm:$0xf] %vm1727_vm12, %v1619_v5  ;;  %v1617_v47 = vpop.permute.xlu0 %1616  ;;  %v6366_v24 = vor.u32 %v2059_v40, %v2056_v39 }
 0x140   : > { %1734 = vst.msk [vmem:[#allocation2 + $0x18] sm:$0xf] %vm1727_vm12, %v1617_v47  ;;  %3609 = vrot.lane.b32.xlu1 %v3208_v59, %s5353_s5  ;;  %v3150_v59 = vld [vmem:[%s5400_s19 + $0x20] sm:$0xf] }
 0x141   : > { %2983 = vrot.lane.b32.xlu0 %v2863_v6, %s5352_s27  ;;  %v2061_v6 = vsel %vm6124_vm11, %v2052_v56, %v6366_v24  ;;  %v3231_v7 = vshrl.u32 %v3150_v59, 16  ;;  %v3234_v47 = vshll.u32 %v3150_v59, 16  ;;  %v2926_v56 = vsel %vm6231_vm15, %v2924_v34, %v2925_v35 }
 0x142   : > { %v1623_v22 = vpop.permute.xlu1 %1622  ;;  %v2927_v59 = vrot.slane %v2925_v35, 4 }
 0x143   : > { %1737 = vst.msk [vmem:[#allocation2 + $0x24] sm:$0xf] %vm1727_vm12, %v1623_v22  ;;  %v1621_v28 = vpop.permute.xlu0 %1620  ;;  %v3411_v22 = vshrl.u32 %v3168_v9, 16 }
 0x144   : > { %1736 = vst.msk [vmem:[#allocation2 + $0x20] sm:$0xf] %vm1727_vm12, %v1621_v28  ;;  %3985 = vrot.lane.b32.xlu1 %v3864_v12, %s5354_s6  ;;  %v3219_v12 = vrot.slane %v6306_v8, 4  ;;  %v2555_v8 = vrot.slane %v6391_v11, 6  ;;  %v3233_v28 = vrot.slane %v3231_v7, 6 }
 0x145   : > { %3611 = vrot.lane.b32.xlu0 %v3218_v23, %s5353_s5  ;;  %v3414_v23 = vshll.u32 %v3168_v9, 16  ;;  %v3413_v37 = vrot.slane %v3411_v22, 6  ;;  %v6445_v7 = vld [vmem:[%s5400_s19 + $0x20] sm:$0xf] }
 0x146   : > { %v1627_v36 = vpop.permute.xlu1 %1626  ;;  %v3228_v33 = vsel %vm6270_vm2, %v3219_v12, %v3227_v13  ;;  %v2556_v44 = vsel %vm6231_vm15, %v2554_v26, %v2555_v8  ;;  %v3872_v22 = vrot.slane %v6445_v7, 7  ;;  %v1794_v26 = vld [vmem:[%s5400_s19 + $0x6c] sm:$0xf] }
 0x147   : > { %1739 = vst.msk [vmem:[#allocation2 + $0x2c] sm:$0xf] %vm1727_vm12, %v1627_v36  ;;  %v1625_v42 = vpop.permute.xlu0 %1624  ;;  %v3777_v36 = vld [vmem:[%s5400_s19 + $0x1c] sm:$0xf]  ;;  %v3416_v39 = vrot.slane %v3414_v23, 7  ;;  %v2064_v34 = vshrl.u32 %v1794_v26, 16 }
 0x148   : > { %1738 = vst.msk [vmem:[#allocation2 + $0x28] sm:$0xf] %vm1727_vm12, %v1625_v42  ;;  %2612 = vrot.lane.b32.xlu1 %v2493_v30, %s5350_s24  ;;  %v3236_v30 = vrot.slane %v3234_v47, 7  ;;  %v3926_v47 = vrot.slane %v6438_v1, 7  ;;  %v2067_v35 = vshll.u32 %v1794_v26, 16 }
 0x149   : > { %3987 = vrot.lane.b32.xlu0 %v3867_v31, %s5354_s6  ;;  %v3169_v31 = vld [vmem:[%s5400_s19 + $0x6c] sm:$0xf]  ;;  %v6435_v61 = vor.u32 %v3416_v39, %v3413_v37 }
 0x14a   : > { %v1631_v54 = vpop.permute.xlu1 %1630  ;;  %v3421_v40 = vshrl.u32 %v3169_v31, 16  ;;  %v3424_v42 = vshll.u32 %v3169_v31, 16  ;;  %v6420_v50 = vor.u32 %v3236_v30, %v3233_v28  ;;  %v3928_v30 = vrot.slane %v3926_v47, 4 }
 0x14b   : > { %1741 = vst.msk [vmem:[#allocation2 + $0x34] sm:$0xf] %vm1727_vm12, %v1631_v54  ;;  %v1629_v58 = vpop.permute.xlu0 %1628  ;;  %v3419_v12 = vrot.slane %v6435_v61, 4 }
 0x14c   : > { %1740 = vst.msk [vmem:[#allocation2 + $0x30] sm:$0xf] %vm1727_vm12, %v1629_v58  ;;  %2276 = vrot.lane.b32.xlu1 %v2051_v51, %s5349_s23  ;;  %v6423_v51 = vld [vmem:[%s5400_s19 + $0x70] sm:$0xf]  ;;  %v3869_v58 = vrot.slane %v3777_v36, 7  ;;  %v3423_v62 = vrot.slane %v3421_v40, 6  ;;  %v3238_v0 = vsel %vm6270_vm2, %v3229_v49, %v6420_v50 }
 0x14d   : > { %2614 = vrot.lane.b32.xlu0 %v2496_v55, %s5350_s24  ;;  %v3170_v55 = vld [vmem:[%s5400_s19 + $0x70] sm:$0xf]  ;;  %v3426_v63 = vrot.slane %v3424_v42, 7 }
 0x14e   : > { %v1635_v5 = vpop.permute.xlu1 %1634  ;;  %v3434_v16 = vshll.u32 %v3170_v55, 16  ;;  %v3870_v9 = vsel %vm6294_vm5, %v3868_v45, %v3869_v58  ;;  %v3871_v21 = vrot.slane %v3869_v58, 4  ;;  %v6477_v42 = vld [vmem:[%s5400_s19 + $0x70] sm:$0xf]  ;;  %v2066_v58 = vrot.slane %v2064_v34, 5 }
 0x14f   : > { %1743 = vst.msk [vmem:[#allocation2 + $0x3c] sm:$0xf] %vm1727_vm12, %v1635_v5  ;;  %v1633_v10 = vpop.permute.xlu0 %1632  ;;  %v3431_v5 = vshrl.u32 %v3170_v55, 16  ;;  %v3427_v13 = vor.u32 %v3426_v63, %v3423_v62  ;;  %v3932_v45 = vrot.slane %v6477_v42, 7  ;;  %v6621_v42 = vld [vmem:[%s5400_s19 + $0x78] sm:$0xf] }
 0x150   : > { %1742 = vst.msk [vmem:[#allocation2 + $0x38] sm:$0xf] %vm1727_vm12, %v1633_v10  ;;  %2985 = vrot.lane.b32.xlu1 %v2866_v60, %s5352_s27  ;;  %v2928_v60 = vrot.slane %v6423_v51, 6  ;;  %v3873_v37 = vsel %vm6294_vm5, %v3871_v21, %v3872_v22  ;;  %v6573_v51 = vld [vmem:[%s5400_s19 + $0x78] sm:$0xf] }
 0x151   : > { %2278 = vrot.lane.b32.xlu0 %v2061_v6, %s5349_s23  ;;  %v3433_v23 = vrot.slane %v3431_v5, 6  ;;  %v3429_v39 = vrot.slane %v3427_v13, 4 }
 0x152   : > { %v1639_v25 = vpop.permute.xlu1 %1638  ;;  %v2929_v10 = vsel %vm6231_vm15, %v2927_v59, %v2928_v60  ;;  %v2069_v59 = vrot.slane %v2067_v35, 6 }
 0x153   : > { %1745 = vst.msk [vmem:[#allocation2 + $0x44] sm:$0xf] %vm1727_vm12, %v1639_v25  ;;  %v1637_v32 = vpop.permute.xlu0 %1636  ;;  %v3436_v25 = vrot.slane %v3434_v16, 7 }
 0x154   : > { %1744 = vst.msk [vmem:[#allocation2 + $0x40] sm:$0xf] %vm1727_vm12, %v1637_v32  ;;  %2652 = vrot.lane.b32.xlu1 %v2553_v14, %s5350_s24  ;;  %v3797_v14 = vld [vmem:[%s5400_s19 + $0x6c] sm:$0xf]  ;;  %v3428_v32 = vsel %vm6270_vm2, %v3419_v12, %v3427_v13 }
 0x155   : > { %2987 = vrot.lane.b32.xlu0 %v2869_v19, %s5352_s27  ;;  %v3929_v31 = vrot.slane %v3797_v14, 7  ;;  %v6474_v40 = vor.u32 %v3436_v25, %v3433_v23  ;;  %v3151_v23 = vld [vmem:[%s5400_s19 + $0x24] sm:$0xf] }
 0x156   : > { %v1643_v43 = vpop.permute.xlu1 %1642 }
 0x157   : > { %1747 = vst.msk [vmem:[#allocation2 + $0x4c] sm:$0xf] %vm1727_vm12, %v1643_v43  ;;  %v1641_v54 = vpop.permute.xlu0 %1640  ;;  %v3930_v49 = vsel %vm6294_vm5, %v3928_v30, %v3929_v31  ;;  %v3438_v63 = vsel %vm6270_vm2, %v3429_v39, %v6474_v40  ;;  %v2422_v30 = vld [vmem:[%s5400_s19 + $0x6c] sm:$0xf] }
 0x158   : > { %1746 = vst.msk [vmem:[#allocation2 + $0x48] sm:$0xf] %vm1727_vm12, %v1641_v54  ;;  %3613 = vrot.lane.b32.xlu1 %v3228_v33, %s5353_s5  ;;  %v2402_v33 = vld [vmem:[%s5400_s19 + $0x1c] sm:$0xf]  ;;  %v2497_v54 = vrot.slane %v2495_v38, 4 }
 0x159   : > { %2654 = vrot.lane.b32.xlu0 %v2556_v44, %s5350_s24  ;;  %v1795_v44 = vld [vmem:[%s5400_s19 + $0x70] sm:$0xf]  ;;  %v2498_v55 = vrot.slane %v2402_v33, 6  ;;  %v6494_v38 = vld [vmem:[%s5400_s19 + $0x20] sm:$0xf] }
 0x15a   : > { %v1647_v2 = vpop.permute.xlu1 %1646  ;;  %v2501_v14 = vrot.slane %v6494_v38, 6 }
 0x15b   : > { %1749 = vst.msk [vmem:[#allocation2 + $0x54] sm:$0xf] %vm1727_vm12, %v1647_v2  ;;  %v1645_v6 = vpop.permute.xlu0 %1644  ;;  %v2074_v2 = vshrl.u32 %v1795_v44, 16  ;;  %v2499_v5 = vsel %vm6231_vm15, %v2497_v54, %v2498_v55  ;;  %v2500_v13 = vrot.slane %v2498_v55, 4  ;;  %v2874_v54 = vrot.slane %v6525_v57, 6 }
 0x15c   : > { %1748 = vst.msk [vmem:[#allocation2 + $0x50] sm:$0xf] %vm1727_vm12, %v1645_v6  ;;  %3025 = vrot.lane.b32.xlu1 %v2926_v56, %s5352_s27  ;;  %v3931_v56 = vrot.slane %v3929_v31, 4  ;;  %v2062_v6 = vrot.slane %v6366_v24, 4  ;;  %v2870_v24 = vrot.slane %v2868_v3, 4  ;;  %v3241_v31 = vshrl.u32 %v3151_v23, 16 }
 0x15d   : > { %3615 = vrot.lane.b32.xlu0 %v3238_v0, %s5353_s5  ;;  %v2077_v0 = vshll.u32 %v1795_v44, 16  ;;  %v2502_v34 = vsel %vm6231_vm15, %v2500_v13, %v2501_v14  ;;  %v2558_v44 = vrot.slane %v2422_v30, 6  ;;  %v6669_v57 = vld [vmem:[%s5400_s19 + $0x30] sm:$0xf] }
 0x15e   : > { %v1651_v19 = vpop.permute.xlu1 %1650  ;;  %v3933_v16 = vsel %vm6294_vm5, %v3931_v56, %v3932_v45  ;;  %v3243_v55 = vrot.slane %v3241_v31, 6 }
 0x15f   : > { %1751 = vst.msk [vmem:[#allocation2 + $0x5c] sm:$0xf] %vm1727_vm12, %v1651_v19  ;;  %v1649_v28 = vpop.permute.xlu0 %1648  ;;  %v2076_v19 = vrot.slane %v2074_v2, 5  ;;  %v2079_v21 = vrot.slane %v2077_v0, 6 }
 0x160   : > { %1750 = vst.msk [vmem:[#allocation2 + $0x58] sm:$0xf] %vm1727_vm12, %v1649_v28  ;;  %3989 = vrot.lane.b32.xlu1 %v3870_v9, %s5354_s6  ;;  %v2070_v9 = vor.u32 %v2069_v59, %v2066_v58 }
 0x161   : > { %3027 = vrot.lane.b32.xlu0 %v2929_v10, %s5352_s27  ;;  %v2778_v10 = vld [vmem:[%s5400_s19 + $0x24] sm:$0xf] }
 0x162   : > { %v1655_v36 = vpop.permute.xlu1 %1654  ;;  %v2871_v26 = vrot.slane %v2778_v10, 6  ;;  %v2071_v28 = vsel %vm6124_vm11, %v2062_v6, %v2070_v9  ;;  %v2072_v35 = vrot.slane %v2070_v9, 4  ;;  %v2560_v9 = vrot.slane %v2558_v44, 4 }
 0x163   : > { %1753 = vst.msk [vmem:[#allocation2 + $0x64] sm:$0xf] %vm1727_vm12, %v1655_v36  ;;  %v1653_v43 = vpop.permute.xlu0 %1652  ;;  %v6522_v36 = vor.u32 %v2079_v21, %v2076_v19  ;;  %v3171_v19 = vld [vmem:[%s5400_s19 + $0x74] sm:$0xf] }
 0x164   : > { %1752 = vst.msk [vmem:[#allocation2 + $0x60] sm:$0xf] %vm1727_vm12, %v1653_v43  ;;  %3653 = vrot.lane.b32.xlu1 %v3428_v32, %s5353_s5  ;;  %v3244_v32 = vshll.u32 %v3151_v23, 16  ;;  %v2872_v39 = vsel %vm6231_vm15, %v2870_v24, %v2871_v26  ;;  %v2557_v43 = vrot.slane %v2555_v8, 4  ;;  %v6542_v8 = vld [vmem:[%s5400_s19 + $0x70] sm:$0xf] }
 0x165   : > { %3991 = vrot.lane.b32.xlu0 %v3873_v37, %s5354_s6  ;;  %v3152_v37 = vld [vmem:[%s5400_s19 + $0x28] sm:$0xf]  ;;  %v2081_v59 = vsel %vm6124_vm11, %v2072_v35, %v6522_v36  ;;  %v2561_v10 = vrot.slane %v6542_v8, 6  ;;  %v3779_v24 = vld [vmem:[%s5400_s19 + $0x24] sm:$0xf] }
 0x166   : > { %v1659_v62 = vpop.permute.xlu1 %1658  ;;  %v3246_v56 = vrot.slane %v3244_v32, 7  ;;  %v2559_v2 = vsel %vm6231_vm15, %v2557_v43, %v2558_v44  ;;  %v2934_v43 = vrot.slane %v6573_v51, 6  ;;  %v6717_v51 = vld [vmem:[%s5400_s19 + $0x80] sm:$0xf] }
 0x167   : > { %1755 = vst.msk [vmem:[#allocation2 + $0x6c] sm:$0xf] %vm1727_vm12, %v1659_v62  ;;  %v1657_v29 = vpop.permute.xlu0 %1656  ;;  %v3251_v62 = vshrl.u32 %v3152_v37, 16  ;;  %v2562_v31 = vsel %vm6231_vm15, %v2560_v9, %v2561_v10 }
 0x168   : > { %1754 = vst.msk [vmem:[#allocation2 + $0x68] sm:$0xf] %vm1727_vm12, %v1657_v29  ;;  %4029 = vrot.lane.b32.xlu1 %v3930_v49, %s5354_s6  ;;  %v2873_v49 = vrot.slane %v2871_v26, 4  ;;  %v3239_v29 = vrot.slane %v6420_v50, 4  ;;  %v2930_v50 = vrot.slane %v2928_v60, 4  ;;  %v3441_v26 = vshrl.u32 %v3171_v19, 16 }
 0x169   : > { %3655 = vrot.lane.b32.xlu0 %v3438_v63, %s5353_s5  ;;  %v3254_v63 = vshll.u32 %v3152_v37, 16  ;;  %v3875_v37 = vrot.slane %v3779_v24, 7 }
 0x16a   : > { %v1663_v12 = vpop.permute.xlu1 %1662  ;;  %v2875_v0 = vsel %vm6231_vm15, %v2873_v49, %v2874_v54  ;;  %v3443_v44 = vrot.slane %v3441_v26, 6 }
 0x16b   : > { %1757 = vst.msk [vmem:[#allocation2 + $0x74] sm:$0xf] %vm1727_vm12, %v1663_v12  ;;  %v1661_v25 = vpop.permute.xlu0 %1660  ;;  %v3253_v12 = vrot.slane %v3251_v62, 6  ;;  %v3256_v13 = vrot.slane %v3254_v63, 7 }
 0x16c   : > { %1756 = vst.msk [vmem:[#allocation2 + $0x70] sm:$0xf] %vm1727_vm12, %v1661_v25  ;;  %2616 = vrot.lane.b32.xlu1 %v2499_v5, %s5350_s24  ;;  %v3247_v5 = vor.u32 %v3246_v56, %v3243_v55 }
 0x16d   : > { %4031 = vrot.lane.b32.xlu0 %v3933_v16, %s5354_s6  ;;  %v2798_v16 = vld [vmem:[%s5400_s19 + $0x74] sm:$0xf] }
 0x16e   : > { %v1667_v33 = vpop.permute.xlu1 %1666  ;;  %v2931_v23 = vrot.slane %v2798_v16, 6  ;;  %v3248_v25 = vsel %vm6270_vm2, %v3239_v29, %v3247_v5  ;;  %v3249_v32 = vrot.slane %v3247_v5, 4  ;;  %v3877_v5 = vrot.slane %v3875_v37, 4 }
 0x16f   : > { %1759 = vst.msk [vmem:[#allocation2 + $0x7c] sm:$0xf] %vm1727_vm12, %v1667_v33  ;;  %v1665_v3 = vpop.permute.xlu0 %1664  ;;  %v6570_v33 = vor.u32 %v3256_v13, %v3253_v12  ;;  %v1796_v12 = vld [vmem:[%s5400_s19 + $0x74] sm:$0xf] }
 0x170   : > { %1758 = vst.msk [vmem:[#allocation2 + $0x78] sm:$0xf] %vm1727_vm12, %v1665_v3  ;;  %2280 = vrot.lane.b32.xlu1 %v2071_v28, %s5349_s23  ;;  %v3444_v28 = vshll.u32 %v3171_v19, 16  ;;  %v2932_v35 = vsel %vm6231_vm15, %v2930_v50, %v2931_v23  ;;  %v3874_v3 = vrot.slane %v3872_v22, 4  ;;  %v6590_v22 = vld [vmem:[%s5400_s19 + $0x28] sm:$0xf] }
 0x171   : > { %2618 = vrot.lane.b32.xlu0 %v2502_v34, %s5350_s24  ;;  %v3172_v34 = vld [vmem:[%s5400_s19 + $0x78] sm:$0xf]  ;;  %v3258_v56 = vsel %vm6270_vm2, %v3249_v32, %v6570_v33  ;;  %v3878_v16 = vrot.slane %v6590_v22, 7  ;;  %v2404_v50 = vld [vmem:[%s5400_s19 + $0x24] sm:$0xf] }
 0x172   : > { %v1671_v58 = vpop.permute.xlu1 %1670  ;;  %v3446_v49 = vrot.slane %v3444_v28, 7  ;;  %v3876_v62 = vsel %vm6294_vm5, %v3874_v3, %v3875_v37  ;;  %v3938_v3 = vrot.slane %v6621_v42, 7  ;;  %v1799_v42 = vld [vmem:[%s5400_s19 + $0x80] sm:$0xf] }
 0x173   : > { %1761 = vst.msk [vmem:[#allocation2 + $0x84] sm:$0xf] %vm1727_vm12, %v1671_v58  ;;  %v1669_v11 = vpop.permute.xlu0 %1668  ;;  %v3451_v58 = vshrl.u32 %v3172_v34, 16  ;;  %v3879_v26 = vsel %vm6294_vm5, %v3877_v5, %v3878_v16 }
 0x174   : > { %1760 = vst.msk [vmem:[#allocation2 + $0x80] sm:$0xf] %vm1727_vm12, %v1669_v11  ;;  %2989 = vrot.lane.b32.xlu1 %v2872_v39, %s5352_s27  ;;  %v2933_v39 = vrot.slane %v2931_v23, 4  ;;  %v3439_v11 = vrot.slane %v6474_v40, 4  ;;  %v3934_v40 = vrot.slane %v3932_v45, 4  ;;  %v2084_v23 = vshrl.u32 %v1796_v12, 16 }
 0x175   : > { %2282 = vrot.lane.b32.xlu0 %v2081_v59, %s5349_s23  ;;  %v3454_v59 = vshll.u32 %v3172_v34, 16  ;;  %v2504_v34 = vrot.slane %v2404_v50, 6 }
 0x176   : > { %v1675_v6 = vpop.permute.xlu1 %1674  ;;  %v2935_v63 = vsel %vm6231_vm15, %v2933_v39, %v2934_v43  ;;  %v2086_v37 = vrot.slane %v2084_v23, 5 }
 0x177   : > { %1763 = vst.msk [vmem:[#allocation2 + $0x8c] sm:$0xf] %vm1727_vm12, %v1675_v6  ;;  %v1673_v21 = vpop.permute.xlu0 %1672  ;;  %v3453_v6 = vrot.slane %v3451_v58, 6  ;;  %v3456_v9 = vrot.slane %v3454_v59, 7 }
 0x178   : > { %1762 = vst.msk [vmem:[#allocation2 + $0x88] sm:$0xf] %vm1727_vm12, %v1673_v21  ;;  %2656 = vrot.lane.b32.xlu1 %v2559_v2, %s5350_s24  ;;  %v3447_v2 = vor.u32 %v3446_v49, %v3443_v44 }
 0x179   : > { %2991 = vrot.lane.b32.xlu0 %v2875_v0, %s5352_s27  ;;  %v3799_v0 = vld [vmem:[%s5400_s19 + $0x74] sm:$0xf] }
 0x17a   : > { %v1679_v30 = vpop.permute.xlu1 %1678  ;;  %v3935_v19 = vrot.slane %v3799_v0, 7  ;;  %v3448_v21 = vsel %vm6270_vm2, %v3439_v11, %v3447_v2  ;;  %v3449_v28 = vrot.slane %v3447_v2, 4  ;;  %v2506_v2 = vrot.slane %v2504_v34, 4 }
 0x17b   : > { %1765 = vst.msk [vmem:[#allocation2 + $0x94] sm:$0xf] %vm1727_vm12, %v1679_v30  ;;  %v1677_v60 = vpop.permute.xlu0 %1676  ;;  %v6618_v30 = vor.u32 %v3456_v9, %v3453_v6  ;;  %v3153_v6 = vld [vmem:[%s5400_s19 + $0x2c] sm:$0xf] }
 0x17c   : > { %1764 = vst.msk [vmem:[#allocation2 + $0x90] sm:$0xf] %vm1727_vm12, %v1677_v60  ;;  %3617 = vrot.lane.b32.xlu1 %v3248_v25, %s5353_s5  ;;  %v2087_v25 = vshll.u32 %v1796_v12, 16  ;;  %v3936_v32 = vsel %vm6294_vm5, %v3934_v40, %v3935_v19  ;;  %v2503_v60 = vrot.slane %v2501_v14, 4  ;;  %v6638_v14 = vld [vmem:[%s5400_s19 + $0x28] sm:$0xf] }
 0x17d   : > { %2658 = vrot.lane.b32.xlu0 %v2562_v31, %s5350_s24  ;;  %v1797_v31 = vld [vmem:[%s5400_s19 + $0x78] sm:$0xf]  ;;  %v3458_v49 = vsel %vm6270_vm2, %v3449_v28, %v6618_v30  ;;  %v2507_v0 = vrot.slane %v6638_v14, 6  ;;  %v2424_v40 = vld [vmem:[%s5400_s19 + $0x74] sm:$0xf] }
 0x17e   : > { %v1683_v55 = vpop.permute.xlu1 %1682  ;;  %v2089_v39 = vrot.slane %v2087_v25, 6  ;;  %v2505_v58 = vsel %vm6231_vm15, %v2503_v60, %v2504_v34  ;;  %v2880_v60 = vrot.slane %v6669_v57, 6 }
 0x17f   : > { %1767 = vst.msk [vmem:[#allocation2 + $0x9c] sm:$0xf] %vm1727_vm12, %v1683_v55  ;;  %v1681_v7 = vpop.permute.xlu0 %1680  ;;  %v2094_v55 = vshrl.u32 %v1797_v31, 16  ;;  %v2508_v23 = vsel %vm6231_vm15, %v2506_v2, %v2507_v0 }
 0x180   : > { %1766 = vst.msk [vmem:[#allocation2 + $0x98] sm:$0xf] %vm1727_vm12, %v1681_v7  ;;  %3029 = vrot.lane.b32.xlu1 %v2932_v35, %s5352_s27  ;;  %v3937_v35 = vrot.slane %v3935_v19, 4  ;;  %v2082_v7 = vrot.slane %v6522_v36, 4  ;;  %v2876_v36 = vrot.slane %v2874_v54, 4  ;;  %v3261_v19 = vshrl.u32 %v3153_v6, 16 }
 0x181   : > { %3619 = vrot.lane.b32.xlu0 %v3258_v56, %s5353_s5  ;;  %v2097_v56 = vshll.u32 %v1797_v31, 16  ;;  %v2564_v31 = vrot.slane %v2424_v40, 6 }
 0x182   : > { %v2233_v29 = vpop.permute.xlu1 %2232  ;;  %v3939_v59 = vsel %vm6294_vm5, %v3937_v35, %v3938_v3  ;;  %v3263_v34 = vrot.slane %v3261_v19, 6 }
 0x183   : > { %2356 = vst.msk [vmem:[#allocation2] sm:$0xf] %vm2355_vm7, %v2233_v29  ;;  %v1685_v13 = vpop.permute.xlu0 %1684  ;;  %v2096_v29 = vrot.slane %v2094_v55, 5  ;;  %v2099_v5 = vrot.slane %v2097_v56, 6 }
 0x184   : > { %1768 = vst.msk [vmem:[#allocation2 + $0xa0] sm:$0xf] %vm1727_vm12, %v1685_v13  ;;  %3993 = vrot.lane.b32.xlu1 %v3876_v62, %s5354_s6  ;;  %v2090_v62 = vor.u32 %v2089_v39, %v2086_v37  ;;  %vm4108_vm12 = vcmask 290048  }
 0x185   : > { %3031 = vrot.lane.b32.xlu0 %v2935_v63, %s5352_s27  ;;  %v2780_v63 = vld [vmem:[%s5400_s19 + $0x2c] sm:$0xf] }
 0x186   : > { %v2237_v24 = vpop.permute.xlu1 %2236  ;;  %v2877_v12 = vrot.slane %v2780_v63, 6  ;;  %v2091_v13 = vsel %vm6124_vm11, %v2082_v7, %v2090_v62  ;;  %v2092_v25 = vrot.slane %v2090_v62, 4  ;;  %v2566_v62 = vrot.slane %v2564_v31, 4 }
 0x187   : > { %2358 = vst.msk [vmem:[#allocation2 + $0x8] sm:$0xf] %vm2355_vm7, %v2237_v24  ;;  %v2235_v45 = vpop.permute.xlu0 %2234  ;;  %v6666_v24 = vor.u32 %v2099_v5, %v2096_v29  ;;  %v3173_v29 = vld [vmem:[%s5400_s19 + $0x7c] sm:$0xf] }
 0x188   : > { %2357 = vst.msk [vmem:[#allocation2 + $0x4] sm:$0xf] %vm2355_vm7, %v2235_v45  ;;  %3657 = vrot.lane.b32.xlu1 %v3448_v21, %s5353_s5  ;;  %v3264_v21 = vshll.u32 %v3153_v6, 16  ;;  %v2878_v28 = vsel %vm6231_vm15, %v2876_v36, %v2877_v12  ;;  %v2563_v45 = vrot.slane %v2561_v10, 4  ;;  %v6686_v10 = vld [vmem:[%s5400_s19 + $0x78] sm:$0xf] }
 0x189   : > { %3995 = vrot.lane.b32.xlu0 %v3879_v26, %s5354_s6  ;;  %v3154_v26 = vld [vmem:[%s5400_s19 + $0x30] sm:$0xf]  ;;  %v2101_v39 = vsel %vm6124_vm11, %v2092_v25, %v6666_v24  ;;  %v2567_v63 = vrot.slane %v6686_v10, 6  ;;  %v3781_v36 = vld [vmem:[%s5400_s19 + $0x2c] sm:$0xf]  ;;  %v2102_v14 = vrot.slane %v6666_v24, 4 }
 0x18a   : > { %v2241_v44 = vpop.permute.xlu1 %2240  ;;  %v3266_v35 = vrot.slane %v3264_v21, 7  ;;  %v2565_v55 = vsel %vm6231_vm15, %v2563_v45, %v2564_v31  ;;  %v2940_v45 = vrot.slane %v6717_v51, 6  ;;  %v3155_v24 = vld [vmem:[%s5400_s19 + $0x34] sm:$0xf] }
 0x18b   : > { %2360 = vst.msk [vmem:[#allocation2 + $0x10] sm:$0xf] %vm2355_vm7, %v2241_v44  ;;  %v2239_v38 = vpop.permute.xlu0 %2238  ;;  %v3271_v44 = vshrl.u32 %v3154_v26, 16  ;;  %v2568_v19 = vsel %vm6231_vm15, %v2566_v62, %v2567_v63 }
 0x18c   : > { %2359 = vst.msk [vmem:[#allocation2 + $0xc] sm:$0xf] %vm2355_vm7, %v2239_v38  ;;  %4033 = vrot.lane.b32.xlu1 %v3936_v32, %s5354_s6  ;;  %v2879_v32 = vrot.slane %v2877_v12, 4  ;;  %v3259_v38 = vrot.slane %v6570_v33, 4  ;;  %v2936_v33 = vrot.slane %v2934_v43, 4  ;;  %v3461_v12 = vshrl.u32 %v3173_v29, 16 }
 0x18d   : > { %3659 = vrot.lane.b32.xlu0 %v3458_v49, %s5353_s5  ;;  %v3274_v49 = vshll.u32 %v3154_v26, 16  ;;  %v3881_v26 = vrot.slane %v3781_v36, 7 }
 0x18e   : > { %v2245_v11 = vpop.permute.xlu1 %2244  ;;  %v2881_v56 = vsel %vm6231_vm15, %v2879_v32, %v2880_v60  ;;  %v3463_v31 = vrot.slane %v3461_v12, 6 }
 0x18f   : > { %2362 = vst.msk [vmem:[#allocation2 + $0x18] sm:$0xf] %vm2355_vm7, %v2245_v11  ;;  %v2243_v9 = vpop.permute.xlu0 %2242  ;;  %v3273_v11 = vrot.slane %v3271_v44, 6  ;;  %v3276_v2 = vrot.slane %v3274_v49, 7 }
 0x190   : > { %2361 = vst.msk [vmem:[#allocation2 + $0x14] sm:$0xf] %vm2355_vm7, %v2243_v9  ;;  %2620 = vrot.lane.b32.xlu1 %v2505_v58, %s5350_s24  ;;  %v3267_v58 = vor.u32 %v3266_v35, %v3263_v34 }
 0x191   : > { %4035 = vrot.lane.b32.xlu0 %v3939_v59, %s5354_s6  ;;  %v2800_v59 = vld [vmem:[%s5400_s19 + $0x7c] sm:$0xf] }
 0x192   : > { %v2249_v50 = vpop.permute.xlu1 %2248  ;;  %v2937_v6 = vrot.slane %v2800_v59, 6  ;;  %v3268_v9 = vsel %vm6270_vm2, %v3259_v38, %v3267_v58  ;;  %v3269_v21 = vrot.slane %v3267_v58, 4  ;;  %v1798_v38 = vld [vmem:[%s5400_s19 + $0x7c] sm:$0xf]  ;;  %v3883_v59 = vrot.slane %v3881_v26, 4 }
 0x193   : > { %2364 = vst.msk [vmem:[#allocation2 + $0x20] sm:$0xf] %vm2355_vm7, %v2249_v50  ;;  %v2247_v54 = vpop.permute.xlu0 %2246  ;;  %v6714_v50 = vor.u32 %v3276_v2, %v3273_v11 }
 0x194   : > { %2363 = vst.msk [vmem:[#allocation2 + $0x1c] sm:$0xf] %vm2355_vm7, %v2247_v54  ;;  %2284 = vrot.lane.b32.xlu1 %v2091_v13, %s5349_s23  ;;  %v3464_v13 = vshll.u32 %v3173_v29, 16  ;;  %v2938_v25 = vsel %vm6231_vm15, %v2936_v33, %v2937_v6  ;;  %v3880_v54 = vrot.slane %v3878_v16, 4  ;;  %v6734_v16 = vld [vmem:[%s5400_s19 + $0x30] sm:$0xf] }
 0x195   : > { %2622 = vrot.lane.b32.xlu0 %v2508_v23, %s5350_s24  ;;  %v3174_v23 = vld [vmem:[%s5400_s19 + $0x80] sm:$0xf]  ;;  %v3278_v35 = vsel %vm6270_vm2, %v3269_v21, %v6714_v50  ;;  %v2107_v33 = vshll.u32 %v1798_v38, 16 }
 0x196   : > { %v2253_v37 = vpop.permute.xlu1 %2252  ;;  %v3466_v32 = vrot.slane %v3464_v13, 7  ;;  %v3882_v44 = vsel %vm6294_vm5, %v3880_v54, %v3881_v26  ;;  %v2114_v26 = vshrl.u32 %v1799_v42, 16 }
 0x197   : > { %2366 = vst.msk [vmem:[#allocation2 + $0x28] sm:$0xf] %vm2355_vm7, %v2253_v37  ;;  %v2251_v8 = vpop.permute.xlu0 %2250  ;;  %v3471_v37 = vshrl.u32 %v3174_v23, 16 }
 0x198   : > { %2365 = vst.msk [vmem:[#allocation2 + $0x24] sm:$0xf] %vm2355_vm7, %v2251_v8  ;;  %2993 = vrot.lane.b32.xlu1 %v2878_v28, %s5352_s27  ;;  %v2939_v28 = vrot.slane %v2937_v6, 4  ;;  %v3459_v8 = vrot.slane %v6618_v30, 4  ;;  %v3940_v30 = vrot.slane %v3938_v3, 4 }
 0x199   : > { %2286 = vrot.lane.b32.xlu0 %v2101_v39, %s5349_s23  ;;  %v3474_v39 = vshll.u32 %v3174_v23, 16  ;;  %v3473_v62 = vrot.slane %v3471_v37, 6  ;;  %v2109_v23 = vrot.slane %v2107_v33, 6  ;;  %v3281_v33 = vshrl.u32 %v3155_v24, 16 }
 0x19a   : > { %v2257_v7 = vpop.permute.xlu1 %2256  ;;  %v2941_v49 = vsel %vm6231_vm15, %v2939_v28, %v2940_v45  ;;  %v2117_v28 = vshll.u32 %v1799_v42, 16 }
 0x19b   : > { %2368 = vst.msk [vmem:[#allocation2 + $0x30] sm:$0xf] %vm2355_vm7, %v2257_v7  ;;  %v2255_v5 = vpop.permute.xlu0 %2254  ;;  %v3884_v7 = vrot.slane %v6734_v16, 7  ;;  %v3476_v11 = vrot.slane %v3474_v39, 7  ;;  %v6782_v39 = vld [vmem:[%s5400_s19 + $0x30] sm:$0xf] }
 0x19c   : > { %2367 = vst.msk [vmem:[#allocation2 + $0x2c] sm:$0xf] %vm2355_vm7, %v2255_v5  ;;  %2660 = vrot.lane.b32.xlu1 %v2565_v55, %s5350_s24  ;;  %v3467_v55 = vor.u32 %v3466_v32, %v3463_v31  ;;  %v2104_v5 = vshrl.u32 %v1798_v38, 16 }
 0x19d   : > { %2995 = vrot.lane.b32.xlu0 %v2881_v56, %s5352_s27  ;;  %v3801_v56 = vld [vmem:[%s5400_s19 + $0x7c] sm:$0xf]  ;;  %v3885_v36 = vsel %vm6294_vm5, %v3883_v59, %v3884_v7  ;;  %v6761_v13 = vor.u32 %v3476_v11, %v3473_v62  ;;  %v2882_v11 = vrot.slane %v2880_v60, 4  ;;  %v6814_v60 = vld [vmem:[%s5400_s19 + $0x38] sm:$0xf] }
 0x19e   : > { %v2261_v40 = vpop.permute.xlu1 %2260  ;;  %v3941_v29 = vrot.slane %v3801_v56, 7  ;;  %v3468_v6 = vsel %vm6270_vm2, %v3459_v8, %v3467_v55  ;;  %v3469_v12 = vrot.slane %v3467_v55, 4  ;;  %v2119_v8 = vrot.slane %v2117_v28, 6  ;;  %v6829_v28 = vld [vmem:[%s5400_s19 + $0x80] sm:$0xf] }
 0x19f   : > { %2370 = vst.msk [vmem:[#allocation2 + $0x38] sm:$0xf] %vm2355_vm7, %v2261_v40  ;;  %v2259_v43 = vpop.permute.xlu0 %2258  ;;  %v2406_v40 = vld [vmem:[%s5400_s19 + $0x2c] sm:$0xf] }
 0x1a0   : > { %2369 = vst.msk [vmem:[#allocation2 + $0x34] sm:$0xf] %vm2355_vm7, %v2259_v43  ;;  %3621 = vrot.lane.b32.xlu1 %v3268_v9, %s5353_s5  ;;  %v3942_v21 = vsel %vm6294_vm5, %v3940_v30, %v3941_v29  ;;  %v2106_v43 = vrot.slane %v2104_v5, 5  ;;  %v2510_v54 = vrot.slane %v2406_v40, 6  ;;  %v3478_v32 = vsel %vm6270_vm2, %v3469_v12, %v6761_v13  ;;  %v2426_v5 = vld [vmem:[%s5400_s19 + $0x7c] sm:$0xf] }
 0x1a1   : > { %2662 = vrot.lane.b32.xlu0 %v2568_v19, %s5350_s24  ;;  %v6767_v19 = vld [vmem:[%s5400_s19 + $0x80] sm:$0xf]  ;;  %v3156_v12 = vld [vmem:[%s5400_s19 + $0x38] sm:$0xf]  ;;  %v2569_v40 = vrot.slane %v2567_v63, 4  ;;  %v2570_v42 = vrot.slane %v2426_v5, 6 }
 0x1a2   : > { %v2265_v34 = vpop.permute.xlu1 %2264  ;;  %v2512_v38 = vrot.slane %v2510_v54, 4  ;;  %v3291_v10 = vshrl.u32 %v3156_v12, 16  ;;  %v3294_v63 = vshll.u32 %v3156_v12, 16  ;;  %v3886_v12 = vrot.slane %v3884_v7, 4 }
 0x1a3   : > { %2372 = vst.msk [vmem:[#allocation2 + $0x40] sm:$0xf] %vm2355_vm7, %v2265_v34  ;;  %v2263_v22 = vpop.permute.xlu0 %2262  ;;  %v3943_v34 = vrot.slane %v3941_v29, 4 }
 0x1a4   : > { %2371 = vst.msk [vmem:[#allocation2 + $0x3c] sm:$0xf] %vm2355_vm7, %v2263_v22  ;;  %3033 = vrot.lane.b32.xlu1 %v2938_v25, %s5352_s27  ;;  %v2509_v25 = vrot.slane %v2507_v0, 4  ;;  %v2110_v0 = vor.u32 %v2109_v23, %v2106_v43  ;;  %v3283_v43 = vrot.slane %v3281_v33, 6 }
 0x1a5   : > { %3623 = vrot.lane.b32.xlu0 %v3278_v35, %s5353_s5  ;;  %v3944_v35 = vrot.slane %v6767_v19, 7  ;;  %v1801_v19 = vld [vmem:[%s5400_s19 + $0x88] sm:$0xf] }
 0x1a6   : > { %v2269_v58 = vpop.permute.xlu1 %2268  ;;  %v2511_v22 = vsel %vm6231_vm15, %v2509_v25, %v2510_v54  ;;  %v2111_v62 = vsel %vm6124_vm11, %v2102_v14, %v2110_v0  ;;  %v2112_v30 = vrot.slane %v2110_v0, 4  ;;  %v2572_v14 = vrot.slane %v2570_v42, 4 }
 0x1a7   : > { %2374 = vst.msk [vmem:[#allocation2 + $0x48] sm:$0xf] %vm2355_vm7, %v2269_v58  ;;  %v2267_v2 = vpop.permute.xlu0 %2266  ;;  %v3945_v56 = vsel %vm6294_vm5, %v3943_v34, %v3944_v35  ;;  %v2513_v58 = vrot.slane %v6782_v39, 6  ;;  %v3279_v34 = vrot.slane %v6714_v50, 4  ;;  %v2573_v0 = vrot.slane %v6829_v28, 6 }
 0x1a8   : > { %2373 = vst.msk [vmem:[#allocation2 + $0x44] sm:$0xf] %vm2355_vm7, %v2267_v2  ;;  %3997 = vrot.lane.b32.xlu1 %v3882_v44, %s5354_s6  ;;  %v2782_v44 = vld [vmem:[%s5400_s19 + $0x34] sm:$0xf]  ;;  %v2942_v50 = vrot.slane %v2940_v45, 4 }
 0x1a9   : > { %3035 = vrot.lane.b32.xlu0 %v2941_v49, %s5352_s27  ;;  %v2116_v49 = vrot.slane %v2114_v26, 5  ;;  %v2883_v2 = vrot.slane %v2782_v44, 6  ;;  %v2886_v26 = vrot.slane %v6814_v60, 6  ;;  %v2574_v5 = vsel %vm6231_vm15, %v2572_v14, %v2573_v0  ;;  %v6861_v45 = vld [vmem:[%s5400_s19 + $0x88] sm:$0xf] }
 0x1aa   : > { %v2609_v9 = vpop.permute.xlu1 %2608  ;;  %v1800_v14 = vld [vmem:[%s5400_s19 + $0x84] sm:$0xf] }
 0x1ab   : > { %2732 = vst.msk [vmem:[#allocation2] sm:$0xf] %vm2731_vm8, %v2609_v9  ;;  %v2271_v3 = vpop.permute.xlu0 %2270  ;;  %v6805_v29 = vor.u32 %v2119_v8, %v2116_v49  ;;  %v2885_v54 = vrot.slane %v2883_v2, 4  ;;  %v3293_v8 = vrot.slane %v3291_v10, 6  ;;  %v6881_v10 = vld [vmem:[%s5400_s19 + $0x38] sm:$0xf] }
 0x1ac   : > { %2375 = vst.msk [vmem:[#allocation2 + $0x4c] sm:$0xf] %vm2355_vm7, %v2271_v3  ;;  %3661 = vrot.lane.b32.xlu1 %v3468_v6, %s5353_s5  ;;  %v3284_v6 = vshll.u32 %v3155_v24, 16  ;;  %v2884_v3 = vsel %vm6231_vm15, %v2882_v11, %v2883_v2 }
 0x1ad   : > { %3999 = vrot.lane.b32.xlu0 %v3885_v36, %s5354_s6  ;;  %v2514_v36 = vsel %vm6231_vm15, %v2512_v38, %v2513_v58  ;;  %v2887_v49 = vsel %vm6231_vm15, %v2885_v54, %v2886_v26  ;;  %v2122_v39 = vrot.slane %v6805_v29, 4 }
 0x1ae   : > { %v2982_v31 = vpop.permute.xlu1 %2981  ;;  %v3286_v23 = vrot.slane %v3284_v6, 7 }
 0x1af   : > { %3105 = vst.msk [vmem:[#allocation2] sm:$0xf] %vm3104_vm9, %v2982_v31  ;;  %v2611_v37 = vpop.permute.xlu0 %2610 }
 0x1b0   : > { %2733 = vst.msk [vmem:[#allocation2 + $0x4] sm:$0xf] %vm2731_vm8, %v2611_v37  ;;  %4037 = vrot.lane.b32.xlu1 %v3942_v21, %s5354_s6  ;;  %v2121_v21 = vsel %vm6124_vm11, %v2112_v30, %v6805_v29  ;;  %v3287_v37 = vor.u32 %v3286_v23, %v3283_v43  ;;  %v3157_v29 = vld [vmem:[%s5400_s19 + $0x3c] sm:$0xf] }
 0x1b1   : > { %3663 = vrot.lane.b32.xlu0 %v3478_v32, %s5353_s5  ;;  %v2571_v32 = vsel %vm6231_vm15, %v2569_v40, %v2570_v42 }
 0x1b2   : > { %v3610_v55 = vpop.permute.xlu1 %3609  ;;  %v3289_v33 = vrot.slane %v3287_v37, 4 }
 0x1b3   : > { %3733 = vst.msk [vmem:[#allocation2] sm:$0xf] %vm3732_vm10, %v3610_v55  ;;  %v2984_v59 = vpop.permute.xlu0 %2983  ;;  %v3296_v55 = vrot.slane %v3294_v63, 7 }
 0x1b4   : > { %3106 = vst.msk [vmem:[#allocation2 + $0x4] sm:$0xf] %vm3104_vm9, %v2984_v59  ;;  %2624 = vrot.lane.b32.xlu1 %v2511_v22, %s5350_s24  ;;  %v2802_v22 = vld [vmem:[%s5400_s19 + $0x84] sm:$0xf]  ;;  %v3288_v59 = vsel %vm6270_vm2, %v3279_v34, %v3287_v37 }
 0x1b5   : > { %4039 = vrot.lane.b32.xlu0 %v3945_v56, %s5354_s6  ;;  %v3175_v56 = vld [vmem:[%s5400_s19 + $0x84] sm:$0xf]  ;;  %v2943_v24 = vrot.slane %v2802_v22, 6  ;;  %v6858_v51 = vor.u32 %v3296_v55, %v3293_v8 }
 0x1b6   : > { %v3986_v9 = vpop.permute.xlu1 %3985  ;;  %v3481_v11 = vshrl.u32 %v3175_v56, 16  ;;  %v3484_v2 = vshll.u32 %v3175_v56, 16  ;;  %v3803_v37 = vld [vmem:[%s5400_s19 + $0x84] sm:$0xf] }
 0x1b7   : > { %4109 = vst.msk [vmem:[#allocation2] sm:$0xf] %vm4108_vm12, %v3986_v9  ;;  %v3612_v57 = vpop.permute.xlu0 %3611  ;;  %v2945_v42 = vrot.slane %v2943_v24, 4 }
 0x1b8   : > { %3734 = vst.msk [vmem:[#allocation2 + $0x4] sm:$0xf] %vm3732_vm10, %v3612_v57  ;;  %2288 = vrot.lane.b32.xlu1 %v2111_v62, %s5349_s23  ;;  %v3783_v62 = vld [vmem:[%s5400_s19 + $0x34] sm:$0xf]  ;;  %v2944_v57 = vsel %vm6231_vm15, %v2942_v50, %v2943_v24  ;;  %v3486_v43 = vrot.slane %v3484_v2, 7  ;;  %v2124_v50 = vshrl.u32 %v1800_v14, 16 }
 0x1b9   : > { %2626 = vrot.lane.b32.xlu0 %v2514_v36, %s5350_s24  ;;  %v3176_v36 = vld [vmem:[%s5400_s19 + $0x88] sm:$0xf]  ;;  %v3887_v40 = vrot.slane %v3783_v62, 7  ;;  %v2127_v24 = vshll.u32 %v1800_v14, 16 }
 0x1ba   : > { %v2613_v25 = vpop.permute.xlu1 %2612  ;;  %v3491_v16 = vshrl.u32 %v3176_v36, 16  ;;  %v3494_v54 = vshll.u32 %v3176_v36, 16 }
 0x1bb   : > { %2734 = vst.msk [vmem:[#allocation2 + $0x8] sm:$0xf] %vm2731_vm8, %v2613_v25  ;;  %v3988_v31 = vpop.permute.xlu0 %3987  ;;  %v3298_v25 = vsel %vm6270_vm2, %v3289_v33, %v6858_v51  ;;  %v3888_v63 = vsel %vm6294_vm5, %v3886_v12, %v3887_v40  ;;  %v6914_v33 = vld [vmem:[%s5400_s19 + $0x88] sm:$0xf]  ;;  %v2129_v36 = vrot.slane %v2127_v24, 6  ;;  %v3301_v24 = vshrl.u32 %v3157_v29, 16 }
 0x1bc   : > { %4110 = vst.msk [vmem:[#allocation2 + $0x4] sm:$0xf] %vm4108_vm12, %v3988_v31  ;;  %2997 = vrot.lane.b32.xlu1 %v2884_v3, %s5352_s27  ;;  %v2946_v3 = vrot.slane %v6861_v45, 6  ;;  %v3493_v8 = vrot.slane %v3491_v16, 6  ;;  %v3496_v55 = vrot.slane %v3494_v54, 7 }
 0x1bd   : > { %2290 = vrot.lane.b32.xlu0 %v2121_v21, %s5349_s23  ;;  %v3483_v21 = vrot.slane %v3481_v11, 6  ;;  %v6929_v54 = vld [vmem:[%s5400_s19 + $0x38] sm:$0xf]  ;;  %v7011_v45 = vld [vmem:[%s5400_s19 + $0x90] sm:$0xf] }
 0x1be   : > { %v2277_v44 = vpop.permute.xlu1 %2276  ;;  %v2947_v31 = vsel %vm6231_vm15, %v2945_v42, %v2946_v3  ;;  %v2137_v42 = vshll.u32 %v1801_v19, 16 }
 0x1bf   : > { %2378 = vst.msk [vmem:[#allocation2 + $0x58] sm:$0xf] %vm2355_vm7, %v2277_v44  ;;  %v2615_v38 = vpop.permute.xlu0 %2614  ;;  %v3487_v34 = vor.u32 %v3486_v43, %v3483_v21  ;;  %v3889_v44 = vrot.slane %v3887_v40, 4  ;;  %v2134_v40 = vshrl.u32 %v1801_v19, 16 }
 0x1c0   : > { %2735 = vst.msk [vmem:[#allocation2 + $0xc] sm:$0xf] %vm2731_vm8, %v2615_v38  ;;  %2664 = vrot.lane.b32.xlu1 %v2571_v32, %s5350_s24  ;;  %v3479_v32 = vrot.slane %v6761_v13, 4  ;;  %v3946_v13 = vrot.slane %v3944_v35, 4  ;;  %v3947_v38 = vrot.slane %v3803_v37, 7 }
 0x1c1   : > { %2999 = vrot.lane.b32.xlu0 %v2887_v49, %s5352_s27  ;;  %v3890_v49 = vrot.slane %v6881_v10, 7  ;;  %v3489_v2 = vrot.slane %v3487_v34, 4 }
 0x1c2   : > { %v2986_v30 = vpop.permute.xlu1 %2985 }
 0x1c3   : > { %3107 = vst.msk [vmem:[#allocation2 + $0x8] sm:$0xf] %vm3104_vm9, %v2986_v30  ;;  %v2279_v6 = vpop.permute.xlu0 %2278  ;;  %v5301_v9 = vld [vmem:[#allocation2] sm:$0xff]   ;;  %v3891_v11 = vsel %vm6294_vm5, %v3889_v44, %v3890_v49  ;;  %v6908_v30 = vor.u32 %v3496_v55, %v3493_v8  ;;  %v2888_v55 = vrot.slane %v2886_v26, 4 }
 0x1c4   : > { %2379 = vst.msk [vmem:[#allocation2 + $0x5c] sm:$0xf] %vm2355_vm7, %v2279_v6  ;;  %3625 = vrot.lane.b32.xlu1 %v3288_v59, %s5353_s5  ;;  %5173 = vmatmul.mubr.msk.bf16.vlgmr.msra.gmra.mrb[0].mxu0 %vm4321_vm13, %v5301_v9  ;;  %v3488_v59 = vsel %vm6270_vm2, %v3479_v32, %v3487_v34  ;;  %v3948_v6 = vsel %vm6294_vm5, %v3946_v13, %v3947_v38  ;;  %v2126_v9 = vrot.slane %v2124_v50, 5  ;;  %v2139_v32 = vrot.slane %v2137_v42, 6  ;;  %v2428_v50 = vld [vmem:[%s5400_s19 + $0x84] sm:$0xf] }
 0x1c5   : > { %2666 = vrot.lane.b32.xlu0 %v2574_v5, %s5350_s24  ;;  %5176 = vmatprep.mubr.msk.bf16.mxu0 %vm5355_vm6, %v5351_v53  ;;  %v2408_v5 = vld [vmem:[%s5400_s19 + $0x34] sm:$0xf]  ;;  %v3498_v43 = vsel %vm6270_vm2, %v3489_v2, %v6908_v30  ;;  %v6961_v26 = vld [vmem:[%s5400_s19 + $0x40] sm:$0xf]  ;;  %v2576_v19 = vrot.slane %v2428_v50, 6 }
 0x1c6   : > { %v2653_v23 = vpop.permute.xlu1 %2652  ;;  %v2516_v12 = vrot.slane %v2408_v5, 6  ;;  %v3158_v2 = vld [vmem:[%s5400_s19 + $0x40] sm:$0xf]  ;;  %v2575_v5 = vrot.slane %v2573_v0, 4  ;;  %v6976_v42 = vld [vmem:[%s5400_s19 + $0x88] sm:$0xf] }
 0x1c7   : > { %2754 = vst.msk [vmem:[#allocation2 + $0x58] sm:$0xf] %vm2731_vm8, %v2653_v23  ;;  %v2988_v7 = vpop.permute.xlu0 %2987  ;;  %v3949_v23 = vrot.slane %v3947_v38, 4  ;;  %v3311_v28 = vshrl.u32 %v3158_v2, 16  ;;  %v3314_v0 = vshll.u32 %v3158_v2, 16 }
 0x1c8   : > { %3108 = vst.msk [vmem:[#allocation2 + $0xc] sm:$0xf] %vm3104_vm9, %v2988_v7  ;;  %3037 = vrot.lane.b32.xlu1 %v2944_v57, %s5352_s27  ;;  %v2515_v57 = vrot.slane %v2513_v58, 4  ;;  %v2130_v58 = vor.u32 %v2129_v36, %v2126_v9  ;;  %v2518_v14 = vrot.slane %v2516_v12, 4  ;;  %v3303_v9 = vrot.slane %v3301_v24, 6 }
 0x1c9   : > { %3627 = vrot.lane.b32.xlu0 %v3298_v25, %s5353_s5  ;;  %v3950_v25 = vrot.slane %v6914_v33, 7  ;;  %v1803_v33 = vld [vmem:[%s5400_s19 + $0x90] sm:$0xf] }
 0x1ca   : > { %v3614_v22 = vpop.permute.xlu1 %3613  ;;  %v2517_v7 = vsel %vm6231_vm15, %v2515_v57, %v2516_v12  ;;  %v2131_v8 = vsel %vm6124_vm11, %v2122_v39, %v2130_v58  ;;  %v2132_v13 = vrot.slane %v2130_v58, 4  ;;  %v2578_v58 = vrot.slane %v2576_v19, 4 }
 0x1cb   : > { %3735 = vst.msk [vmem:[#allocation2 + $0x8] sm:$0xf] %vm3732_vm10, %v3614_v22  ;;  %v2655_v56 = vpop.permute.xlu0 %2654  ;;  %v3951_v37 = vsel %vm6294_vm5, %v3949_v23, %v3950_v25  ;;  %v2519_v22 = vrot.slane %v6929_v54, 6  ;;  %v2577_v23 = vsel %vm6231_vm15, %v2575_v5, %v2576_v19  ;;  %v3892_v5 = vrot.slane %v3890_v49, 4 }
 0x1cc   : > { %2755 = vst.msk [vmem:[#allocation2 + $0x5c] sm:$0xf] %vm2731_vm8, %v2655_v56  ;;  %4001 = vrot.lane.b32.xlu1 %v3888_v63, %s5354_s6  ;;  %v2784_v63 = vld [vmem:[%s5400_s19 + $0x3c] sm:$0xf] }
 0x1cd   : > { %3039 = vrot.lane.b32.xlu0 %v2947_v31, %s5352_s27  ;;  %v2136_v31 = vrot.slane %v2134_v40, 5  ;;  %v2889_v56 = vrot.slane %v2784_v63, 6  ;;  %v2892_v40 = vrot.slane %v6961_v26, 6  ;;  %v2804_v63 = vld [vmem:[%s5400_s19 + $0x8c] sm:$0xf] }
 0x1ce   : > { %v3026_v62 = vpop.permute.xlu1 %3025 }
 0x1cf   : > { %3127 = vst.msk [vmem:[#allocation2 + $0x58] sm:$0xf] %vm3104_vm9, %v3026_v62  ;;  %v3616_v35 = vpop.permute.xlu0 %3615  ;;  %v6952_v38 = vor.u32 %v2139_v32, %v2136_v31  ;;  %v2891_v12 = vrot.slane %v2889_v56, 4 }
 0x1d0   : > { %3736 = vst.msk [vmem:[#allocation2 + $0xc] sm:$0xf] %vm3732_vm10, %v3616_v35  ;;  %3665 = vrot.lane.b32.xlu1 %v3488_v59, %s5353_s5  ;;  %v3304_v59 = vshll.u32 %v3157_v29, 16  ;;  %v2890_v35 = vsel %vm6231_vm15, %v2888_v55, %v2889_v56  ;;  %v2948_v29 = vrot.slane %v2946_v3, 4  ;;  %v3785_v55 = vld [vmem:[%s5400_s19 + $0x3c] sm:$0xf] }
 0x1d1   : > { %4003 = vrot.lane.b32.xlu0 %v3891_v11, %s5354_s6  ;;  %v2520_v11 = vsel %vm6231_vm15, %v2518_v14, %v2519_v22  ;;  %v2893_v32 = vsel %vm6231_vm15, %v2891_v12, %v2892_v40  ;;  %v3177_v14 = vld [vmem:[%s5400_s19 + $0x8c] sm:$0xf]  ;;  %v3893_v19 = vrot.slane %v3785_v55, 7  ;;  %v2142_v54 = vrot.slane %v6952_v38, 4 }
 0x1d2   : > { %v3990_v21 = vpop.permute.xlu1 %3989  ;;  %v3306_v36 = vrot.slane %v3304_v59, 7  ;;  %v3501_v56 = vshrl.u32 %v3177_v14, 16 }
 0x1d3   : > { %4111 = vst.msk [vmem:[#allocation2 + $0x8] sm:$0xf] %vm4108_vm12, %v3990_v21  ;;  %v3028_v16 = vpop.permute.xlu0 %3027 }
 0x1d4   : > { %3128 = vst.msk [vmem:[#allocation2 + $0x5c] sm:$0xf] %vm3104_vm9, %v3028_v16  ;;  %4041 = vrot.lane.b32.xlu1 %v3948_v6, %s5354_s6  ;;  %v2141_v6 = vsel %vm6124_vm11, %v2132_v13, %v6952_v38  ;;  %v3299_v16 = vrot.slane %v6858_v51, 4  ;;  %v3307_v39 = vor.u32 %v3306_v36, %v3303_v9  ;;  %v3504_v13 = vshll.u32 %v3177_v14, 16  ;;  %v3159_v38 = vld [vmem:[%s5400_s19 + $0x44] sm:$0xf] }
 0x1d5   : > { %3667 = vrot.lane.b32.xlu0 %v3498_v43, %s5353_s5  ;;  %v3503_v9 = vrot.slane %v3501_v56, 6 }
 0x1d6   : > { %v3654_v34 = vpop.permute.xlu1 %3653  ;;  %v3309_v59 = vrot.slane %v3307_v39, 4  ;;  %v3506_v36 = vrot.slane %v3504_v13, 7 }
 0x1d7   : > { %3755 = vst.msk [vmem:[#allocation2 + $0x58] sm:$0xf] %vm3732_vm10, %v3654_v34  ;;  %v3992_v44 = vpop.permute.xlu0 %3991  ;;  %v3313_v34 = vrot.slane %v3311_v28, 6 }
 0x1d8   : > { %4112 = vst.msk [vmem:[#allocation2 + $0xc] sm:$0xf] %vm4108_vm12, %v3992_v44  ;;  %2628 = vrot.lane.b32.xlu1 %v2517_v7, %s5350_s24  ;;  %v2579_v7 = vrot.slane %v6976_v42, 6  ;;  %v2949_v44 = vrot.slane %v2804_v63, 6 }
 0x1d9   : > { %4043 = vrot.lane.b32.xlu0 %v3951_v37, %s5354_s6  ;;  %v3316_v37 = vrot.slane %v3314_v0, 7  ;;  %v7031_v0 = vld [vmem:[%s5400_s19 + $0x40] sm:$0xf] }
 0x1da   : > { %v4030_v62 = vpop.permute.xlu1 %4029  ;;  %v2580_v24 = vsel %vm6231_vm15, %v2578_v58, %v2579_v7  ;;  %v2950_v2 = vsel %vm6231_vm15, %v2948_v29, %v2949_v44  ;;  %v1802_v58 = vld [vmem:[%s5400_s19 + $0x8c] sm:$0xf] }
 0x1db   : > { %4131 = vst.msk [vmem:[#allocation2 + $0x58] sm:$0xf] %vm4108_vm12, %v4030_v62  ;;  %v3656_v60 = vpop.permute.xlu0 %3655  ;;  %v7008_v62 = vor.u32 %v3316_v37, %v3313_v34  ;;  %v2144_v29 = vshrl.u32 %v1802_v58, 16 }
 0x1dc   : > { %3756 = vst.msk [vmem:[#allocation2 + $0x5c] sm:$0xf] %vm3732_vm10, %v3656_v60  ;;  %2292 = vrot.lane.b32.xlu1 %v2131_v8, %s5349_s23  ;;  %v3308_v8 = vsel %vm6270_vm2, %v3299_v16, %v3307_v39  ;;  %v3178_v60 = vld [vmem:[%s5400_s19 + $0x90] sm:$0xf]  ;;  %v3507_v16 = vor.u32 %v3506_v36, %v3503_v9  ;;  %v3805_v39 = vld [vmem:[%s5400_s19 + $0x8c] sm:$0xf] }
 0x1dd   : > { %2630 = vrot.lane.b32.xlu0 %v2520_v11, %s5350_s24  ;;  %v3318_v12 = vsel %vm6270_vm2, %v3309_v59, %v7008_v62  ;;  %v3511_v10 = vshrl.u32 %v3178_v60, 16  ;;  %v3514_v28 = vshll.u32 %v3178_v60, 16  ;;  %v7064_v59 = vld [vmem:[%s5400_s19 + $0x90] sm:$0xf] }
 0x1de   : > { %v2617_v57 = vpop.permute.xlu1 %2616  ;;  %v3509_v13 = vrot.slane %v3507_v16, 4 }
 0x1df   : > { %2736 = vst.msk [vmem:[#allocation2 + $0x10] sm:$0xf] %vm2731_vm8, %v2617_v57  ;;  %v4032_v21 = vpop.permute.xlu0 %4031  ;;  %v5302_v43 = vld [vmem:[#allocation2 + $0x8] sm:$0xff]   ;;  %v3513_v34 = vrot.slane %v3511_v10, 6  ;;  %v3516_v37 = vrot.slane %v3514_v28, 7 }
 0x1e0   : > { %4132 = vst.msk [vmem:[#allocation2 + $0x5c] sm:$0xf] %vm4108_vm12, %v4032_v21  ;;  %3001 = vrot.lane.b32.xlu1 %v2890_v35, %s5352_s27  ;;  %5177 = vmatmul.mubr.msk.bf16.gmra.mrb[4].mxu0 %vm4321_vm13, %v5302_v43  ;;  %v2951_v35 = vrot.slane %v2949_v44, 4  ;;  %v3894_v21 = vsel %vm6294_vm5, %v3892_v5, %v3893_v19  ;;  %v2147_v44 = vshll.u32 %v1802_v58, 16  ;;  %v7079_v28 = vld [vmem:[%s5400_s19 + $0x40] sm:$0xf] }
 0x1e1   : > { %2294 = vrot.lane.b32.xlu0 %v2141_v6, %s5349_s23  ;;  %5180 = vmatprep.mubr.msk.bf16.mxu0 %vm5355_vm6, %v5351_v53  ;;  %v2952_v6 = vrot.slane %v7011_v45, 6  ;;  %v7161_v45 = vld [vmem:[%s5400_s19 + $0x98] sm:$0xf] }
 0x1e2   : > { %v2281_v31 = vpop.permute.xlu1 %2280  ;;  %v2149_v60 = vrot.slane %v2147_v44, 6  ;;  %v3321_v44 = vshrl.u32 %v3159_v38, 16 }
 0x1e3   : > { %2380 = vst.msk [vmem:[#allocation2 + $0x60] sm:$0xf] %vm2355_vm7, %v2281_v31  ;;  %v2619_v51 = vpop.permute.xlu0 %2618  ;;  %v2953_v43 = vsel %vm6231_vm15, %v2951_v35, %v2952_v6  ;;  %v3895_v31 = vrot.slane %v3893_v19, 4  ;;  %v2154_v19 = vshrl.u32 %v1803_v33, 16  ;;  %v2157_v35 = vshll.u32 %v1803_v33, 16 }
 0x1e4   : > { %2737 = vst.msk [vmem:[#allocation2 + $0x14] sm:$0xf] %vm2731_vm8, %v2619_v51  ;;  %2668 = vrot.lane.b32.xlu1 %v2577_v23, %s5350_s24  ;;  %v3499_v23 = vrot.slane %v6908_v30, 4  ;;  %v3952_v30 = vrot.slane %v3950_v25, 4  ;;  %v3953_v51 = vrot.slane %v3805_v39, 7 }
 0x1e5   : > { %3003 = vrot.lane.b32.xlu0 %v2893_v32, %s5352_s27  ;;  %v3896_v32 = vrot.slane %v7031_v0, 7 }
 0x1e6   : > { %v2990_v50 = vpop.permute.xlu1 %2989 }
 0x1e7   : > { %3109 = vst.msk [vmem:[#allocation2 + $0x10] sm:$0xf] %vm3104_vm9, %v2990_v50  ;;  %v2283_v3 = vpop.permute.xlu0 %2282  ;;  %v5303_v11 = vld [vmem:[#allocation2 + $0x58] sm:$0xff]   ;;  %v3897_v56 = vsel %vm6294_vm5, %v3895_v31, %v3896_v32  ;;  %v7058_v50 = vor.u32 %v3516_v37, %v3513_v34  ;;  %v2894_v37 = vrot.slane %v2892_v40, 4  ;;  %v7111_v40 = vld [vmem:[%s5400_s19 + $0x48] sm:$0xf] }
 0x1e8   : > { %2381 = vst.msk [vmem:[#allocation2 + $0x64] sm:$0xf] %vm2355_vm7, %v2283_v3  ;;  %3629 = vrot.lane.b32.xlu1 %v3308_v8, %s5353_s5  ;;  %5217 = vmatmul.mubr.msk.bf16.vlgmr.msra.gmra.mrb[0].mxu1 %vm4321_vm13, %v5303_v11  ;;  %v3508_v8 = vsel %vm6270_vm2, %v3499_v23, %v3507_v16  ;;  %v3954_v3 = vsel %vm6294_vm5, %v3952_v30, %v3953_v51  ;;  %v2146_v11 = vrot.slane %v2144_v29, 5  ;;  %v2159_v23 = vrot.slane %v2157_v35, 6  ;;  %v2430_v29 = vld [vmem:[%s5400_s19 + $0x8c] sm:$0xf] }
 0x1e9   : > { %2670 = vrot.lane.b32.xlu0 %v2580_v24, %s5350_s24  ;;  %5220 = vmatprep.mubr.msk.bf16.mxu1 %vm5355_vm6, %v5351_v53  ;;  %v2410_v24 = vld [vmem:[%s5400_s19 + $0x3c] sm:$0xf]  ;;  %v3518_v36 = vsel %vm6270_vm2, %v3509_v13, %v7058_v50  ;;  %v3160_v13 = vld [vmem:[%s5400_s19 + $0x48] sm:$0xf]  ;;  %v2582_v33 = vrot.slane %v2430_v29, 6 }
 0x1ea   : > { %v2657_v57 = vpop.permute.xlu1 %2656  ;;  %v2522_v5 = vrot.slane %v2410_v24, 6  ;;  %v2581_v24 = vrot.slane %v2579_v7, 4  ;;  %v7126_v35 = vld [vmem:[%s5400_s19 + $0x90] sm:$0xf]  ;;  %v3331_v42 = vshrl.u32 %v3160_v13, 16  ;;  %v3334_v7 = vshll.u32 %v3160_v13, 16 }
 0x1eb   : > { %2756 = vst.msk [vmem:[#allocation2 + $0x60] sm:$0xf] %vm2731_vm8, %v2657_v57  ;;  %v2992_v49 = vpop.permute.xlu0 %2991  ;;  %v3955_v57 = vrot.slane %v3953_v51, 4 }
 0x1ec   : > { %3110 = vst.msk [vmem:[#allocation2 + $0x14] sm:$0xf] %vm3104_vm9, %v2992_v49  ;;  %3041 = vrot.lane.b32.xlu1 %v2950_v2, %s5352_s27  ;;  %v2521_v2 = vrot.slane %v2519_v22, 4  ;;  %v2150_v22 = vor.u32 %v2149_v60, %v2146_v11  ;;  %v2524_v58 = vrot.slane %v2522_v5, 4  ;;  %v3323_v11 = vrot.slane %v3321_v44, 6 }
 0x1ed   : > { %3631 = vrot.lane.b32.xlu0 %v3318_v12, %s5353_s5  ;;  %v3956_v12 = vrot.slane %v7064_v59, 7  ;;  %v1805_v59 = vld [vmem:[%s5400_s19 + $0x98] sm:$0xf] }
 0x1ee   : > { %v3618_v63 = vpop.permute.xlu1 %3617  ;;  %v2523_v49 = vsel %vm6231_vm15, %v2521_v2, %v2522_v5  ;;  %v2151_v34 = vsel %vm6124_vm11, %v2142_v54, %v2150_v22  ;;  %v2152_v30 = vrot.slane %v2150_v22, 4  ;;  %v2584_v22 = vrot.slane %v2582_v33, 4 }
 0x1ef   : > { %3737 = vst.msk [vmem:[#allocation2 + $0x10] sm:$0xf] %vm3732_vm10, %v3618_v63  ;;  %v2659_v14 = vpop.permute.xlu0 %2658  ;;  %v3957_v39 = vsel %vm6294_vm5, %v3955_v57, %v3956_v12  ;;  %v2525_v63 = vrot.slane %v7079_v28, 6  ;;  %v2583_v57 = vsel %vm6231_vm15, %v2581_v24, %v2582_v33  ;;  %v3898_v24 = vrot.slane %v3896_v32, 4 }
 0x1f0   : > { %2757 = vst.msk [vmem:[#allocation2 + $0x64] sm:$0xf] %vm2731_vm8, %v2659_v14  ;;  %4005 = vrot.lane.b32.xlu1 %v3894_v21, %s5354_s6  ;;  %v2786_v21 = vld [vmem:[%s5400_s19 + $0x44] sm:$0xf] }
 0x1f1   : > { %3043 = vrot.lane.b32.xlu0 %v2953_v43, %s5352_s27  ;;  %v2156_v43 = vrot.slane %v2154_v19, 5  ;;  %v2895_v14 = vrot.slane %v2786_v21, 6  ;;  %v2898_v19 = vrot.slane %v7111_v40, 6  ;;  %v2806_v21 = vld [vmem:[%s5400_s19 + $0x94] sm:$0xf] }
 0x1f2   : > { %v3030_v55 = vpop.permute.xlu1 %3029 }
 0x1f3   : > { %3129 = vst.msk [vmem:[#allocation2 + $0x60] sm:$0xf] %vm3104_vm9, %v3030_v55  ;;  %v3620_v25 = vpop.permute.xlu0 %3619  ;;  %v7102_v51 = vor.u32 %v2159_v23, %v2156_v43  ;;  %v2897_v5 = vrot.slane %v2895_v14, 4 }
 0x1f4   : > { %3738 = vst.msk [vmem:[#allocation2 + $0x14] sm:$0xf] %vm3732_vm10, %v3620_v25  ;;  %3669 = vrot.lane.b32.xlu1 %v3508_v8, %s5353_s5  ;;  %v3324_v8 = vshll.u32 %v3159_v38, 16  ;;  %v2896_v25 = vsel %vm6231_vm15, %v2894_v37, %v2895_v14  ;;  %v2954_v38 = vrot.slane %v2952_v6, 4  ;;  %v3787_v37 = vld [vmem:[%s5400_s19 + $0x44] sm:$0xf] }
 0x1f5   : > { %4007 = vrot.lane.b32.xlu0 %v3897_v56, %s5354_s6  ;;  %v2526_v56 = vsel %vm6231_vm15, %v2524_v58, %v2525_v63  ;;  %v2899_v23 = vsel %vm6231_vm15, %v2897_v5, %v2898_v19  ;;  %v3179_v58 = vld [vmem:[%s5400_s19 + $0x94] sm:$0xf]  ;;  %v3899_v33 = vrot.slane %v3787_v37, 7  ;;  %v2162_v28 = vrot.slane %v7102_v51, 4 }
 0x1f6   : > { %v3994_v9 = vpop.permute.xlu1 %3993  ;;  %v3326_v60 = vrot.slane %v3324_v8, 7  ;;  %v3521_v14 = vshrl.u32 %v3179_v58, 16 }
 0x1f7   : > { %4113 = vst.msk [vmem:[#allocation2 + $0x10] sm:$0xf] %vm4108_vm12, %v3994_v9  ;;  %v3032_v10 = vpop.permute.xlu0 %3031 }
 0x1f8   : > { %3130 = vst.msk [vmem:[#allocation2 + $0x64] sm:$0xf] %vm3104_vm9, %v3032_v10  ;;  %4045 = vrot.lane.b32.xlu1 %v3954_v3, %s5354_s6  ;;  %v2161_v3 = vsel %vm6124_vm11, %v2152_v30, %v7102_v51  ;;  %v3319_v10 = vrot.slane %v7008_v62, 4  ;;  %v3327_v54 = vor.u32 %v3326_v60, %v3323_v11  ;;  %v3524_v30 = vshll.u32 %v3179_v58, 16  ;;  %v3161_v51 = vld [vmem:[%s5400_s19 + $0x4c] sm:$0xf] }
 0x1f9   : > { %3671 = vrot.lane.b32.xlu0 %v3518_v36, %s5353_s5  ;;  %v3523_v11 = vrot.slane %v3521_v14, 6 }
 0x1fa   : > { %v3658_v16 = vpop.permute.xlu1 %3657  ;;  %v3329_v8 = vrot.slane %v3327_v54, 4  ;;  %v3526_v60 = vrot.slane %v3524_v30, 7 }
 0x1fb   : > { %3757 = vst.msk [vmem:[#allocation2 + $0x60] sm:$0xf] %vm3732_vm10, %v3658_v16  ;;  %v3996_v31 = vpop.permute.xlu0 %3995  ;;  %v3333_v16 = vrot.slane %v3331_v42, 6 }
 0x1fc   : > { %4114 = vst.msk [vmem:[#allocation2 + $0x14] sm:$0xf] %vm4108_vm12, %v3996_v31  ;;  %2632 = vrot.lane.b32.xlu1 %v2523_v49, %s5350_s24  ;;  %v2585_v49 = vrot.slane %v7126_v35, 6  ;;  %v2955_v31 = vrot.slane %v2806_v21, 6 }
 0x1fd   : > { %4047 = vrot.lane.b32.xlu0 %v3957_v39, %s5354_s6  ;;  %v3336_v39 = vrot.slane %v3334_v7, 7  ;;  %v7181_v7 = vld [vmem:[%s5400_s19 + $0x48] sm:$0xf] }
 0x1fe   : > { %v4034_v55 = vpop.permute.xlu1 %4033  ;;  %v2586_v44 = vsel %vm6231_vm15, %v2584_v22, %v2585_v49  ;;  %v2956_v13 = vsel %vm6231_vm15, %v2954_v38, %v2955_v31  ;;  %v1804_v22 = vld [vmem:[%s5400_s19 + $0x94] sm:$0xf] }
 0x1ff   : > { %4133 = vst.msk [vmem:[#allocation2 + $0x60] sm:$0xf] %vm4108_vm12, %v4034_v55  ;;  %v3660_v26 = vpop.permute.xlu0 %3659  ;;  %v7158_v55 = vor.u32 %v3336_v39, %v3333_v16  ;;  %v2164_v38 = vshrl.u32 %v1804_v22, 16 }
 0x200   : > { %3758 = vst.msk [vmem:[#allocation2 + $0x64] sm:$0xf] %vm3732_vm10, %v3660_v26  ;;  %2296 = vrot.lane.b32.xlu1 %v2151_v34, %s5349_s23  ;;  %v3328_v34 = vsel %vm6270_vm2, %v3319_v10, %v3327_v54  ;;  %v3180_v26 = vld [vmem:[%s5400_s19 + $0x98] sm:$0xf]  ;;  %v3527_v10 = vor.u32 %v3526_v60, %v3523_v11  ;;  %v3807_v54 = vld [vmem:[%s5400_s19 + $0x94] sm:$0xf] }
 0x201   : > { %2634 = vrot.lane.b32.xlu0 %v2526_v56, %s5350_s24  ;;  %v3338_v5 = vsel %vm6270_vm2, %v3329_v8, %v7158_v55  ;;  %v3531_v0 = vshrl.u32 %v3180_v26, 16  ;;  %v3534_v42 = vshll.u32 %v3180_v26, 16  ;;  %v7214_v8 = vld [vmem:[%s5400_s19 + $0x98] sm:$0xf] }
 0x202   : > { %v2621_v2 = vpop.permute.xlu1 %2620  ;;  %v3529_v30 = vrot.slane %v3527_v10, 4 }
 0x203   : > { %2738 = vst.msk [vmem:[#allocation2 + $0x18] sm:$0xf] %vm2731_vm8, %v2621_v2  ;;  %v4036_v9 = vpop.permute.xlu0 %4035  ;;  %v5304_v36 = vld [vmem:[#allocation2 + $0x10] sm:$0xff]   ;;  %v3533_v16 = vrot.slane %v3531_v0, 6  ;;  %v3536_v39 = vrot.slane %v3534_v42, 7 }
 0x204   : > { %4134 = vst.msk [vmem:[#allocation2 + $0x64] sm:$0xf] %vm4108_vm12, %v4036_v9  ;;  %3005 = vrot.lane.b32.xlu1 %v2896_v25, %s5352_s27  ;;  %5181 = vmatmul.mubr.msk.bf16.gmra.mrb[8].mxu0 %vm4321_vm13, %v5304_v36  ;;  %v2957_v25 = vrot.slane %v2955_v31, 4  ;;  %v3900_v9 = vsel %vm6294_vm5, %v3898_v24, %v3899_v33  ;;  %v2167_v31 = vshll.u32 %v1804_v22, 16  ;;  %v7229_v42 = vld [vmem:[%s5400_s19 + $0x48] sm:$0xf] }
 0x205   : > { %2298 = vrot.lane.b32.xlu0 %v2161_v3, %s5349_s23  ;;  %5184 = vmatprep.mubr.msk.bf16.mxu0 %vm5355_vm6, %v5351_v53  ;;  %v2958_v3 = vrot.slane %v7161_v45, 6  ;;  %v7311_v45 = vld [vmem:[%s5400_s19 + $0xa0] sm:$0xf] }
 0x206   : > { %v2285_v43 = vpop.permute.xlu1 %2284  ;;  %v2169_v26 = vrot.slane %v2167_v31, 6  ;;  %v3341_v31 = vshrl.u32 %v3161_v51, 16 }
 0x207   : > { %2382 = vst.msk [vmem:[#allocation2 + $0x68] sm:$0xf] %vm2355_vm7, %v2285_v43  ;;  %v2623_v62 = vpop.permute.xlu0 %2622  ;;  %v2959_v36 = vsel %vm6231_vm15, %v2957_v25, %v2958_v3  ;;  %v3901_v43 = vrot.slane %v3899_v33, 4  ;;  %v2174_v33 = vshrl.u32 %v1805_v59, 16  ;;  %v2177_v25 = vshll.u32 %v1805_v59, 16 }
 0x208   : > { %2739 = vst.msk [vmem:[#allocation2 + $0x1c] sm:$0xf] %vm2731_vm8, %v2623_v62  ;;  %2672 = vrot.lane.b32.xlu1 %v2583_v57, %s5350_s24  ;;  %v3519_v57 = vrot.slane %v7058_v50, 4  ;;  %v3958_v50 = vrot.slane %v3956_v12, 4  ;;  %v3959_v62 = vrot.slane %v3807_v54, 7 }
 0x209   : > { %3007 = vrot.lane.b32.xlu0 %v2899_v23, %s5352_s27  ;;  %v3902_v23 = vrot.slane %v7181_v7, 7 }
 0x20a   : > { %v2994_v29 = vpop.permute.xlu1 %2993 }
 0x20b   : > { %3111 = vst.msk [vmem:[#allocation2 + $0x18] sm:$0xf] %vm3104_vm9, %v2994_v29  ;;  %v2287_v6 = vpop.permute.xlu0 %2286  ;;  %v5305_v56 = vld [vmem:[#allocation2 + $0x60] sm:$0xff]   ;;  %v3903_v14 = vsel %vm6294_vm5, %v3901_v43, %v3902_v23  ;;  %v7208_v29 = vor.u32 %v3536_v39, %v3533_v16  ;;  %v2900_v39 = vrot.slane %v2898_v19, 4  ;;  %v7261_v19 = vld [vmem:[%s5400_s19 + $0x50] sm:$0xf] }
 0x20c   : > { %2383 = vst.msk [vmem:[#allocation2 + $0x6c] sm:$0xf] %vm2355_vm7, %v2287_v6  ;;  %3633 = vrot.lane.b32.xlu1 %v3328_v34, %s5353_s5  ;;  %5221 = vmatmul.mubr.msk.bf16.gmra.mrb[4].mxu1 %vm4321_vm13, %v5305_v56  ;;  %v3528_v34 = vsel %vm6270_vm2, %v3519_v57, %v3527_v10  ;;  %v3960_v6 = vsel %vm6294_vm5, %v3958_v50, %v3959_v62  ;;  %v2166_v56 = vrot.slane %v2164_v38, 5  ;;  %v2179_v57 = vrot.slane %v2177_v25, 6  ;;  %v2432_v38 = vld [vmem:[%s5400_s19 + $0x94] sm:$0xf] }
 0x20d   : > { %2674 = vrot.lane.b32.xlu0 %v2586_v44, %s5350_s24  ;;  %5224 = vmatprep.mubr.msk.bf16.mxu1 %vm5355_vm6, %v5351_v53  ;;  %v2412_v44 = vld [vmem:[%s5400_s19 + $0x44] sm:$0xf]  ;;  %v3538_v60 = vsel %vm6270_vm2, %v3529_v30, %v7208_v29  ;;  %v3162_v30 = vld [vmem:[%s5400_s19 + $0x50] sm:$0xf]  ;;  %v2588_v59 = vrot.slane %v2432_v38, 6 }
 0x20e   : > { %v2661_v2 = vpop.permute.xlu1 %2660  ;;  %v2528_v24 = vrot.slane %v2412_v44, 6  ;;  %v2587_v44 = vrot.slane %v2585_v49, 4  ;;  %v7276_v25 = vld [vmem:[%s5400_s19 + $0x98] sm:$0xf]  ;;  %v3351_v35 = vshrl.u32 %v3162_v30, 16  ;;  %v3354_v49 = vshll.u32 %v3162_v30, 16 }
 0x20f   : > { %2758 = vst.msk [vmem:[#allocation2 + $0x68] sm:$0xf] %vm2731_vm8, %v2661_v2  ;;  %v2996_v32 = vpop.permute.xlu0 %2995  ;;  %v3961_v2 = vrot.slane %v3959_v62, 4 }
 0x210   : > { %3112 = vst.msk [vmem:[#allocation2 + $0x1c] sm:$0xf] %vm3104_vm9, %v2996_v32  ;;  %3045 = vrot.lane.b32.xlu1 %v2956_v13, %s5352_s27  ;;  %v2527_v13 = vrot.slane %v2525_v63, 4  ;;  %v2170_v63 = vor.u32 %v2169_v26, %v2166_v56  ;;  %v2530_v22 = vrot.slane %v2528_v24, 4  ;;  %v3343_v56 = vrot.slane %v3341_v31, 6 }
 0x211   : > { %3635 = vrot.lane.b32.xlu0 %v3338_v5, %s5353_s5  ;;  %v3962_v5 = vrot.slane %v7214_v8, 7  ;;  %v1807_v8 = vld [vmem:[%s5400_s19 + $0xa0] sm:$0xf] }
 0x212   : > { %v3622_v21 = vpop.permute.xlu1 %3621  ;;  %v2529_v32 = vsel %vm6231_vm15, %v2527_v13, %v2528_v24  ;;  %v2171_v16 = vsel %vm6124_vm11, %v2162_v28, %v2170_v63  ;;  %v2172_v50 = vrot.slane %v2170_v63, 4  ;;  %v2590_v63 = vrot.slane %v2588_v59, 4 }
 0x213   : > { %3739 = vst.msk [vmem:[#allocation2 + $0x18] sm:$0xf] %vm3732_vm10, %v3622_v21  ;;  %v2663_v58 = vpop.permute.xlu0 %2662  ;;  %v3963_v54 = vsel %vm6294_vm5, %v3961_v2, %v3962_v5  ;;  %v2531_v21 = vrot.slane %v7229_v42, 6  ;;  %v2589_v2 = vsel %vm6231_vm15, %v2587_v44, %v2588_v59  ;;  %v3904_v44 = vrot.slane %v3902_v23, 4 }
 0x214   : > { %2759 = vst.msk [vmem:[#allocation2 + $0x6c] sm:$0xf] %vm2731_vm8, %v2663_v58  ;;  %4009 = vrot.lane.b32.xlu1 %v3900_v9, %s5354_s6  ;;  %v2788_v9 = vld [vmem:[%s5400_s19 + $0x4c] sm:$0xf] }
 0x215   : > { %3047 = vrot.lane.b32.xlu0 %v2959_v36, %s5352_s27  ;;  %v2176_v36 = vrot.slane %v2174_v33, 5  ;;  %v2901_v58 = vrot.slane %v2788_v9, 6  ;;  %v2904_v33 = vrot.slane %v7261_v19, 6  ;;  %v2808_v9 = vld [vmem:[%s5400_s19 + $0x9c] sm:$0xf] }
 0x216   : > { %v3034_v37 = vpop.permute.xlu1 %3033 }
 0x217   : > { %3131 = vst.msk [vmem:[#allocation2 + $0x68] sm:$0xf] %vm3104_vm9, %v3034_v37  ;;  %v3624_v12 = vpop.permute.xlu0 %3623  ;;  %v7252_v62 = vor.u32 %v2179_v57, %v2176_v36  ;;  %v2903_v24 = vrot.slane %v2901_v58, 4 }
 0x218   : > { %3740 = vst.msk [vmem:[#allocation2 + $0x1c] sm:$0xf] %vm3732_vm10, %v3624_v12  ;;  %3673 = vrot.lane.b32.xlu1 %v3528_v34, %s5353_s5  ;;  %v3344_v34 = vshll.u32 %v3161_v51, 16  ;;  %v2902_v12 = vsel %vm6231_vm15, %v2900_v39, %v2901_v58  ;;  %v2960_v51 = vrot.slane %v2958_v3, 4  ;;  %v3789_v39 = vld [vmem:[%s5400_s19 + $0x4c] sm:$0xf] }
 0x219   : > { %4011 = vrot.lane.b32.xlu0 %v3903_v14, %s5354_s6  ;;  %v2532_v14 = vsel %vm6231_vm15, %v2530_v22, %v2531_v21  ;;  %v2905_v57 = vsel %vm6231_vm15, %v2903_v24, %v2904_v33  ;;  %v3181_v22 = vld [vmem:[%s5400_s19 + $0x9c] sm:$0xf]  ;;  %v3905_v59 = vrot.slane %v3789_v39, 7  ;;  %v2182_v42 = vrot.slane %v7252_v62, 4 }
 0x21a   : > { %v3998_v11 = vpop.permute.xlu1 %3997  ;;  %v3346_v26 = vrot.slane %v3344_v34, 7  ;;  %v3541_v58 = vshrl.u32 %v3181_v22, 16 }
 0x21b   : > { %4115 = vst.msk [vmem:[#allocation2 + $0x18] sm:$0xf] %vm4108_vm12, %v3998_v11  ;;  %v3036_v0 = vpop.permute.xlu0 %3035 }
 0x21c   : > { %3132 = vst.msk [vmem:[#allocation2 + $0x6c] sm:$0xf] %vm3104_vm9, %v3036_v0  ;;  %4049 = vrot.lane.b32.xlu1 %v3960_v6, %s5354_s6  ;;  %v2181_v6 = vsel %vm6124_vm11, %v2172_v50, %v7252_v62  ;;  %v3339_v0 = vrot.slane %v7158_v55, 4  ;;  %v3347_v28 = vor.u32 %v3346_v26, %v3343_v56  ;;  %v3544_v50 = vshll.u32 %v3181_v22, 16  ;;  %v3163_v62 = vld [vmem:[%s5400_s19 + $0x54] sm:$0xf] }
 0x21d   : > { %3675 = vrot.lane.b32.xlu0 %v3538_v60, %s5353_s5  ;;  %v3543_v56 = vrot.slane %v3541_v58, 6 }
 0x21e   : > { %v3662_v10 = vpop.permute.xlu1 %3661  ;;  %v3349_v34 = vrot.slane %v3347_v28, 4  ;;  %v3546_v26 = vrot.slane %v3544_v50, 7 }
 0x21f   : > { %3759 = vst.msk [vmem:[#allocation2 + $0x68] sm:$0xf] %vm3732_vm10, %v3662_v10  ;;  %v4000_v43 = vpop.permute.xlu0 %3999  ;;  %v3353_v10 = vrot.slane %v3351_v35, 6 }
 0x220   : > { %4116 = vst.msk [vmem:[#allocation2 + $0x1c] sm:$0xf] %vm4108_vm12, %v4000_v43  ;;  %2636 = vrot.lane.b32.xlu1 %v2529_v32, %s5350_s24  ;;  %v2591_v32 = vrot.slane %v7276_v25, 6  ;;  %v2961_v43 = vrot.slane %v2808_v9, 6 }
 0x221   : > { %4051 = vrot.lane.b32.xlu0 %v3963_v54, %s5354_s6  ;;  %v3356_v54 = vrot.slane %v3354_v49, 7  ;;  %v7331_v49 = vld [vmem:[%s5400_s19 + $0x50] sm:$0xf] }
 0x222   : > { %v4038_v37 = vpop.permute.xlu1 %4037  ;;  %v2592_v31 = vsel %vm6231_vm15, %v2590_v63, %v2591_v32  ;;  %v2962_v30 = vsel %vm6231_vm15, %v2960_v51, %v2961_v43  ;;  %v1806_v63 = vld [vmem:[%s5400_s19 + $0x9c] sm:$0xf] }
 0x223   : > { %4135 = vst.msk [vmem:[#allocation2 + $0x68] sm:$0xf] %vm4108_vm12, %v4038_v37  ;;  %v3664_v40 = vpop.permute.xlu0 %3663  ;;  %v7308_v37 = vor.u32 %v3356_v54, %v3353_v10  ;;  %v2184_v51 = vshrl.u32 %v1806_v63, 16 }
 0x224   : > { %3760 = vst.msk [vmem:[#allocation2 + $0x6c] sm:$0xf] %vm3732_vm10, %v3664_v40  ;;  %2300 = vrot.lane.b32.xlu1 %v2171_v16, %s5349_s23  ;;  %v3348_v16 = vsel %vm6270_vm2, %v3339_v0, %v3347_v28  ;;  %v3182_v40 = vld [vmem:[%s5400_s19 + $0xa0] sm:$0xf]  ;;  %v3547_v0 = vor.u32 %v3546_v26, %v3543_v56  ;;  %v3809_v28 = vld [vmem:[%s5400_s19 + $0x9c] sm:$0xf] }
 0x225   : > { %2638 = vrot.lane.b32.xlu0 %v2532_v14, %s5350_s24  ;;  %v3358_v24 = vsel %vm6270_vm2, %v3349_v34, %v7308_v37  ;;  %v3551_v7 = vshrl.u32 %v3182_v40, 16  ;;  %v3554_v35 = vshll.u32 %v3182_v40, 16  ;;  %v7364_v34 = vld [vmem:[%s5400_s19 + $0xa0] sm:$0xf] }
 0x226   : > { %v2625_v13 = vpop.permute.xlu1 %2624  ;;  %v3549_v50 = vrot.slane %v3547_v0, 4 }
 0x227   : > { %2740 = vst.msk [vmem:[#allocation2 + $0x20] sm:$0xf] %vm2731_vm8, %v2625_v13  ;;  %v4040_v11 = vpop.permute.xlu0 %4039  ;;  %v5306_v60 = vld [vmem:[#allocation2 + $0x18] sm:$0xff]   ;;  %v3553_v10 = vrot.slane %v3551_v7, 6  ;;  %v3556_v54 = vrot.slane %v3554_v35, 7 }
 0x228   : > { %4136 = vst.msk [vmem:[#allocation2 + $0x6c] sm:$0xf] %vm4108_vm12, %v4040_v11  ;;  %3009 = vrot.lane.b32.xlu1 %v2902_v12, %s5352_s27  ;;  %5185 = vmatmul.mubr.msk.bf16.gmra.mrb[12].mxu0 %vm4321_vm13, %v5306_v60  ;;  %v2963_v12 = vrot.slane %v2961_v43, 4  ;;  %v3906_v11 = vsel %vm6294_vm5, %v3904_v44, %v3905_v59  ;;  %v2187_v43 = vshll.u32 %v1806_v63, 16  ;;  %v7379_v35 = vld [vmem:[%s5400_s19 + $0x50] sm:$0xf] }
 0x229   : > { %2302 = vrot.lane.b32.xlu0 %v2181_v6, %s5349_s23  ;;  %5188 = vmatprep.mubr.msk.bf16.mxu0 %vm5355_vm6, %v5351_v53  ;;  %v2964_v6 = vrot.slane %v7311_v45, 6  ;;  %v7461_v45 = vld [vmem:[%s5400_s19 + $0xa8] sm:$0xf] }
 0x22a   : > { %v2289_v36 = vpop.permute.xlu1 %2288  ;;  %v2189_v40 = vrot.slane %v2187_v43, 6  ;;  %v3361_v43 = vshrl.u32 %v3163_v62, 16 }
 0x22b   : > { %2384 = vst.msk [vmem:[#allocation2 + $0x70] sm:$0xf] %vm2355_vm7, %v2289_v36  ;;  %v2627_v55 = vpop.permute.xlu0 %2626  ;;  %v2965_v60 = vsel %vm6231_vm15, %v2963_v12, %v2964_v6  ;;  %v3907_v36 = vrot.slane %v3905_v59, 4  ;;  %v2194_v59 = vshrl.u32 %v1807_v8, 16  ;;  %v2197_v12 = vshll.u32 %v1807_v8, 16 }
 0x22c   : > { %2741 = vst.msk [vmem:[#allocation2 + $0x24] sm:$0xf] %vm2731_vm8, %v2627_v55  ;;  %2676 = vrot.lane.b32.xlu1 %v2589_v2, %s5350_s24  ;;  %v3539_v2 = vrot.slane %v7208_v29, 4  ;;  %v3964_v29 = vrot.slane %v3962_v5, 4  ;;  %v3965_v55 = vrot.slane %v3809_v28, 7 }
 0x22d   : > { %3011 = vrot.lane.b32.xlu0 %v2905_v57, %s5352_s27  ;;  %v3908_v57 = vrot.slane %v7331_v49, 7 }
 0x22e   : > { %v2998_v38 = vpop.permute.xlu1 %2997 }
 0x22f   : > { %3113 = vst.msk [vmem:[#allocation2 + $0x20] sm:$0xf] %vm3104_vm9, %v2998_v38  ;;  %v2291_v3 = vpop.permute.xlu0 %2290  ;;  %v5307_v14 = vld [vmem:[#allocation2 + $0x68] sm:$0xff]   ;;  %v3909_v58 = vsel %vm6294_vm5, %v3907_v36, %v3908_v57  ;;  %v7358_v38 = vor.u32 %v3556_v54, %v3553_v10  ;;  %v2906_v54 = vrot.slane %v2904_v33, 4  ;;  %v7411_v33 = vld [vmem:[%s5400_s19 + $0x58] sm:$0xf] }
 0x230   : > { %2385 = vst.msk [vmem:[#allocation2 + $0x74] sm:$0xf] %vm2355_vm7, %v2291_v3  ;;  %3637 = vrot.lane.b32.xlu1 %v3348_v16, %s5353_s5  ;;  %5225 = vmatmul.mubr.msk.bf16.gmra.mrb[8].mxu1 %vm4321_vm13, %v5307_v14  ;;  %v3548_v16 = vsel %vm6270_vm2, %v3539_v2, %v3547_v0  ;;  %v3966_v3 = vsel %vm6294_vm5, %v3964_v29, %v3965_v55  ;;  %v2186_v14 = vrot.slane %v2184_v51, 5  ;;  %v2199_v2 = vrot.slane %v2197_v12, 6  ;;  %v2434_v51 = vld [vmem:[%s5400_s19 + $0x9c] sm:$0xf] }
 0x231   : > { %2678 = vrot.lane.b32.xlu0 %v2592_v31, %s5350_s24  ;;  %5228 = vmatprep.mubr.msk.bf16.mxu1 %vm5355_vm6, %v5351_v53  ;;  %v2414_v31 = vld [vmem:[%s5400_s19 + $0x4c] sm:$0xf]  ;;  %v3558_v26 = vsel %vm6270_vm2, %v3549_v50, %v7358_v38  ;;  %v3164_v50 = vld [vmem:[%s5400_s19 + $0x58] sm:$0xf]  ;;  %v2594_v8 = vrot.slane %v2434_v51, 6 }
 0x232   : > { %v2665_v13 = vpop.permute.xlu1 %2664  ;;  %v2534_v44 = vrot.slane %v2414_v31, 6  ;;  %v2593_v31 = vrot.slane %v2591_v32, 4  ;;  %v7426_v12 = vld [vmem:[%s5400_s19 + $0xa0] sm:$0xf]  ;;  %v3371_v25 = vshrl.u32 %v3164_v50, 16  ;;  %v3374_v32 = vshll.u32 %v3164_v50, 16 }
 0x233   : > { %2760 = vst.msk [vmem:[#allocation2 + $0x70] sm:$0xf] %vm2731_vm8, %v2665_v13  ;;  %v3000_v23 = vpop.permute.xlu0 %2999  ;;  %v3967_v13 = vrot.slane %v3965_v55, 4 }
 0x234   : > { %3114 = vst.msk [vmem:[#allocation2 + $0x24] sm:$0xf] %vm3104_vm9, %v3000_v23  ;;  %3049 = vrot.lane.b32.xlu1 %v2962_v30, %s5352_s27  ;;  %v2533_v30 = vrot.slane %v2531_v21, 4  ;;  %v2190_v21 = vor.u32 %v2189_v40, %v2186_v14  ;;  %v2536_v63 = vrot.slane %v2534_v44, 4  ;;  %v3363_v14 = vrot.slane %v3361_v43, 6 }
 0x235   : > { %3639 = vrot.lane.b32.xlu0 %v3358_v24, %s5353_s5  ;;  %v3968_v24 = vrot.slane %v7364_v34, 7  ;;  %v1809_v34 = vld [vmem:[%s5400_s19 + $0xa8] sm:$0xf] }
 0x236   : > { %v3626_v9 = vpop.permute.xlu1 %3625  ;;  %v2535_v23 = vsel %vm6231_vm15, %v2533_v30, %v2534_v44  ;;  %v2191_v10 = vsel %vm6124_vm11, %v2182_v42, %v2190_v21  ;;  %v2192_v29 = vrot.slane %v2190_v21, 4  ;;  %v2596_v21 = vrot.slane %v2594_v8, 4 }
 0x237   : > { %3741 = vst.msk [vmem:[#allocation2 + $0x20] sm:$0xf] %vm3732_vm10, %v3626_v9  ;;  %v2667_v22 = vpop.permute.xlu0 %2666  ;;  %v3969_v28 = vsel %vm6294_vm5, %v3967_v13, %v3968_v24  ;;  %v2537_v9 = vrot.slane %v7379_v35, 6  ;;  %v2595_v13 = vsel %vm6231_vm15, %v2593_v31, %v2594_v8  ;;  %v3910_v31 = vrot.slane %v3908_v57, 4 }
 0x238   : > { %2761 = vst.msk [vmem:[#allocation2 + $0x74] sm:$0xf] %vm2731_vm8, %v2667_v22  ;;  %4013 = vrot.lane.b32.xlu1 %v3906_v11, %s5354_s6  ;;  %v2790_v11 = vld [vmem:[%s5400_s19 + $0x54] sm:$0xf] }
 0x239   : > { %3051 = vrot.lane.b32.xlu0 %v2965_v60, %s5352_s27  ;;  %v2196_v60 = vrot.slane %v2194_v59, 5  ;;  %v2907_v22 = vrot.slane %v2790_v11, 6  ;;  %v2910_v59 = vrot.slane %v7411_v33, 6  ;;  %v2810_v11 = vld [vmem:[%s5400_s19 + $0xa4] sm:$0xf] }
 0x23a   : > { %v3038_v39 = vpop.permute.xlu1 %3037 }
 0x23b   : > { %3133 = vst.msk [vmem:[#allocation2 + $0x70] sm:$0xf] %vm3104_vm9, %v3038_v39  ;;  %v3628_v5 = vpop.permute.xlu0 %3627  ;;  %v7402_v55 = vor.u32 %v2199_v2, %v2196_v60  ;;  %v2909_v44 = vrot.slane %v2907_v22, 4 }
 0x23c   : > { %3742 = vst.msk [vmem:[#allocation2 + $0x24] sm:$0xf] %vm3732_vm10, %v3628_v5  ;;  %3677 = vrot.lane.b32.xlu1 %v3548_v16, %s5353_s5  ;;  %v3364_v16 = vshll.u32 %v3163_v62, 16  ;;  %v2908_v5 = vsel %vm6231_vm15, %v2906_v54, %v2907_v22  ;;  %v2966_v62 = vrot.slane %v2964_v6, 4  ;;  %v3791_v54 = vld [vmem:[%s5400_s19 + $0x54] sm:$0xf] }
 0x23d   : > { %4015 = vrot.lane.b32.xlu0 %v3909_v58, %s5354_s6  ;;  %v2538_v58 = vsel %vm6231_vm15, %v2536_v63, %v2537_v9  ;;  %v2911_v2 = vsel %vm6231_vm15, %v2909_v44, %v2910_v59  ;;  %v3183_v63 = vld [vmem:[%s5400_s19 + $0xa4] sm:$0xf]  ;;  %v3911_v8 = vrot.slane %v3791_v54, 7  ;;  %v2202_v35 = vrot.slane %v7402_v55, 4 }
 0x23e   : > { %v4002_v56 = vpop.permute.xlu1 %4001  ;;  %v3366_v40 = vrot.slane %v3364_v16, 7  ;;  %v3561_v22 = vshrl.u32 %v3183_v63, 16 }
 0x23f   : > { %4117 = vst.msk [vmem:[#allocation2 + $0x20] sm:$0xf] %vm4108_vm12, %v4002_v56  ;;  %v3040_v7 = vpop.permute.xlu0 %3039 }
 0x240   : > { %3134 = vst.msk [vmem:[#allocation2 + $0x74] sm:$0xf] %vm3104_vm9, %v3040_v7  ;;  %4053 = vrot.lane.b32.xlu1 %v3966_v3, %s5354_s6  ;;  %v2201_v3 = vsel %vm6124_vm11, %v2192_v29, %v7402_v55  ;;  %v3359_v7 = vrot.slane %v7308_v37, 4  ;;  %v3367_v42 = vor.u32 %v3366_v40, %v3363_v14  ;;  %v3564_v29 = vshll.u32 %v3183_v63, 16  ;;  %v3165_v55 = vld [vmem:[%s5400_s19 + $0x5c] sm:$0xf] }
 0x241   : > { %3679 = vrot.lane.b32.xlu0 %v3558_v26, %s5353_s5  ;;  %v3563_v14 = vrot.slane %v3561_v22, 6 }
 0x242   : > { %v3666_v0 = vpop.permute.xlu1 %3665  ;;  %v3369_v16 = vrot.slane %v3367_v42, 4  ;;  %v3566_v40 = vrot.slane %v3564_v29, 7 }
 0x243   : > { %3761 = vst.msk [vmem:[#allocation2 + $0x70] sm:$0xf] %vm3732_vm10, %v3666_v0  ;;  %v4004_v36 = vpop.permute.xlu0 %4003  ;;  %v3373_v0 = vrot.slane %v3371_v25, 6 }
 0x244   : > { %4118 = vst.msk [vmem:[#allocation2 + $0x24] sm:$0xf] %vm4108_vm12, %v4004_v36  ;;  %2640 = vrot.lane.b32.xlu1 %v2535_v23, %s5350_s24  ;;  %v2597_v23 = vrot.slane %v7426_v12, 6  ;;  %v2967_v36 = vrot.slane %v2810_v11, 6 }
 0x245   : > { %4055 = vrot.lane.b32.xlu0 %v3969_v28, %s5354_s6  ;;  %v3376_v28 = vrot.slane %v3374_v32, 7  ;;  %v7481_v32 = vld [vmem:[%s5400_s19 + $0x58] sm:$0xf] }
 0x246   : > { %v4042_v39 = vpop.permute.xlu1 %4041  ;;  %v2598_v43 = vsel %vm6231_vm15, %v2596_v21, %v2597_v23  ;;  %v2968_v50 = vsel %vm6231_vm15, %v2966_v62, %v2967_v36  ;;  %v1808_v21 = vld [vmem:[%s5400_s19 + $0xa4] sm:$0xf] }
 0x247   : > { %4137 = vst.msk [vmem:[#allocation2 + $0x70] sm:$0xf] %vm4108_vm12, %v4042_v39  ;;  %v3668_v19 = vpop.permute.xlu0 %3667  ;;  %v7458_v39 = vor.u32 %v3376_v28, %v3373_v0  ;;  %v2204_v62 = vshrl.u32 %v1808_v21, 16 }
 0x248   : > { %3762 = vst.msk [vmem:[#allocation2 + $0x74] sm:$0xf] %vm3732_vm10, %v3668_v19  ;;  %2304 = vrot.lane.b32.xlu1 %v2191_v10, %s5349_s23  ;;  %v3368_v10 = vsel %vm6270_vm2, %v3359_v7, %v3367_v42  ;;  %v3184_v19 = vld [vmem:[%s5400_s19 + $0xa8] sm:$0xf]  ;;  %v3567_v7 = vor.u32 %v3566_v40, %v3563_v14  ;;  %v3811_v42 = vld [vmem:[%s5400_s19 + $0xa4] sm:$0xf] }
 0x249   : > { %2642 = vrot.lane.b32.xlu0 %v2538_v58, %s5350_s24  ;;  %v3378_v44 = vsel %vm6270_vm2, %v3369_v16, %v7458_v39  ;;  %v3571_v49 = vshrl.u32 %v3184_v19, 16  ;;  %v3574_v25 = vshll.u32 %v3184_v19, 16  ;;  %v7514_v16 = vld [vmem:[%s5400_s19 + $0xa8] sm:$0xf] }
 0x24a   : > { %v2629_v30 = vpop.permute.xlu1 %2628  ;;  %v3569_v29 = vrot.slane %v3567_v7, 4 }
 0x24b   : > { %2742 = vst.msk [vmem:[#allocation2 + $0x28] sm:$0xf] %vm2731_vm8, %v2629_v30  ;;  %v4044_v56 = vpop.permute.xlu0 %4043  ;;  %v5308_v26 = vld [vmem:[#allocation2 + $0x20] sm:$0xff]   ;;  %v3573_v0 = vrot.slane %v3571_v49, 6  ;;  %v3576_v28 = vrot.slane %v3574_v25, 7 }
 0x24c   : > { %4138 = vst.msk [vmem:[#allocation2 + $0x74] sm:$0xf] %vm4108_vm12, %v4044_v56  ;;  %3013 = vrot.lane.b32.xlu1 %v2908_v5, %s5352_s27  ;;  %5189 = vmatmul.mubr.msk.bf16.gmra.mrb[16].mxu0 %vm4321_vm13, %v5308_v26  ;;  %v2969_v5 = vrot.slane %v2967_v36, 4  ;;  %v3912_v56 = vsel %vm6294_vm5, %v3910_v31, %v3911_v8  ;;  %v2207_v36 = vshll.u32 %v1808_v21, 16  ;;  %v7529_v25 = vld [vmem:[%s5400_s19 + $0x58] sm:$0xf] }
 0x24d   : > { %2306 = vrot.lane.b32.xlu0 %v2201_v3, %s5349_s23  ;;  %5192 = vmatprep.mubr.msk.bf16.mxu0 %vm5355_vm6, %v5351_v53  ;;  %v2970_v3 = vrot.slane %v7461_v45, 6  ;;  %v7611_v45 = vld [vmem:[%s5400_s19 + $0xb0] sm:$0xf] }
 0x24e   : > { %v2293_v60 = vpop.permute.xlu1 %2292  ;;  %v2209_v19 = vrot.slane %v2207_v36, 6  ;;  %v3381_v36 = vshrl.u32 %v3165_v55, 16 }
 0x24f   : > { %2386 = vst.msk [vmem:[#allocation2 + $0x78] sm:$0xf] %vm2355_vm7, %v2293_v60  ;;  %v2631_v37 = vpop.permute.xlu0 %2630  ;;  %v2971_v26 = vsel %vm6231_vm15, %v2969_v5, %v2970_v3  ;;  %v3913_v60 = vrot.slane %v3911_v8, 4  ;;  %v2214_v8 = vshrl.u32 %v1809_v34, 16  ;;  %v2217_v5 = vshll.u32 %v1809_v34, 16 }
 0x250   : > { %2743 = vst.msk [vmem:[#allocation2 + $0x2c] sm:$0xf] %vm2731_vm8, %v2631_v37  ;;  %2680 = vrot.lane.b32.xlu1 %v2595_v13, %s5350_s24  ;;  %v3559_v13 = vrot.slane %v7358_v38, 4  ;;  %v3970_v38 = vrot.slane %v3968_v24, 4  ;;  %v3971_v37 = vrot.slane %v3811_v42, 7 }
 0x251   : > { %3015 = vrot.lane.b32.xlu0 %v2911_v2, %s5352_s27  ;;  %v3914_v2 = vrot.slane %v7481_v32, 7 }
 0x252   : > { %v3002_v51 = vpop.permute.xlu1 %3001 }
 0x253   : > { %3115 = vst.msk [vmem:[#allocation2 + $0x28] sm:$0xf] %vm3104_vm9, %v3002_v51  ;;  %v2295_v6 = vpop.permute.xlu0 %2294  ;;  %v5309_v58 = vld [vmem:[#allocation2 + $0x70] sm:$0xff]   ;;  %v3915_v22 = vsel %vm6294_vm5, %v3913_v60, %v3914_v2  ;;  %v7508_v51 = vor.u32 %v3576_v28, %v3573_v0  ;;  %v2912_v28 = vrot.slane %v2910_v59, 4  ;;  %v7561_v59 = vld [vmem:[%s5400_s19 + $0x60] sm:$0xf] }
 0x254   : > { %2387 = vst.msk [vmem:[#allocation2 + $0x7c] sm:$0xf] %vm2355_vm7, %v2295_v6  ;;  %3641 = vrot.lane.b32.xlu1 %v3368_v10, %s5353_s5  ;;  %5229 = vmatmul.mubr.msk.bf16.gmra.mrb[12].mxu1 %vm4321_vm13, %v5309_v58  ;;  %v3568_v10 = vsel %vm6270_vm2, %v3559_v13, %v3567_v7  ;;  %v3972_v6 = vsel %vm6294_vm5, %v3970_v38, %v3971_v37  ;;  %v2206_v58 = vrot.slane %v2204_v62, 5  ;;  %v2219_v13 = vrot.slane %v2217_v5, 6  ;;  %v2436_v62 = vld [vmem:[%s5400_s19 + $0xa4] sm:$0xf] }
 0x255   : > { %2682 = vrot.lane.b32.xlu0 %v2598_v43, %s5350_s24  ;;  %5232 = vmatprep.mubr.msk.bf16.mxu1 %vm5355_vm6, %v5351_v53  ;;  %v2416_v43 = vld [vmem:[%s5400_s19 + $0x54] sm:$0xf]  ;;  %v3578_v40 = vsel %vm6270_vm2, %v3569_v29, %v7508_v51  ;;  %v3166_v29 = vld [vmem:[%s5400_s19 + $0x60] sm:$0xf]  ;;  %v2600_v34 = vrot.slane %v2436_v62, 6 }
 0x256   : > { %v2669_v30 = vpop.permute.xlu1 %2668  ;;  %v2540_v31 = vrot.slane %v2416_v43, 6  ;;  %v2599_v43 = vrot.slane %v2597_v23, 4  ;;  %v7576_v5 = vld [vmem:[%s5400_s19 + $0xa8] sm:$0xf]  ;;  %v3391_v12 = vshrl.u32 %v3166_v29, 16  ;;  %v3394_v23 = vshll.u32 %v3166_v29, 16 }
 0x257   : > { %2762 = vst.msk [vmem:[#allocation2 + $0x78] sm:$0xf] %vm2731_vm8, %v2669_v30  ;;  %v3004_v57 = vpop.permute.xlu0 %3003  ;;  %v3973_v30 = vrot.slane %v3971_v37, 4 }
 0x258   : > { %3116 = vst.msk [vmem:[#allocation2 + $0x2c] sm:$0xf] %vm3104_vm9, %v3004_v57  ;;  %3053 = vrot.lane.b32.xlu1 %v2968_v50, %s5352_s27  ;;  %v2539_v50 = vrot.slane %v2537_v9, 4  ;;  %v2210_v9 = vor.u32 %v2209_v19, %v2206_v58  ;;  %v2542_v21 = vrot.slane %v2540_v31, 4  ;;  %v3383_v58 = vrot.slane %v3381_v36, 6 }
 0x259   : > { %3643 = vrot.lane.b32.xlu0 %v3378_v44, %s5353_s5  ;;  %v3974_v44 = vrot.slane %v7514_v16, 7  ;;  %v2022_v16 = vrot.slane %v6235_v20, 4 }
 0x25a   : > { %v3630_v11 = vpop.permute.xlu1 %3629  ;;  %v2541_v57 = vsel %vm6231_vm15, %v2539_v50, %v2540_v31  ;;  %v2211_v0 = vsel %vm6124_vm11, %v2202_v35, %v2210_v9  ;;  %v2212_v38 = vrot.slane %v2210_v9, 4  ;;  %v2602_v9 = vrot.slane %v2600_v34, 4 }
 0x25b   : > { %3743 = vst.msk [vmem:[#allocation2 + $0x28] sm:$0xf] %vm3732_vm10, %v3630_v11  ;;  %v2671_v63 = vpop.permute.xlu0 %2670  ;;  %v3975_v42 = vsel %vm6294_vm5, %v3973_v30, %v3974_v44  ;;  %v2543_v11 = vrot.slane %v7529_v25, 6  ;;  %v2601_v30 = vsel %vm6231_vm15, %v2599_v43, %v2600_v34  ;;  %v3916_v43 = vrot.slane %v3914_v2, 4 }
 0x25c   : > { %2763 = vst.msk [vmem:[#allocation2 + $0x7c] sm:$0xf] %vm2731_vm8, %v2671_v63  ;;  %4017 = vrot.lane.b32.xlu1 %v3912_v56, %s5354_s6  ;;  %v2792_v56 = vld [vmem:[%s5400_s19 + $0x5c] sm:$0xf] }
 0x25d   : > { %3055 = vrot.lane.b32.xlu0 %v2971_v26, %s5352_s27  ;;  %v2216_v26 = vrot.slane %v2214_v8, 5  ;;  %v2913_v63 = vrot.slane %v2792_v56, 6  ;;  %v2916_v8 = vrot.slane %v7561_v59, 6  ;;  %v2812_v56 = vld [vmem:[%s5400_s19 + $0xac] sm:$0xf] }
 0x25e   : > { %v3042_v54 = vpop.permute.xlu1 %3041  ;;  %v7726_v59 = vld [vmem:[%s8005_s2] ss:$0 sm:$0xff] }
 0x25f   : > { %3135 = vst.msk [vmem:[#allocation2 + $0x78] sm:$0xf] %vm3104_vm9, %v3042_v54  ;;  %v3632_v24 = vpop.permute.xlu0 %3631  ;;  %v7552_v37 = vor.u32 %v2219_v13, %v2216_v26  ;;  %v2915_v31 = vrot.slane %v2913_v63, 4 }
 0x260   : > { %3744 = vst.msk [vmem:[#allocation2 + $0x2c] sm:$0xf] %vm3732_vm10, %v3632_v24  ;;  %3681 = vrot.lane.b32.xlu1 %v3568_v10, %s5353_s5  ;;  %v3384_v10 = vshll.u32 %v3165_v55, 16  ;;  %v2914_v24 = vsel %vm6231_vm15, %v2912_v28, %v2913_v63  ;;  %v2972_v55 = vrot.slane %v2970_v3, 4  ;;  %v3793_v28 = vld [vmem:[%s5400_s19 + $0x5c] sm:$0xf] }
 0x261   : > { %4019 = vrot.lane.b32.xlu0 %v3915_v22, %s5354_s6  ;;  %v2544_v22 = vsel %vm6231_vm15, %v2542_v21, %v2543_v11  ;;  %v2917_v13 = vsel %vm6231_vm15, %v2915_v31, %v2916_v8  ;;  %v3185_v21 = vld [vmem:[%s5400_s19 + $0xac] sm:$0xf]  ;;  %v3917_v34 = vrot.slane %v3793_v28, 7  ;;  %v3976_v28 = vrot.slane %v3974_v44, 4 }
 0x262   : > { %v4006_v14 = vpop.permute.xlu1 %4005  ;;  %v3386_v19 = vrot.slane %v3384_v10, 7  ;;  %v3581_v63 = vshrl.u32 %v3185_v21, 16 }
 0x263   : > { %4119 = vst.msk [vmem:[#allocation2 + $0x28] sm:$0xf] %vm4108_vm12, %v4006_v14  ;;  %v3044_v49 = vpop.permute.xlu0 %3043 }
 0x264   : > { %3136 = vst.msk [vmem:[#allocation2 + $0x7c] sm:$0xf] %vm3104_vm9, %v3044_v49  ;;  %4057 = vrot.lane.b32.xlu1 %v3972_v6, %s5354_s6  ;;  %v2221_v6 = vsel %vm6124_vm11, %v2212_v38, %v7552_v37  ;;  %v3379_v49 = vrot.slane %v7458_v39, 4  ;;  %v3387_v35 = vor.u32 %v3386_v19, %v3383_v58  ;;  %v3584_v38 = vshll.u32 %v3185_v21, 16 }
 0x265   : > { %3683 = vrot.lane.b32.xlu0 %v3578_v40, %s5353_s5  ;;  %v3583_v58 = vrot.slane %v3581_v63, 6 }
 0x266   : > { %v3670_v7 = vpop.permute.xlu1 %3669  ;;  %v3389_v10 = vrot.slane %v3387_v35, 4  ;;  %v3586_v19 = vrot.slane %v3584_v38, 7 }
 0x267   : > { %3763 = vst.msk [vmem:[#allocation2 + $0x78] sm:$0xf] %vm3732_vm10, %v3670_v7  ;;  %v4008_v60 = vpop.permute.xlu0 %4007  ;;  %v3393_v7 = vrot.slane %v3391_v12, 6 }
 0x268   : > { %4120 = vst.msk [vmem:[#allocation2 + $0x2c] sm:$0xf] %vm4108_vm12, %v4008_v60  ;;  %2644 = vrot.lane.b32.xlu1 %v2541_v57, %s5350_s24  ;;  %v2603_v57 = vrot.slane %v7576_v5, 6  ;;  %v2973_v60 = vrot.slane %v2812_v56, 6  ;;  %v3587_v56 = vor.u32 %v3586_v19, %v3583_v58 }
 0x269   : > { %4059 = vrot.lane.b32.xlu0 %v3975_v42, %s5354_s6  ;;  %v3396_v42 = vrot.slane %v3394_v23, 7 }
 0x26a   : > { %v4046_v54 = vpop.permute.xlu1 %4045  ;;  %v2604_v36 = vsel %vm6231_vm15, %v2602_v9, %v2603_v57  ;;  %v2974_v29 = vsel %vm6231_vm15, %v2972_v55, %v2973_v60  ;;  %v3579_v9 = vrot.slane %v7508_v51, 4 }
 0x26b   : > { %4139 = vst.msk [vmem:[#allocation2 + $0x78] sm:$0xf] %vm4108_vm12, %v4046_v54  ;;  %v3672_v33 = vpop.permute.xlu0 %3671  ;;  %v7608_v54 = vor.u32 %v3396_v42, %v3393_v7  ;;  %v3813_v42 = vld [vmem:[%s5400_s19 + $0xac] sm:$0xf] }
 0x26c   : > { %3764 = vst.msk [vmem:[#allocation2 + $0x7c] sm:$0xf] %vm3732_vm10, %v3672_v33  ;;  %2308 = vrot.lane.b32.xlu1 %v2211_v0, %s5349_s23  ;;  %v3388_v0 = vsel %vm6270_vm2, %v3379_v49, %v3387_v35  ;;  %v3186_v33 = vld [vmem:[%s5400_s19 + $0xb0] sm:$0xf]  ;;  %v3918_v49 = vsel %vm6294_vm5, %v3916_v43, %v3917_v34  ;;  %v3588_v51 = vsel %vm6270_vm2, %v3579_v9, %v3587_v56  ;;  %v3977_v63 = vrot.slane %v3813_v42, 7 }
 0x26d   : > { %2646 = vrot.lane.b32.xlu0 %v2544_v22, %s5350_s24  ;;  %v3398_v12 = vsel %vm6270_vm2, %v3389_v10, %v7608_v54  ;;  %v3591_v23 = vshrl.u32 %v3186_v33, 16  ;;  %v3594_v32 = vshll.u32 %v3186_v33, 16  ;;  %v7663_v33 = vld [vmem:[%s5400_s19 + $0xb0] sm:$0xf]  ;;  %v2222_v42 = vrot.slane %v7552_v37, 4 }
 0x26e   : > { %v2633_v50 = vpop.permute.xlu1 %2632  ;;  %v3979_v19 = vrot.slane %v3977_v63, 4  ;;  %v3399_v46 = vrot.slane %v7608_v54, 4 }
 0x26f   : > { %2744 = vst.msk [vmem:[#allocation2 + $0x30] sm:$0xf] %vm2731_vm8, %v2633_v50  ;;  %v4048_v14 = vpop.permute.xlu0 %4047  ;;  %v5310_v40 = vld [vmem:[#allocation2 + $0x28] sm:$0xff]   ;;  %v1790_v50 = vld [vmem:[%s5400_s19 + $0x5c] sm:$0xf]  ;;  %v3593_v21 = vrot.slane %v3591_v23, 6 }
 0x270   : > { %4140 = vst.msk [vmem:[#allocation2 + $0x7c] sm:$0xf] %vm4108_vm12, %v4048_v14  ;;  %3017 = vrot.lane.b32.xlu1 %v2914_v24, %s5352_s27  ;;  %5193 = vmatmul.mubr.msk.bf16.gmra.mrb[20].mxu0 %vm4321_vm13, %v5310_v40  ;;  %v2975_v24 = vrot.slane %v2973_v60, 4  ;;  %v7632_v14 = vld [vmem:[%s5400_s19 + $0x60] sm:$0xf]  ;;  %v2024_v40 = vshrl.u32 %v1790_v50, 16 }
 0x271   : > { %2310 = vrot.lane.b32.xlu0 %v2221_v6, %s5349_s23  ;;  %5196 = vmatprep.mubr.msk.bf16.mxu0 %vm5355_vm6, %v5351_v53  ;;  %v2976_v6 = vrot.slane %v7611_v45, 6  ;;  %v3920_v7 = vrot.slane %v7632_v14, 7  ;;  %v2545_v23 = vrot.slane %v2543_v11, 4 }
 0x272   : > { %v2297_v26 = vpop.permute.xlu1 %2296  ;;  %v2026_v60 = vrot.slane %v2024_v40, 5 }
 0x273   : > { %2388 = vst.msk [vmem:[#allocation2 + $0x80] sm:$0xf] %vm2355_vm7, %v2297_v26  ;;  %v2635_v39 = vpop.permute.xlu0 %2634  ;;  %v2977_v35 = vsel %vm6231_vm15, %v2975_v24, %v2976_v6 }
 0x274   : > { %2745 = vst.msk [vmem:[#allocation2 + $0x34] sm:$0xf] %vm2731_vm8, %v2635_v39  ;;  %2684 = vrot.lane.b32.xlu1 %v2601_v30, %s5350_s24  ;;  %v2027_v30 = vshll.u32 %v1790_v50, 16  ;;  %v3596_v39 = vrot.slane %v3594_v32, 7  ;;  %v3980_v50 = vrot.slane %v7663_v33, 7 }
 0x275   : > { %3019 = vrot.lane.b32.xlu0 %v2917_v13, %s5352_s27  ;;  %v3919_v13 = vrot.slane %v3917_v34, 4 }
 0x276   : > { %v3006_v62 = vpop.permute.xlu1 %3005  ;;  %v7658_v10 = vor.u32 %v3596_v39, %v3593_v21  ;;  %v3982_v14 = vrot.slane %v3980_v50, 4 }
 0x277   : > { %3117 = vst.msk [vmem:[#allocation2 + $0x30] sm:$0xf] %vm3104_vm9, %v3006_v62  ;;  %v2299_v3 = vpop.permute.xlu0 %2298  ;;  %v5311_v22 = vld [vmem:[#allocation2 + $0x78] sm:$0xff]   ;;  %v3921_v62 = vsel %vm6294_vm5, %v3919_v13, %v3920_v7 }
 0x278   : > { %2389 = vst.msk [vmem:[#allocation2 + $0x84] sm:$0xf] %vm2355_vm7, %v2299_v3  ;;  %3645 = vrot.lane.b32.xlu1 %v3388_v0, %s5353_s5  ;;  %5233 = vmatmul.mubr.msk.bf16.gmra.mrb[16].mxu1 %vm4321_vm13, %v5311_v22  ;;  %v2029_v0 = vrot.slane %v2027_v30, 6  ;;  %v1810_v3 = vld [vmem:[%s5400_s19 + $0xac] sm:$0x3] }
 0x279   : > { %2686 = vrot.lane.b32.xlu0 %v2604_v36, %s5350_s24  ;;  %5236 = vmatprep.mubr.msk.bf16.mxu1 %vm5355_vm6, %v5351_v53  ;;  %v3589_v36 = vrot.slane %v3587_v56, 4  ;;  %v2224_v43 = vshrl.u32 %v1810_v3, 16  ;;  %v2227_v34 = vshll.u32 %v1810_v3, 16  ;;  %v3167_v30 = vld [vmem:[%s5400_s19 + $0x64] sm:$0xf] }
 0x27a   : > { %v2673_v31 = vpop.permute.xlu1 %2672  ;;  %v2030_v44 = vor.u32 %v2029_v0, %v2026_v60  ;;  %v2794_v56 = vld [vmem:[%s5400_s19 + $0x64] sm:$0xf]  ;;  %v3401_v25 = vshrl.u32 %v3167_v30, 16  ;;  %v3404_v11 = vshll.u32 %v3167_v30, 16  ;;  %v2438_v3 = vld [vmem:[%s5400_s19 + $0xac] sm:$0x3] }
 0x27b   : > { %2764 = vst.msk [vmem:[#allocation2 + $0x80] sm:$0xf] %vm2731_vm8, %v2673_v31  ;;  %v3008_v2 = vpop.permute.xlu0 %3007  ;;  %v3598_v58 = vsel %vm6270_vm2, %v3589_v36, %v7658_v10  ;;  %v2418_v31 = vld [vmem:[%s5400_s19 + $0x5c] sm:$0xf]  ;;  %v2229_v40 = vrot.slane %v2227_v34, 6  ;;  %v2919_v39 = vrot.slane %v2794_v56, 6 }
 0x27c   : > { %3118 = vst.msk [vmem:[#allocation2 + $0x34] sm:$0xf] %vm3104_vm9, %v3008_v2  ;;  %3057 = vrot.lane.b32.xlu1 %v2974_v29, %s5352_s27  ;;  %v3978_v29 = vsel %vm6294_vm5, %v3976_v28, %v3977_v63  ;;  %v2546_v32 = vrot.slane %v2418_v31, 6  ;;  %v2226_v2 = vrot.slane %v2224_v43, 5  ;;  %v2032_v9 = vrot.slane %v2030_v44, 4 }
 0x27d   : > { %3647 = vrot.lane.b32.xlu0 %v3398_v12, %s5353_s5  ;;  %v2031_v12 = vsel %vm6124_vm11, %v2022_v16, %v2030_v44  ;;  %v3403_v28 = vrot.slane %v3401_v25, 6  ;;  %v3406_v63 = vrot.slane %v3404_v11, 7  ;;  %v2918_v36 = vrot.slane %v2916_v8, 4  ;;  %v2814_v43 = vld [vmem:[%s5400_s19 + $0xb4] sm:$0x3] }
 0x27e   : > { %v3634_v26 = vpop.permute.xlu1 %3633  ;;  %v2547_v13 = vsel %vm6231_vm15, %v2545_v23, %v2546_v32  ;;  %v2230_v21 = vor.u32 %v2229_v40, %v2226_v2  ;;  %v2041_v60 = vsel %vm6124_vm11, %v2032_v9, %v6323_v17  ;;  %v2548_v0 = vrot.slane %v2546_v32, 4  ;;  %v3795_v34 = vld [vmem:[%s5400_s19 + $0x64] sm:$0xf] }
 0x27f   : > { %3745 = vst.msk [vmem:[#allocation2 + $0x30] sm:$0xf] %vm3732_vm10, %v3634_v26  ;;  %v2675_v55 = vpop.permute.xlu0 %2674  ;;  %v3407_v41 = vor.u32 %v3406_v63, %v3403_v28  ;;  %v2605_v8 = vrot.slane %v2603_v57, 4  ;;  %v2606_v54 = vrot.slane %v2438_v3, 6  ;;  %v2979_v31 = vrot.slane %v2814_v43, 6 }
 0x280   : > { %2765 = vst.msk [vmem:[#allocation2 + $0x84] sm:$0xf] %vm2731_vm8, %v2675_v55  ;;  %4021 = vrot.lane.b32.xlu1 %v3918_v49, %s5354_s6  ;;  %v2231_v37 = vsel %vm6124_vm11, %v2222_v42, %v2230_v21  ;;  %v2550_v17 = vsel %vm6231_vm15, %v2548_v0, %v2549_v52  ;;  %vm4795_vm11 = vcmask 60416   ;;  %v3922_v21 = vrot.slane %v3920_v7, 4 }
 0x281   : > { %3059 = vrot.lane.b32.xlu0 %v2977_v35, %s5352_s27  ;;  %v3981_v35 = vsel %vm6294_vm5, %v3979_v19, %v3980_v50  ;;  %v3408_v57 = vsel %vm6270_vm2, %v3399_v46, %v3407_v41  ;;  %v2978_v19 = vrot.slane %v2976_v6, 4  ;;  %v2607_v32 = vsel %vm6231_vm15, %v2605_v8, %v2606_v54 }
 0x282   : > { %v3046_v38 = vpop.permute.xlu1 %3045  ;;  %v3409_v2 = vrot.slane %v3407_v41, 4  ;;  %v3599_v63 = vrot.slane %v7658_v10, 4 }
 0x283   : > { %3137 = vst.msk [vmem:[#allocation2 + $0x80] sm:$0xf] %vm3104_vm9, %v3046_v38  ;;  %v3636_v22 = vpop.permute.xlu0 %3635  ;;  %v2921_v38 = vrot.slane %v2919_v39, 4  ;;  %v2980_v25 = vsel %vm6231_vm15, %v2978_v19, %v2979_v31 }
 0x284   : > { %3746 = vst.msk [vmem:[#allocation2 + $0x34] sm:$0xf] %vm3732_vm10, %v3636_v22  ;;  %3685 = vrot.lane.b32.xlu1 %v3588_v51, %s5353_s5  ;;  %v3418_v42 = vsel %vm6270_vm2, %v3409_v2, %v6435_v61 }
 0x285   : > { %4023 = vrot.lane.b32.xlu0 %v3921_v62, %s5354_s6  ;;  %v2923_v52 = vsel %vm6231_vm15, %v2921_v38, %v2922_v15  ;;  %v3187_v15 = vld [vmem:[%s5400_s19 + $0xb4] sm:$0x7] }
 0x286   : > { %v4010_v24 = vpop.permute.xlu1 %4009  ;;  %v3601_v40 = vshrl.u32 %v3187_v15, 16  ;;  %v3604_v30 = vshll.u32 %v3187_v15, 16 }
 0x287   : > { %4121 = vst.msk [vmem:[#allocation2 + $0x30] sm:$0xf] %vm4108_vm12, %v4010_v24  ;;  %v3048_v20 = vpop.permute.xlu0 %3047 }
 0x288   : > { %3138 = vst.msk [vmem:[#allocation2 + $0x84] sm:$0xf] %vm3104_vm9, %v3048_v20  ;;  %4061 = vrot.lane.b32.xlu1 %v3978_v29, %s5354_s6  ;;  %v2920_v29 = vsel %vm6231_vm15, %v2918_v36, %v2919_v39  ;;  %v3923_v20 = vrot.slane %v3795_v34, 7  ;;  %v3603_v39 = vrot.slane %v3601_v40, 6 }
 0x289   : > { %3687 = vrot.lane.b32.xlu0 %v3598_v58, %s5353_s5 }
 0x28a   : > { %v3674_v49 = vpop.permute.xlu1 %3673  ;;  %v3925_v11 = vrot.slane %v3923_v20, 4  ;;  %v3924_v28 = vsel %vm6294_vm5, %v3922_v21, %v3923_v20 }
 0x28b   : > { %3765 = vst.msk [vmem:[#allocation2 + $0x80] sm:$0xf] %vm3732_vm10, %v3674_v49  ;;  %v4012_v26 = vpop.permute.xlu0 %4011 }
 0x28c   : > { %4122 = vst.msk [vmem:[#allocation2 + $0x34] sm:$0xf] %vm4108_vm12, %v4012_v26  ;;  %2272 = vrot.lane.b32.xlu1 %v2031_v12, %s5349_s23  ;;  %v3927_v61 = vsel %vm6294_vm5, %v3925_v11, %v3926_v47 }
 0x28d   : > { %4063 = vrot.lane.b32.xlu0 %v3981_v35, %s5354_s6 }
 0x28e   : > { %v4050_v55 = vpop.permute.xlu1 %4049 }
 0x28f   : > { %4141 = vst.msk [vmem:[#allocation2 + $0x80] sm:$0xf] %vm4108_vm12, %v4050_v55  ;;  %v3676_v51 = vpop.permute.xlu0 %3675  ;;  %v3606_v55 = vrot.slane %v3604_v30, 7 }
 0x290   : > { %3766 = vst.msk [vmem:[#allocation2 + $0x84] sm:$0xf] %vm3732_vm10, %v3676_v51  ;;  %2648 = vrot.lane.b32.xlu1 %v2547_v13, %s5350_s24 }
 0x291   : > { %2274 = vrot.lane.b32.xlu0 %v2041_v60, %s5349_s23  ;;  %v3815_v60 = vld [vmem:[%s5400_s19 + $0xb4] sm:$0x7] }
 0x292   : > { %v2637_v62 = vpop.permute.xlu1 %2636  ;;  %v3983_v7 = vrot.slane %v3815_v60, 7 }
 0x293   : > { %2746 = vst.msk [vmem:[#allocation2 + $0x38] sm:$0xf] %vm2731_vm8, %v2637_v62  ;;  %v4052_v22 = vpop.permute.xlu0 %4051  ;;  %v5312_v16 = vld [vmem:[#allocation2 + $0x30] sm:$0xff]  }
 0x294   : > { %4142 = vst.msk [vmem:[#allocation2 + $0x84] sm:$0xf] %vm4108_vm12, %v4052_v22  ;;  %2312 = vrot.lane.b32.xlu1 %v2231_v37, %s5349_s23  ;;  %5197 = vmatmul.mubr.msk.bf16.gmra.mrb[24].mxu0 %vm4321_vm13, %v5312_v16  ;;  %v3607_v37 = vor.u32 %v3606_v55, %v3603_v39  ;;  %v3984_v1 = vsel %vm6294_vm5, %v3982_v14, %v3983_v7 }
 0x295   : > { %2650 = vrot.lane.b32.xlu0 %v2550_v17, %s5350_s24  ;;  %5200 = vmatprep.mubr.msk.bf16.mxu0 %vm5355_vm6, %v5351_v53 }
 0x296   : > { %v2301_v44 = vpop.permute.xlu1 %2300  ;;  %v3608_v33 = vsel %vm6270_vm2, %v3599_v63, %v3607_v37 }
 0x297   : > { %2390 = vst.msk [vmem:[#allocation2 + $0x88] sm:$0xf] %vm2355_vm7, %v2301_v44  ;;  %v2639_v4 = vpop.permute.xlu0 %2638  ;;  %v4423_v5 = vpop.f32.mrb[0].mxu0 }
 0x298   : > { %2747 = vst.msk [vmem:[#allocation2 + $0x3c] sm:$0xf] %vm2731_vm8, %v2639_v4  ;;  %3023 = vrot.lane.b32.xlu1 %v2923_v52, %s5352_s27  ;;  %v4424_v24 = vadd.f32 %v7726_v59, %v4423_v5  ;;  %v5174_v58 = vpop.f32.mrb[1].mxu0 }
 0x299   : > { %3021 = vrot.lane.b32.xlu0 %v2920_v29, %s5352_s27  ;;  %v4426_v23 = vpop.f32.mrb[2].mxu0 }
 0x29a   : > { %v3010_v12 = vpop.permute.xlu1 %3009  ;;  %v4589_v49 = vmax.f32 %v4424_v24, 0.0  ;;  %v4427_v9 = vadd.f32 %v7726_v59, %v4426_v23  ;;  %v5175_v56 = vpop.f32.mrb[3].mxu0 }
 0x29b   : > { %3119 = vst.msk [vmem:[#allocation2 + $0x38] sm:$0xf] %vm3104_vm9, %v3010_v12  ;;  %v2303_v35 = vpop.permute.xlu0 %2302  ;;  %v5313_v26 = vld [vmem:[#allocation2 + $0x80] sm:$0xff]  }
 0x29c   : > { %2391 = vst.msk [vmem:[#allocation2 + $0x8c] sm:$0xf] %vm2355_vm7, %v2303_v35  ;;  %3649 = vrot.lane.b32.xlu1 %v3408_v57, %s5353_s5  ;;  %v5101_v45 = vpack.c.bf16 %v4589_v49, %v4589_v49  ;;  %v4590_v6 = vmax.f32 %v4427_v9, 0.0  ;;  %5237 = vmatmul.mubr.msk.bf16.gmra.mrb[20].mxu1 %vm4321_vm13, %v5313_v26 }
 0x29d   : > { %2688 = vrot.lane.b32.xlu0 %v2607_v32, %s5350_s24  ;;  %5240 = vmatprep.mubr.msk.bf16.mxu1 %vm5355_vm6, %v5351_v53 }
 0x29e   : > { %v2677_v13 = vpop.permute.xlu1 %2676  ;;  %4796 = vst.msk [vmem:[%s7754_s12] sm:$0xf] %vm4795_vm11, %v5101_v45  ;;  %v5102_v18 = vpack.c.bf16 %v4590_v6, %v4590_v6 }
 0x29f   : > { %2766 = vst.msk [vmem:[#allocation2 + $0x88] sm:$0xf] %vm2731_vm8, %v2677_v13  ;;  %v3012_v0 = vpop.permute.xlu0 %3011 }
 0x2a0   : > { %3120 = vst.msk [vmem:[#allocation2 + $0x3c] sm:$0xf] %vm3104_vm9, %v3012_v0  ;;  %3061 = vrot.lane.b32.xlu1 %v2980_v25, %s5352_s27 }
 0x2a1   : > { %4797 = vst.msk [vmem:[%s7754_s12 + $0x4] sm:$0xf] %vm4795_vm11, %v5102_v18  ;;  %3651 = vrot.lane.b32.xlu0 %v3418_v42, %s5353_s5 }
 0x2a2   : > { %v3638_v51 = vpop.permute.xlu1 %3637 }
 0x2a3   : > { %3747 = vst.msk [vmem:[#allocation2 + $0x38] sm:$0xf] %vm3732_vm10, %v3638_v51  ;;  %v2679_v38 = vpop.permute.xlu0 %2678 }
 0x2a4   : > { %2767 = vst.msk [vmem:[#allocation2 + $0x8c] sm:$0xf] %vm2731_vm8, %v2679_v38  ;;  %4027 = vrot.lane.b32.xlu1 %v3927_v61, %s5354_s6 }
 0x2a5   : > { %4025 = vrot.lane.b32.xlu0 %v3924_v28, %s5354_s6 }
 0x2a6   : > { %v3050_v47 = vpop.permute.xlu1 %3049 }
 0x2a7   : > { %3139 = vst.msk [vmem:[#allocation2 + $0x88] sm:$0xf] %vm3104_vm9, %v3050_v47  ;;  %v3640_v10 = vpop.permute.xlu0 %3639 }
 0x2a8   : > { %3748 = vst.msk [vmem:[#allocation2 + $0x3c] sm:$0xf] %vm3732_vm10, %v3640_v10  ;;  %4065 = vrot.lane.b32.xlu1 %v3984_v1, %s5354_s6 }
 0x2a9   : > { %3689 = vrot.lane.b32.xlu0 %v3608_v33, %s5353_s5 }
 0x2aa   : > { %v4014_v50 = vpop.permute.xlu1 %4013 }
 0x2ab   : > { %4123 = vst.msk [vmem:[#allocation2 + $0x38] sm:$0xf] %vm4108_vm12, %v4014_v50  ;;  %v3052_v62 = vpop.permute.xlu0 %3051 }
 0x2ac   : > { %3140 = vst.msk [vmem:[#allocation2 + $0x8c] sm:$0xf] %vm3104_vm9, %v3052_v62 }
 0x2ae   : > { %v3678_v27 = vpop.permute.xlu1 %3677 }
 0x2af   : > { %3767 = vst.msk [vmem:[#allocation2 + $0x88] sm:$0xf] %vm3732_vm10, %v3678_v27  ;;  %v4016_v48 = vpop.permute.xlu0 %4015 }
 0x2b0   : > { %4124 = vst.msk [vmem:[#allocation2 + $0x3c] sm:$0xf] %vm4108_vm12, %v4016_v48 }
 0x2b2   : > { %v4054_v17 = vpop.permute.xlu1 %4053 }
 0x2b3   : > { %4143 = vst.msk [vmem:[#allocation2 + $0x88] sm:$0xf] %vm4108_vm12, %v4054_v17  ;;  %v3680_v36 = vpop.permute.xlu0 %3679  ;;  %v4431_v3 = vpop.f32.mrb[4].mxu0 }
 0x2b4   : > { %3768 = vst.msk [vmem:[#allocation2 + $0x8c] sm:$0xf] %vm3732_vm10, %v3680_v36  ;;  %v4432_v22 = vadd.f32 %v7726_v59, %v4431_v3  ;;  %v5178_v16 = vpop.f32.mrb[5].mxu0 }
 0x2b5   : > { %v4434_v41 = vpop.f32.mrb[6].mxu0 }
 0x2b6   : > { %v2641_v46 = vpop.permute.xlu1 %2640  ;;  %v4591_v52 = vmax.f32 %v4432_v22, 0.0  ;;  %v4435_v54 = vadd.f32 %v7726_v59, %v4434_v41  ;;  %v5179_v44 = vpop.f32.mrb[7].mxu0 }
 0x2b7   : > { %2748 = vst.msk [vmem:[#allocation2 + $0x40] sm:$0xf] %vm2731_vm8, %v2641_v46  ;;  %v4056_v8 = vpop.permute.xlu0 %4055  ;;  %v5314_v29 = vld [vmem:[#allocation2 + $0x38] sm:$0xff]  }
 0x2b8   : > { %4144 = vst.msk [vmem:[#allocation2 + $0x8c] sm:$0xf] %vm4108_vm12, %v4056_v8  ;;  %v5103_v43 = vpack.c.bf16 %v4591_v52, %v4591_v52  ;;  %v4592_v34 = vmax.f32 %v4435_v54, 0.0  ;;  %5201 = vmatmul.mubr.msk.bf16.gmra.mrb[28].mxu0 %vm4321_vm13, %v5314_v29 }
 0x2b9   : > { %5204 = vmatprep.mubr.msk.bf16.mxu0 %vm5355_vm6, %v5351_v53 }
 0x2ba   : > { %v2305_v4 = vpop.permute.xlu1 %2304  ;;  %4798 = vst.msk [vmem:[%s7754_s12 + $0x8] sm:$0xf] %vm4795_vm11, %v5103_v43  ;;  %v5104_v15 = vpack.c.bf16 %v4592_v34, %v4592_v34 }
 0x2bb   : > { %2392 = vst.msk [vmem:[#allocation2 + $0x90] sm:$0xf] %vm2355_vm7, %v2305_v4  ;;  %v2643_v5 = vpop.permute.xlu0 %2642  ;;  %v4511_v57 = vpop.f32.mrb[0].mxu1 }
 0x2bc   : > { %2749 = vst.msk [vmem:[#allocation2 + $0x44] sm:$0xf] %vm2731_vm8, %v2643_v5  ;;  %v4512_v24 = vadd.f32 %v7726_v59, %v4511_v57  ;;  %v5218_v58 = vpop.f32.mrb[1].mxu1 }
 0x2bd   : > { %4799 = vst.msk [vmem:[%s7754_s12 + $0xc] sm:$0xf] %vm4795_vm11, %v5104_v15  ;;  %v4514_v31 = vpop.f32.mrb[2].mxu1 }
 0x2be   : > { %v3014_v19 = vpop.permute.xlu1 %3013  ;;  %v4611_v20 = vmax.f32 %v4512_v24, 0.0  ;;  %v4515_v23 = vadd.f32 %v7726_v59, %v4514_v31  ;;  %v5219_v32 = vpop.f32.mrb[3].mxu1 }
 0x2bf   : > { %3121 = vst.msk [vmem:[#allocation2 + $0x40] sm:$0xf] %vm3104_vm9, %v3014_v19  ;;  %v2307_v12 = vpop.permute.xlu0 %2306  ;;  %v5315_v2 = vld [vmem:[#allocation2 + $0x88] sm:$0xff]  }
 0x2c0   : > { %2393 = vst.msk [vmem:[#allocation2 + $0x94] sm:$0xf] %vm2355_vm7, %v2307_v12  ;;  %v5123_v40 = vpack.c.bf16 %v4611_v20, %v4611_v20  ;;  %v4612_v30 = vmax.f32 %v4515_v23, 0.0  ;;  %5241 = vmatmul.mubr.msk.bf16.gmra.mrb[24].mxu1 %vm4321_vm13, %v5315_v2 }
 0x2c1   : > { %5244 = vmatprep.mubr.msk.bf16.mxu1 %vm5355_vm6, %v5351_v53 }
 0x2c2   : > { %v2681_v49 = vpop.permute.xlu1 %2680  ;;  %4818 = vst.msk [vmem:[%s7754_s12 + $0x58] sm:$0xf] %vm4795_vm11, %v5123_v40  ;;  %v5124_v35 = vpack.c.bf16 %v4612_v30, %v4612_v30 }
 0x2c3   : > { %2768 = vst.msk [vmem:[#allocation2 + $0x90] sm:$0xf] %vm2731_vm8, %v2681_v49  ;;  %v3016_v9 = vpop.permute.xlu0 %3015 }
 0x2c4   : > { %3122 = vst.msk [vmem:[#allocation2 + $0x44] sm:$0xf] %vm3104_vm9, %v3016_v9 }
 0x2c5   : > { %4819 = vst.msk [vmem:[%s7754_s12 + $0x5c] sm:$0xf] %vm4795_vm11, %v5124_v35 }
 0x2c6   : > { %v3642_v56 = vpop.permute.xlu1 %3641 }
 0x2c7   : > { %3749 = vst.msk [vmem:[#allocation2 + $0x40] sm:$0xf] %vm3732_vm10, %v3642_v56  ;;  %v2683_v26 = vpop.permute.xlu0 %2682 }
 0x2c8   : > { %2769 = vst.msk [vmem:[#allocation2 + $0x94] sm:$0xf] %vm2731_vm8, %v2683_v26 }
 0x2ca   : > { %v3054_v45 = vpop.permute.xlu1 %3053 }
 0x2cb   : > { %3141 = vst.msk [vmem:[#allocation2 + $0x90] sm:$0xf] %vm3104_vm9, %v3054_v45  ;;  %v3644_v6 = vpop.permute.xlu0 %3643 }
 0x2cc   : > { %3750 = vst.msk [vmem:[#allocation2 + $0x44] sm:$0xf] %vm3732_vm10, %v3644_v6 }
 0x2ce   : > { %v4018_v25 = vpop.permute.xlu1 %4017 }
 0x2cf   : > { %4125 = vst.msk [vmem:[#allocation2 + $0x40] sm:$0xf] %vm4108_vm12, %v4018_v25  ;;  %v3056_v11 = vpop.permute.xlu0 %3055 }
 0x2d0   : > { %3142 = vst.msk [vmem:[#allocation2 + $0x94] sm:$0xf] %vm3104_vm9, %v3056_v11 }
 0x2d2   : > { %v3682_v13 = vpop.permute.xlu1 %3681 }
 0x2d3   : > { %3769 = vst.msk [vmem:[#allocation2 + $0x90] sm:$0xf] %vm3732_vm10, %v3682_v13  ;;  %v4020_v42 = vpop.permute.xlu0 %4019 }
 0x2d4   : > { %4126 = vst.msk [vmem:[#allocation2 + $0x44] sm:$0xf] %vm4108_vm12, %v4020_v42 }
 0x2d6   : > { %v4058_v21 = vpop.permute.xlu1 %4057 }
 0x2d7   : > { %4145 = vst.msk [vmem:[#allocation2 + $0x90] sm:$0xf] %vm4108_vm12, %v4058_v21  ;;  %v3684_v39 = vpop.permute.xlu0 %3683  ;;  %v4439_v55 = vpop.f32.mrb[8].mxu0 }
 0x2d8   : > { %3770 = vst.msk [vmem:[#allocation2 + $0x94] sm:$0xf] %vm3732_vm10, %v3684_v39  ;;  %v4440_v60 = vadd.f32 %v7726_v59, %v4439_v55  ;;  %v5182_v18 = vpop.f32.mrb[9].mxu0 }
 0x2d9   : > { %v4442_v61 = vpop.f32.mrb[10].mxu0 }
 0x2da   : > { %v2645_v0 = vpop.permute.xlu1 %2644  ;;  %v4593_v14 = vmax.f32 %v4440_v60, 0.0  ;;  %v4443_v51 = vadd.f32 %v7726_v59, %v4442_v61  ;;  %v5183_v28 = vpop.f32.mrb[11].mxu0 }
 0x2db   : > { %2750 = vst.msk [vmem:[#allocation2 + $0x48] sm:$0xf] %vm2731_vm8, %v2645_v0  ;;  %v4060_v7 = vpop.permute.xlu0 %4059  ;;  %v5316_v63 = vld [vmem:[#allocation2 + $0x40] sm:$0xff]  }
 0x2dc   : > { %4146 = vst.msk [vmem:[#allocation2 + $0x94] sm:$0xf] %vm4108_vm12, %v4060_v7  ;;  %v5105_v37 = vpack.c.bf16 %v4593_v14, %v4593_v14  ;;  %v4594_v38 = vmax.f32 %v4443_v51, 0.0  ;;  %5205 = vmatmul.mubr.msk.bf16.gmra.mrb[32].mxu0 %vm4321_vm13, %v5316_v63 }
 0x2dd   : > { %5208 = vmatprep.mubr.msk.bf16.mxu0 %vm5355_vm6, %v5351_v53 }
 0x2de   : > { %v2309_v1 = vpop.permute.xlu1 %2308  ;;  %4800 = vst.msk [vmem:[%s7754_s12 + $0x10] sm:$0xf] %vm4795_vm11, %v5105_v37  ;;  %v5106_v47 = vpack.c.bf16 %v4594_v38, %v4594_v38 }
 0x2df   : > { %2394 = vst.msk [vmem:[#allocation2 + $0x98] sm:$0xf] %vm2355_vm7, %v2309_v1  ;;  %v2647_v33 = vpop.permute.xlu0 %2646  ;;  %v4519_v10 = vpop.f32.mrb[4].mxu1 }
 0x2e0   : > { %2751 = vst.msk [vmem:[#allocation2 + $0x4c] sm:$0xf] %vm2731_vm8, %v2647_v33  ;;  %v4520_v50 = vadd.f32 %v7726_v59, %v4519_v10  ;;  %v5222_v62 = vpop.f32.mrb[5].mxu1 }
 0x2e1   : > { %4801 = vst.msk [vmem:[%s7754_s12 + $0x14] sm:$0xf] %vm4795_vm11, %v5106_v47  ;;  %v4522_v48 = vpop.f32.mrb[6].mxu1 }
 0x2e2   : > { %v3018_v27 = vpop.permute.xlu1 %3017  ;;  %v4613_v17 = vmax.f32 %v4520_v50, 0.0  ;;  %v4523_v3 = vadd.f32 %v7726_v59, %v4522_v48  ;;  %v5223_v22 = vpop.f32.mrb[7].mxu1 }
 0x2e3   : > { %3123 = vst.msk [vmem:[#allocation2 + $0x48] sm:$0xf] %vm3104_vm9, %v3018_v27  ;;  %v2311_v36 = vpop.permute.xlu0 %2310  ;;  %v5317_v16 = vld [vmem:[#allocation2 + $0x90] sm:$0xff]  }
 0x2e4   : > { %2395 = vst.msk [vmem:[#allocation2 + $0x9c] sm:$0xf] %vm2355_vm7, %v2311_v36  ;;  %v5125_v46 = vpack.c.bf16 %v4613_v17, %v4613_v17  ;;  %v4614_v41 = vmax.f32 %v4523_v3, 0.0  ;;  %5245 = vmatmul.mubr.msk.bf16.gmra.mrb[28].mxu1 %vm4321_vm13, %v5317_v16 }
 0x2e5   : > { %5248 = vmatprep.mubr.msk.bf16.mxu1 %vm5355_vm6, %v5351_v53 }
 0x2e6   : > { %v2685_v52 = vpop.permute.xlu1 %2684  ;;  %4820 = vst.msk [vmem:[%s7754_s12 + $0x60] sm:$0xf] %vm4795_vm11, %v5125_v46  ;;  %v5126_v8 = vpack.c.bf16 %v4614_v41, %v4614_v41 }
 0x2e7   : > { %2770 = vst.msk [vmem:[#allocation2 + $0x98] sm:$0xf] %vm2731_vm8, %v2685_v52  ;;  %v3020_v54 = vpop.permute.xlu0 %3019 }
 0x2e8   : > { %3124 = vst.msk [vmem:[#allocation2 + $0x4c] sm:$0xf] %vm3104_vm9, %v3020_v54 }
 0x2e9   : > { %4821 = vst.msk [vmem:[%s7754_s12 + $0x64] sm:$0xf] %vm4795_vm11, %v5126_v8 }
 0x2ea   : > { %v3646_v44 = vpop.permute.xlu1 %3645 }
 0x2eb   : > { %3751 = vst.msk [vmem:[#allocation2 + $0x48] sm:$0xf] %vm3732_vm10, %v3646_v44  ;;  %v2687_v29 = vpop.permute.xlu0 %2686 }
 0x2ec   : > { %2771 = vst.msk [vmem:[#allocation2 + $0x9c] sm:$0xf] %vm2731_vm8, %v2687_v29 }
 0x2ee   : > { %v3058_v43 = vpop.permute.xlu1 %3057 }
 0x2ef   : > { %3143 = vst.msk [vmem:[#allocation2 + $0x98] sm:$0xf] %vm3104_vm9, %v3058_v43  ;;  %v3648_v34 = vpop.permute.xlu0 %3647 }
 0x2f0   : > { %3752 = vst.msk [vmem:[#allocation2 + $0x4c] sm:$0xf] %vm3732_vm10, %v3648_v34 }
 0x2f2   : > { %v4022_v4 = vpop.permute.xlu1 %4021 }
 0x2f3   : > { %4127 = vst.msk [vmem:[#allocation2 + $0x48] sm:$0xf] %vm4108_vm12, %v4022_v4  ;;  %v3060_v15 = vpop.permute.xlu0 %3059 }
 0x2f4   : > { %3144 = vst.msk [vmem:[#allocation2 + $0x9c] sm:$0xf] %vm3104_vm9, %v3060_v15 }
 0x2f6   : > { %v3686_v5 = vpop.permute.xlu1 %3685 }
 0x2f7   : > { %3771 = vst.msk [vmem:[#allocation2 + $0x98] sm:$0xf] %vm3732_vm10, %v3686_v5  ;;  %v4024_v57 = vpop.permute.xlu0 %4023 }
 0x2f8   : > { %4128 = vst.msk [vmem:[#allocation2 + $0x4c] sm:$0xf] %vm4108_vm12, %v4024_v57 }
 0x2fa   : > { %v4062_v24 = vpop.permute.xlu1 %4061 }
 0x2fb   : > { %4147 = vst.msk [vmem:[#allocation2 + $0x98] sm:$0xf] %vm4108_vm12, %v4062_v24  ;;  %v3688_v58 = vpop.permute.xlu0 %3687  ;;  %v4447_v19 = vpop.f32.mrb[12].mxu0 }
 0x2fc   : > { %3772 = vst.msk [vmem:[#allocation2 + $0x9c] sm:$0xf] %vm3732_vm10, %v3688_v58  ;;  %v4448_v31 = vadd.f32 %v7726_v59, %v4447_v19  ;;  %v5186_v20 = vpop.f32.mrb[13].mxu0 }
 0x2fd   : > { %v4450_v23 = vpop.f32.mrb[14].mxu0 }
 0x2fe   : > { %v2273_v12 = vpop.permute.xlu1 %2272  ;;  %v4595_v32 = vmax.f32 %v4448_v31, 0.0  ;;  %v4451_v40 = vadd.f32 %v7726_v59, %v4450_v23  ;;  %v5187_v30 = vpop.f32.mrb[15].mxu0 }
 0x2ff   : > { %2376 = vst.msk [vmem:[#allocation2 + $0x50] sm:$0xf] %vm2355_vm7, %v2273_v12  ;;  %v4064_v2 = vpop.permute.xlu0 %4063  ;;  %v5318_v49 = vld [vmem:[#allocation2 + $0x48] sm:$0xff]  }
 0x300   : > { %4148 = vst.msk [vmem:[#allocation2 + $0x9c] sm:$0xf] %vm4108_vm12, %v4064_v2  ;;  %v5107_v35 = vpack.c.bf16 %v4595_v32, %v4595_v32  ;;  %v4596_v9 = vmax.f32 %v4451_v40, 0.0  ;;  %5209 = vmatmul.mubr.msk.bf16.gmra.mrb[36].mxu0 %vm4321_vm13, %v5318_v49 }
 0x301   : > { %5212 = vmatprep.mubr.msk.bf16.mxu0 %vm5355_vm6, %v5351_v53 }
 0x302   : > { %v2649_v56 = vpop.permute.xlu1 %2648  ;;  %4802 = vst.msk [vmem:[%s7754_s12 + $0x18] sm:$0xf] %vm4795_vm11, %v5107_v35  ;;  %v5108_v26 = vpack.c.bf16 %v4596_v9, %v4596_v9 }
 0x303   : > { %2752 = vst.msk [vmem:[#allocation2 + $0x50] sm:$0xf] %vm2731_vm8, %v2649_v56  ;;  %v2275_v45 = vpop.permute.xlu0 %2274  ;;  %v4527_v6 = vpop.f32.mrb[8].mxu1 }
 0x304   : > { %2377 = vst.msk [vmem:[#allocation2 + $0x54] sm:$0xf] %vm2355_vm7, %v2275_v45  ;;  %v4528_v25 = vadd.f32 %v7726_v59, %v4527_v6  ;;  %v5226_v11 = vpop.f32.mrb[9].mxu1 }
 0x305   : > { %4803 = vst.msk [vmem:[%s7754_s12 + $0x1c] sm:$0xf] %vm4795_vm11, %v5108_v26  ;;  %v4530_v42 = vpop.f32.mrb[10].mxu1 }
 0x306   : > { %v2313_v13 = vpop.permute.xlu1 %2312  ;;  %v4615_v21 = vmax.f32 %v4528_v25, 0.0  ;;  %v4531_v55 = vadd.f32 %v7726_v59, %v4530_v42  ;;  %v5227_v60 = vpop.f32.mrb[11].mxu1 }
 0x307   : > { %2396 = vst.msk [vmem:[#allocation2 + $0xa0] sm:$0xf] %vm2355_vm7, %v2313_v13  ;;  %v2651_v39 = vpop.permute.xlu0 %2650  ;;  %v5319_v18 = vld [vmem:[#allocation2 + $0x98] sm:$0xff]  }
 0x308   : > { %2753 = vst.msk [vmem:[#allocation2 + $0x54] sm:$0xf] %vm2731_vm8, %v2651_v39  ;;  %v5127_v0 = vpack.c.bf16 %v4615_v21, %v4615_v21  ;;  %v4616_v61 = vmax.f32 %v4531_v55, 0.0  ;;  %5249 = vmatmul.mubr.msk.bf16.gmra.mrb[32].mxu1 %vm4321_vm13, %v5319_v18 }
 0x309   : > { %5252 = vmatprep.mubr.msk.bf16.mxu1 %vm5355_vm6, %v5351_v53 }
 0x30a   : > { %v3024_v14 = vpop.permute.xlu1 %3023  ;;  %4822 = vst.msk [vmem:[%s7754_s12 + $0x68] sm:$0xf] %vm4795_vm11, %v5127_v0  ;;  %v5128_v7 = vpack.c.bf16 %v4616_v61, %v4616_v61 }
 0x30b   : > { %3126 = vst.msk [vmem:[#allocation2 + $0x54] sm:$0xf] %vm3104_vm9, %v3024_v14  ;;  %v3022_v51 = vpop.permute.xlu0 %3021 }
 0x30c   : > { %3125 = vst.msk [vmem:[#allocation2 + $0x50] sm:$0xf] %vm3104_vm9, %v3022_v51 }
 0x30d   : > { %4823 = vst.msk [vmem:[%s7754_s12 + $0x6c] sm:$0xf] %vm4795_vm11, %v5128_v7 }
 0x30e   : > { %v3650_v28 = vpop.permute.xlu1 %3649 }
 0x30f   : > { %3753 = vst.msk [vmem:[#allocation2 + $0x50] sm:$0xf] %vm3732_vm10, %v3650_v28  ;;  %v2689_v63 = vpop.permute.xlu0 %2688 }
 0x310   : > { %2772 = vst.msk [vmem:[#allocation2 + $0xa0] sm:$0xf] %vm2731_vm8, %v2689_v63 }
 0x312   : > { %v3062_v37 = vpop.permute.xlu1 %3061 }
 0x313   : > { %3145 = vst.msk [vmem:[#allocation2 + $0xa0] sm:$0xf] %vm3104_vm9, %v3062_v37  ;;  %v3652_v53 = vpop.permute.xlu0 %3651 }
 0x314   : > { %3754 = vst.msk [vmem:[#allocation2 + $0x54] sm:$0xf] %vm3732_vm10, %v3652_v53 }
 0x316   : > { %v4028_v38 = vpop.permute.xlu1 %4027 }
 0x317   : > { %4130 = vst.msk [vmem:[#allocation2 + $0x54] sm:$0xf] %vm4108_vm12, %v4028_v38  ;;  %v4026_v1 = vpop.permute.xlu0 %4025 }
 0x318   : > { %4129 = vst.msk [vmem:[#allocation2 + $0x50] sm:$0xf] %vm4108_vm12, %v4026_v1 }
 0x31a   : > { %v4066_v47 = vpop.permute.xlu1 %4065 }
 0x31b   : > { %v3690_v33 = vpop.permute.xlu0 %3689 }
 0x31c   : > { %3773 = vst.msk [vmem:[#allocation2 + $0xa0] sm:$0xf] %vm3732_vm10, %v3690_v33 }
 0x31d   : > { %4149 = vst.msk [vmem:[#allocation2 + $0xa0] sm:$0xf] %vm4108_vm12, %v4066_v47 }
 0x31f   : > { %v5320_v10 = vld [vmem:[#allocation2 + $0x50] sm:$0xff]   ;;  %v4455_v50 = vpop.f32.mrb[16].mxu0 }
 0x320   : > { %v4456_v62 = vadd.f32 %v7726_v59, %v4455_v50  ;;  %v5190_v27 = vpop.f32.mrb[17].mxu0  ;;  %5213 = vmatmul.mubr.msk.bf16.gmra.mrb[40].mxu0 %vm4321_vm13, %v5320_v10 }
 0x321   : > { %v4458_v48 = vpop.f32.mrb[18].mxu0 }
 0x322   : > { %v4597_v17 = vmax.f32 %v4456_v62, 0.0  ;;  %v4459_v36 = vadd.f32 %v7726_v59, %v4458_v48  ;;  %v5191_v3 = vpop.f32.mrb[19].mxu0 }
 0x324   : > { %v5321_v22 = vld [vmem:[#allocation2 + $0xa0] ss:$0 sps:$4 sm:$0xff]   ;;  %v5109_v16 = vpack.c.bf16 %v4597_v17, %v4597_v17  ;;  %v4598_v46 = vmax.f32 %v4459_v36, 0.0 }
 0x325   : > { %5253 = vmatmul.mubr.msk.bf16.gmra.mrb[36].mxu1 %vm4321_vm13, %v5321_v22 }
 0x326   : > { %4804 = vst.msk [vmem:[%s7754_s12 + $0x20] sm:$0xf] %vm4795_vm11, %v5109_v16  ;;  %v5110_v41 = vpack.c.bf16 %v4598_v46, %v4598_v46 }
 0x327   : > { %v4535_v52 = vpop.f32.mrb[12].mxu1 }
 0x328   : > { %4805 = vst.msk [vmem:[%s7754_s12 + $0x24] sm:$0xf] %vm4795_vm11, %v5110_v41  ;;  %v4536_v8 = vadd.f32 %v7726_v59, %v4535_v52  ;;  %v5230_v54 = vpop.f32.mrb[13].mxu1 }
 0x329   : > { %v4538_v44 = vpop.f32.mrb[14].mxu1 }
 0x32a   : > { %v4617_v29 = vmax.f32 %v4536_v8, 0.0  ;;  %v4539_v43 = vadd.f32 %v7726_v59, %v4538_v44  ;;  %v5231_v34 = vpop.f32.mrb[15].mxu1 }
 0x32c   : > { %v5129_v4 = vpack.c.bf16 %v4617_v29, %v4617_v29  ;;  %v4618_v15 = vmax.f32 %v4539_v43, 0.0 }
 0x32e   : > { %4824 = vst.msk [vmem:[%s7754_s12 + $0x70] sm:$0xf] %vm4795_vm11, %v5129_v4  ;;  %v5130_v5 = vpack.c.bf16 %v4618_v15, %v4618_v15 }
 0x330   : > { %4825 = vst.msk [vmem:[%s7754_s12 + $0x74] sm:$0xf] %vm4795_vm11, %v5130_v5 }
 0x343   : > { %v4463_v57 = vpop.f32.mrb[20].mxu0 }
 0x344   : > { %v4464_v24 = vadd.f32 %v7726_v59, %v4463_v57  ;;  %v5194_v58 = vpop.f32.mrb[21].mxu0 }
 0x345   : > { %v4466_v19 = vpop.f32.mrb[22].mxu0 }
 0x346   : > { %v4599_v31 = vmax.f32 %v4464_v24, 0.0  ;;  %v4467_v20 = vadd.f32 %v7726_v59, %v4466_v19  ;;  %v5195_v12 = vpop.f32.mrb[23].mxu0 }
 0x348   : > { %v5111_v23 = vpack.c.bf16 %v4599_v31, %v4599_v31  ;;  %v4600_v32 = vmax.f32 %v4467_v20, 0.0 }
 0x34a   : > { %4806 = vst.msk [vmem:[%s7754_s12 + $0x28] sm:$0xf] %vm4795_vm11, %v5111_v23  ;;  %v5112_v2 = vpack.c.bf16 %v4600_v32, %v4600_v32 }
 0x34b   : > { %v4543_v40 = vpop.f32.mrb[16].mxu1 }
 0x34c   : > { %4807 = vst.msk [vmem:[%s7754_s12 + $0x2c] sm:$0xf] %vm4795_vm11, %v5112_v2  ;;  %v4544_v30 = vadd.f32 %v7726_v59, %v4543_v40  ;;  %v5234_v49 = vpop.f32.mrb[17].mxu1 }
 0x34d   : > { %v4546_v35 = vpop.f32.mrb[18].mxu1 }
 0x34e   : > { %v4619_v9 = vmax.f32 %v4544_v30, 0.0  ;;  %v4547_v56 = vadd.f32 %v7726_v59, %v4546_v35  ;;  %v5235_v26 = vpop.f32.mrb[19].mxu1 }
 0x350   : > { %v5131_v45 = vpack.c.bf16 %v4619_v9, %v4619_v9  ;;  %v4620_v6 = vmax.f32 %v4547_v56, 0.0 }
 0x352   : > { %4826 = vst.msk [vmem:[%s7754_s12 + $0x78] sm:$0xf] %vm4795_vm11, %v5131_v45  ;;  %v5132_v25 = vpack.c.bf16 %v4620_v6, %v4620_v6 }
 0x354   : > { %4827 = vst.msk [vmem:[%s7754_s12 + $0x7c] sm:$0xf] %vm4795_vm11, %v5132_v25 }
 0x367   : > { %v4471_v11 = vpop.f32.mrb[24].mxu0 }
 0x368   : > { %v4472_v13 = vadd.f32 %v7726_v59, %v4471_v11  ;;  %v5198_v42 = vpop.f32.mrb[25].mxu0 }
 0x369   : > { %v4474_v21 = vpop.f32.mrb[26].mxu0 }
 0x36a   : > { %v4601_v39 = vmax.f32 %v4472_v13, 0.0  ;;  %v4475_v55 = vadd.f32 %v7726_v59, %v4474_v21  ;;  %v5199_v60 = vpop.f32.mrb[27].mxu0 }
 0x36c   : > { %v5113_v18 = vpack.c.bf16 %v4601_v39, %v4601_v39  ;;  %v4602_v0 = vmax.f32 %v4475_v55, 0.0 }
 0x36e   : > { %4808 = vst.msk [vmem:[%s7754_s12 + $0x30] sm:$0xf] %vm4795_vm11, %v5113_v18  ;;  %v5114_v61 = vpack.c.bf16 %v4602_v0, %v4602_v0 }
 0x36f   : > { %v4551_v14 = vpop.f32.mrb[20].mxu1 }
 0x370   : > { %4809 = vst.msk [vmem:[%s7754_s12 + $0x34] sm:$0xf] %vm4795_vm11, %v5114_v61  ;;  %v4552_v7 = vadd.f32 %v7726_v59, %v4551_v14  ;;  %v5238_v51 = vpop.f32.mrb[21].mxu1 }
 0x371   : > { %v4554_v28 = vpop.f32.mrb[22].mxu1 }
 0x372   : > { %v4621_v63 = vmax.f32 %v4552_v7, 0.0  ;;  %v4555_v37 = vadd.f32 %v7726_v59, %v4554_v28  ;;  %v5239_v53 = vpop.f32.mrb[23].mxu1 }
 0x374   : > { %v5133_v38 = vpack.c.bf16 %v4621_v63, %v4621_v63  ;;  %v4622_v1 = vmax.f32 %v4555_v37, 0.0 }
 0x376   : > { %4828 = vst.msk [vmem:[%s7754_s12 + $0x80] sm:$0xf] %vm4795_vm11, %v5133_v38  ;;  %v5134_v47 = vpack.c.bf16 %v4622_v1, %v4622_v1 }
 0x378   : > { %4829 = vst.msk [vmem:[%s7754_s12 + $0x84] sm:$0xf] %vm4795_vm11, %v5134_v47 }
 0x38b   : > { %v4479_v33 = vpop.f32.mrb[28].mxu0 }
 0x38c   : > { %v4480_v10 = vadd.f32 %v7726_v59, %v4479_v33  ;;  %v5202_v50 = vpop.f32.mrb[29].mxu0 }
 0x38d   : > { %v4482_v62 = vpop.f32.mrb[30].mxu0 }
 0x38e   : > { %v4603_v27 = vmax.f32 %v4480_v10, 0.0  ;;  %v4483_v48 = vadd.f32 %v7726_v59, %v4482_v62  ;;  %v5203_v17 = vpop.f32.mrb[31].mxu0 }
 0x390   : > { %v5115_v36 = vpack.c.bf16 %v4603_v27, %v4603_v27  ;;  %v4604_v3 = vmax.f32 %v4483_v48, 0.0 }
 0x392   : > { %4810 = vst.msk [vmem:[%s7754_s12 + $0x38] sm:$0xf] %vm4795_vm11, %v5115_v36  ;;  %v5116_v22 = vpack.c.bf16 %v4604_v3, %v4604_v3 }
 0x393   : > { %v4559_v16 = vpop.f32.mrb[24].mxu1 }
 0x394   : > { %4811 = vst.msk [vmem:[%s7754_s12 + $0x3c] sm:$0xf] %vm4795_vm11, %v5116_v22  ;;  %v4560_v46 = vadd.f32 %v7726_v59, %v4559_v16  ;;  %v5242_v41 = vpop.f32.mrb[25].mxu1 }
 0x395   : > { %v4562_v52 = vpop.f32.mrb[26].mxu1 }
 0x396   : > { %v4623_v8 = vmax.f32 %v4560_v46, 0.0  ;;  %v4563_v54 = vadd.f32 %v7726_v59, %v4562_v52  ;;  %v5243_v44 = vpop.f32.mrb[27].mxu1 }
 0x398   : > { %v5135_v29 = vpack.c.bf16 %v4623_v8, %v4623_v8  ;;  %v4624_v43 = vmax.f32 %v4563_v54, 0.0 }
 0x39a   : > { %4830 = vst.msk [vmem:[%s7754_s12 + $0x88] sm:$0xf] %vm4795_vm11, %v5135_v29  ;;  %v5136_v34 = vpack.c.bf16 %v4624_v43, %v4624_v43 }
 0x39c   : > { %4831 = vst.msk [vmem:[%s7754_s12 + $0x8c] sm:$0xf] %vm4795_vm11, %v5136_v34 }
 0x3af   : > { %v4487_v4 = vpop.f32.mrb[32].mxu0 }
 0x3b0   : > { %v4488_v15 = vadd.f32 %v7726_v59, %v4487_v4  ;;  %v5206_v5 = vpop.f32.mrb[33].mxu0 }
 0x3b1   : > { %v4490_v57 = vpop.f32.mrb[34].mxu0 }
 0x3b2   : > { %v4605_v24 = vmax.f32 %v4488_v15, 0.0  ;;  %v4491_v58 = vadd.f32 %v7726_v59, %v4490_v57  ;;  %v5207_v19 = vpop.f32.mrb[35].mxu0 }
 0x3b4   : > { %v5117_v31 = vpack.c.bf16 %v4605_v24, %v4605_v24  ;;  %v4606_v20 = vmax.f32 %v4491_v58, 0.0 }
 0x3b6   : > { %4812 = vst.msk [vmem:[%s7754_s12 + $0x40] sm:$0xf] %vm4795_vm11, %v5117_v31  ;;  %v5118_v12 = vpack.c.bf16 %v4606_v20, %v4606_v20 }
 0x3b7   : > { %v4567_v23 = vpop.f32.mrb[28].mxu1 }
 0x3b8   : > { %4813 = vst.msk [vmem:[%s7754_s12 + $0x44] sm:$0xf] %vm4795_vm11, %v5118_v12  ;;  %v4568_v32 = vadd.f32 %v7726_v59, %v4567_v23  ;;  %v5246_v2 = vpop.f32.mrb[29].mxu1 }
 0x3b9   : > { %v4570_v40 = vpop.f32.mrb[30].mxu1 }
 0x3ba   : > { %v4625_v30 = vmax.f32 %v4568_v32, 0.0  ;;  %v4571_v49 = vadd.f32 %v7726_v59, %v4570_v40  ;;  %v5247_v35 = vpop.f32.mrb[31].mxu1 }
 0x3bc   : > { %v5137_v9 = vpack.c.bf16 %v4625_v30, %v4625_v30  ;;  %v4626_v56 = vmax.f32 %v4571_v49, 0.0 }
 0x3be   : > { %4832 = vst.msk [vmem:[%s7754_s12 + $0x90] sm:$0xf] %vm4795_vm11, %v5137_v9  ;;  %v5138_v26 = vpack.c.bf16 %v4626_v56, %v4626_v56 }
 0x3c0   : > { %4833 = vst.msk [vmem:[%s7754_s12 + $0x94] sm:$0xf] %vm4795_vm11, %v5138_v26 }
 0x3d3   : > { %v4495_v45 = vpop.f32.mrb[36].mxu0 }
 0x3d4   : > { %v4496_v6 = vadd.f32 %v7726_v59, %v4495_v45  ;;  %v5210_v25 = vpop.f32.mrb[37].mxu0 }
 0x3d5   : > { %v4498_v11 = vpop.f32.mrb[38].mxu0 }
 0x3d6   : > { %v4607_v13 = vmax.f32 %v4496_v6, 0.0  ;;  %v4499_v42 = vadd.f32 %v7726_v59, %v4498_v11  ;;  %v5211_v21 = vpop.f32.mrb[39].mxu0 }
 0x3d8   : > { %v5119_v39 = vpack.c.bf16 %v4607_v13, %v4607_v13  ;;  %v4608_v55 = vmax.f32 %v4499_v42, 0.0 }
 0x3da   : > { %4814 = vst.msk [vmem:[%s7754_s12 + $0x48] sm:$0xf] %vm4795_vm11, %v5119_v39  ;;  %v5120_v60 = vpack.c.bf16 %v4608_v55, %v4608_v55 }
 0x3db   : > { %v4575_v18 = vpop.f32.mrb[32].mxu1 }
 0x3dc   : > { %4815 = vst.msk [vmem:[%s7754_s12 + $0x4c] sm:$0xf] %vm4795_vm11, %v5120_v60  ;;  %v4576_v0 = vadd.f32 %v7726_v59, %v4575_v18  ;;  %v5250_v61 = vpop.f32.mrb[33].mxu1 }
 0x3dd   : > { %v4578_v14 = vpop.f32.mrb[34].mxu1 }
 0x3de   : > { %v4627_v7 = vmax.f32 %v4576_v0, 0.0  ;;  %v4579_v51 = vadd.f32 %v7726_v59, %v4578_v14  ;;  %v5251_v28 = vpop.f32.mrb[35].mxu1 }
 0x3e0   : > { %v5139_v63 = vpack.c.bf16 %v4627_v7, %v4627_v7  ;;  %v4628_v37 = vmax.f32 %v4579_v51, 0.0 }
 0x3e2   : > { %4834 = vst.msk [vmem:[%s7754_s12 + $0x98] sm:$0xf] %vm4795_vm11, %v5139_v63  ;;  %v5140_v53 = vpack.c.bf16 %v4628_v37, %v4628_v37 }
 0x3e4   : > { %4835 = vst.msk [vmem:[%s7754_s12 + $0x9c] sm:$0xf] %vm4795_vm11, %v5140_v53 }
 0x3f3   : > { %v4503_v38 = vpop.f32.mrb[40].mxu0 }
 0x3f4   : > { %v4504_v1 = vadd.f32 %v7726_v59, %v4503_v38  ;;  %v5214_v47 = vpop.f32.mrb[41].mxu0 }
 0x3f5   : > { %v4506_v33 = vpop.f32.mrb[42].mxu0 }
 0x3f6   : > { %v4609_v10 = vmax.f32 %v4504_v1, 0.0  ;;  %v4507_v50 = vadd.f32 %v7726_v59, %v4506_v33  ;;  %v5215_v62 = vpop.f32.mrb[43].mxu0 }
 0x3f8   : > { %v5121_v27 = vpack.c.bf16 %v4609_v10, %v4609_v10  ;;  %v4610_v48 = vmax.f32 %v4507_v50, 0.0  ;;  %v4583_v17 = vpop.f32.mrb[36].mxu1 }
 0x3f9   : > { %v4584_v36 = vadd.f32 %v7726_v59, %v4583_v17  ;;  %v5254_v3 = vpop.f32.mrb[37].mxu1 }
 0x3fa   : > { %4816 = vst.msk [vmem:[%s7754_s12 + $0x50] sm:$0xf] %vm4795_vm11, %v5121_v27  ;;  %v5122_v22 = vpack.c.bf16 %v4610_v48, %v4610_v48  ;;  %v4586_v16 = vpop.f32.mrb[38].mxu1 }
 0x3fb   : > { %v4629_v46 = vmax.f32 %v4584_v36, 0.0  ;;  %v5255_v41 = vpop.f32.mrb[39].mxu1 }
 0x3fc   : > { %4817 = vst.msk [vmem:[%s7754_s12 + $0x54] sm:$0xf] %vm4795_vm11, %v5122_v22 }
 0x3fd   : > { %v5141_v52 = vpack.c.bf16 %v4629_v46, %v4629_v46 }
 0x3ff   : > { %4836 = vst.msk [vmem:[%s7754_s12 + $0xa0] sm:$0xf] %vm4795_vm11, %v5141_v52 }
 0x400 PF: > { %s13_s14 = sadd.s32 1, %s5344_s14   ;;  %s8019_s12 = smov %s5340_s13 }
 0x401   : > { %p10_p5 = scmp.ge.s32.totalorder %s13_s14, 4   ;;  %s8020_s13 = smov %s8022_s15 }
 0x403   :  { %12 = sbr.rel (!%p10_p5) target bundleno = 2 (0x2), region = 68 }

</bundles_post_ra>
